<compile_context>
chip_gen: v6e
topology: v6e:2x2x1
jax: 0.10.0
libtpu: 0.0.40
codegen_flags: <defaults>
</compile_context>

<pallas_src>
import jax
import jax.numpy as jnp
from jax.experimental import pallas as pl
from jax.experimental.pallas import tpu as pltpu


# ----------------------------- fused kernel -----------------------------

def _conv_relu_pool(pad_ref, act, w_ref, b_ref):
    """Conv2d(k=2, pad=1) + ReLU + MaxPool2d(2) for one sample, fully in VMEM.

    pad_ref: VMEM scratch (H+2, W+2, Cin) f32 (zero border implements padding=1)
    act:     (H, W, Cin) f32 value
    w_ref:   (2, 2, Cin, Cout) bf16 ref
    b_ref:   (1, 1, Cout) f32 ref
    returns  (Hp, Wp, Cout) f32 value with Hp=(H+1)//2, Wp=(W+1)//2
    """
    H, W, cin = act.shape
    hc, wc = H + 1, W + 1            # conv output size for k=2, pad=1
    cout = w_ref.shape[-1]
    hp, wp = hc // 2, wc // 2        # floor-mode 2x2 pooling

    # Zero-padded copy of the activation (padding=1 on both spatial sides).
    # Interior is overwritten every call, so this stays correct under megacore
    # grid partitioning (each core owns its own scratch).
    pad_ref[...] = jnp.zeros(pad_ref.shape, pad_ref.dtype)
    pad_ref[1:H + 1, 1:W + 1, :] = act

    # Conv as 4 shifted taps; each tap is a batched matmul over the hc output rows:
    # (wc x cin) @ (cin x cout) per row, bf16 operands, f32 accumulation.
    # Reading each tap directly from the ref keeps the sublane offset in the load
    # (cheap) instead of shifting register data.
    acc = None
    for kh in range(2):
        for kw in range(2):
            tap = pad_ref[kh:kh + hc, kw:kw + wc, :].astype(jnp.bfloat16)
            wk = jnp.broadcast_to(w_ref[kh, kw], (hc, cin, cout))
            part = jnp.einsum('hwc,hcd->hwd', tap, wk,
                              preferred_element_type=jnp.float32)
            acc = part if acc is None else acc + part
    y = jnp.maximum(acc + b_ref[...], 0.0)           # (hc, wc, cout), bias + ReLU fused

    # MaxPool2d(2), floor mode (odd trailing row/col dropped, like PyTorch).
    # Rows: pair consecutive rows with a leading-dim reshape (layout-free), then max.
    yr = y[:2 * hp].reshape(hp, 2, wc, cout)
    hm = jnp.maximum(yr[:, 0], yr[:, 1])             # (hp, wc, cout)
    # Columns: exact 0/1 selection matmuls picking even / odd columns, then max.
    # (Selection stays in f32 so pooled values are bit-exact copies of the ReLU output.)
    rows = jax.lax.broadcasted_iota(jnp.int32, (wp, wc), 0)
    cols = jax.lax.broadcasted_iota(jnp.int32, (wp, wc), 1)
    s_even = (cols == 2 * rows).astype(jnp.float32)
    s_odd = (cols == 2 * rows + 1).astype(jnp.float32)
    even = jnp.einsum('pqw,pwc->pqc', jnp.broadcast_to(s_even, (hp, wp, wc)), hm,
                      preferred_element_type=jnp.float32)
    odd = jnp.einsum('pqw,pwc->pqc', jnp.broadcast_to(s_odd, (hp, wp, wc)), hm,
                     preferred_element_type=jnp.float32)
    return jnp.maximum(even, odd)                    # (hp, wp, cout)


def convnet_kernel(x_ref, w1_ref, b1_ref, w2_ref, b2_ref, w3_ref, b3_ref,
                   fw1_ref, fb1_ref, fw2_ref, fb2_ref, o_ref,
                   pad1_ref, pad2_ref, pad3_ref):
    x = x_ref[0]                                         # (H, W, Cin) f32, one sample
    a = _conv_relu_pool(pad1_ref, x, w1_ref, b1_ref)     # (H1, W1, Ch)
    a = _conv_relu_pool(pad2_ref, a, w2_ref, b2_ref)     # (H2, W2, Ch)
    a = _conv_relu_pool(pad3_ref, a, w3_ref, b3_ref)     # (H3, W3, Ch)

    # Flatten + Linear(64) + ReLU.  fc1's weight was pre-arranged to (H3, W3, C, 64)
    # in PyTorch's (C, H, W) nn.Flatten row order, so the flatten is folded into
    # H3*W3 small matmuls and no data relayout is needed on the activation.
    h3, w3, _ = a.shape
    h = None
    for hh in range(h3):
        row = a[hh]                                      # (W3, C)
        for ww in range(w3):
            xs = row[ww:ww + 1, :].astype(jnp.bfloat16)  # (1, C)
            part = jnp.dot(xs, fw1_ref[hh, ww],
                           preferred_element_type=jnp.float32)      # (1, 64)
            h = part if h is None else h + part
    h = jnp.maximum(h + fb1_ref[...], 0.0)               # (1, 64)

    # Linear(4) + Softmax(dim=1).
    logits = jnp.dot(h.astype(jnp.bfloat16), fw2_ref[...],
                     preferred_element_type=jnp.float32) + fb2_ref[...]   # (1, out)
    m = jnp.max(logits, axis=-1, keepdims=True)
    e = jnp.exp(logits - m)
    denom = jnp.sum(e, axis=-1, keepdims=True)
    o_ref[0] = e * pl.reciprocal(denom, approx=True)


# ----------------------------- wrapper -----------------------------

def _pool_out(s):
    return (s + 1) // 2   # Conv(k=2, pad=1): s -> s+1; MaxPool(2) floor: -> (s+1)//2


def convnet_forward(x_nchw, params):
    """Forward pass matching ConvNet.forward.  x_nchw: (batch, k, num_asset, num_fields)."""
    x = jnp.transpose(x_nchw, (0, 2, 3, 1)).astype(jnp.float32)   # NCHW -> NHWC (tiny)
    N, H, W, cin = x.shape

    (cw1, cb1), (cw2, cb2), (cw3, cb3) = params["conv1"], params["conv2"], params["conv3"]
    ch = cw1.shape[-1]
    out_dim = params["fc2_w"].shape[-1]

    p1h, p1w = _pool_out(H), _pool_out(W)
    p2h, p2w = _pool_out(p1h), _pool_out(p1w)
    p3h, p3w = _pool_out(p2h), _pool_out(p2w)

    # One-time weight prep (outside the kernel's hot path):
    #  - matmul operands in bf16 (MXU-native on v5e/v6e/v7x), biases stay f32
    #  - fc1 rows permuted from PyTorch's (C, H, W) flatten order to (H3, W3, C, 64)
    conv_ws = [w.astype(jnp.bfloat16) for w in (cw1, cw2, cw3)]
    conv_bs = [b.reshape(1, 1, -1).astype(jnp.float32) for b in (cb1, cb2, cb3)]
    fw1 = (params["fc1_w"].reshape(ch, p3h, p3w, -1)
           .transpose(1, 2, 0, 3).astype(jnp.bfloat16))            # (H3, W3, C, 64)
    fb1 = params["fc1_b"].reshape(1, -1).astype(jnp.float32)
    fw2 = params["fc2_w"].astype(jnp.bfloat16)
    fb2 = params["fc2_b"].reshape(1, -1).astype(jnp.float32)

    def _replicated(arr):
        nd = arr.ndim
        return pl.BlockSpec(arr.shape, lambda n, _nd=nd: (0,) * _nd)

    inputs = (x, conv_ws[0], conv_bs[0], conv_ws[1], conv_bs[1],
              conv_ws[2], conv_bs[2], fw1, fb1, fw2, fb2)
    in_specs = [pl.BlockSpec((1, H, W, cin), lambda n: (n, 0, 0, 0))]
    in_specs += [_replicated(a) for a in inputs[1:]]

    out = pl.pallas_call(
        convnet_kernel,
        out_shape=jax.ShapeDtypeStruct((N, 1, out_dim), jnp.float32),
        grid_spec=pltpu.PrefetchScalarGridSpec(
            num_scalar_prefetch=0,
            grid=(N,),
            in_specs=in_specs,
            out_specs=pl.BlockSpec((1, 1, out_dim), lambda n: (n, 0, 0)),
            scratch_shapes=[
                pltpu.VMEM((H + 2, W + 2, cin), jnp.float32),
                pltpu.VMEM((p1h + 2, p1w + 2, ch), jnp.float32),
                pltpu.VMEM((p2h + 2, p2w + 2, ch), jnp.float32),
            ]),
        compiler_params=pltpu.CompilerParams(
            dimension_semantics=("parallel",)),
    )(*inputs)
    return out.reshape(N, out_dim)


# ----------------------------- params & pure-JAX reference -----------------------------

def init_params(key, input_channels, hidden_channels, output_dim, H, W):
    """Deterministic parameter init mirroring the module's layer shapes."""
    ks = jax.random.split(key, 8)
    scale = 0.1

    def conv_p(k, cin, cout):
        kw, kb = jax.random.split(k)
        return (scale * jax.random.normal(kw, (2, 2, cin, cout), jnp.float32),
                scale * jax.random.normal(kb, (cout,), jnp.float32))

    params = {
        "conv1": conv_p(ks[0], input_channels, hidden_channels),
        "conv2": conv_p(ks[1], hidden_channels, hidden_channels),
        "conv3": conv_p(ks[2], hidden_channels, hidden_channels),
    }
    h, w = H, W
    for _ in range(3):
        h, w = (h + 1) // 2, (w + 1) // 2
    flat = hidden_channels * h * w      # nn.Flatten on NCHW flattens (C, H, W)
    params["fc1_w"] = scale * jax.random.normal(ks[3], (flat, 64), jnp.float32)
    params["fc1_b"] = scale * jax.random.normal(ks[4], (64,), jnp.float32)
    params["fc2_w"] = scale * jax.random.normal(ks[5], (64, output_dim), jnp.float32)
    params["fc2_b"] = scale * jax.random.normal(ks[6], (output_dim,), jnp.float32)
    return params


def reference_forward(x_nchw, params):
    """Pure-JAX (f32) reference of the PyTorch forward, for correctness checking."""
    x = jnp.transpose(x_nchw, (0, 2, 3, 1)).astype(jnp.float32)
    for name in ("conv1", "conv2", "conv3"):
        w, b = params[name]
        x = jax.lax.conv_general_dilated(
            x, w, window_strides=(1, 1), padding=((1, 1), (1, 1)),
            dimension_numbers=("NHWC", "HWIO", "NHWC"))
        x = jnp.maximum(x + b, 0.0)
        x = jax.lax.reduce_window(x, -jnp.inf, jax.lax.max,
                                  (1, 2, 2, 1), (1, 2, 2, 1), "VALID")
    n = x.shape[0]
    x = jnp.transpose(x, (0, 3, 1, 2)).reshape(n, -1)    # (C, H, W) flatten order
    h = jnp.maximum(x @ params["fc1_w"] + params["fc1_b"], 0.0)
    logits = h @ params["fc2_w"] + params["fc2_b"]
    return jax.nn.softmax(logits, axis=1)


if __name__ == "__main__":
    # Shapes consistent with the module: (batch, k, num_asset, num_fields)
    batch, k_channels, num_asset, num_fields = 2, 4, 16, 16
    hidden_channels, output_dim = 16, 4

    key = jax.random.PRNGKey(0)
    kx, kp = jax.random.split(key)
    x = jax.random.normal(kx, (batch, k_channels, num_asset, num_fields), jnp.float32)
    params = init_params(kp, k_channels, hidden_channels, output_dim,
                         num_asset, num_fields)

    out = jax.jit(convnet_forward)(x, params)
    out = jax.block_until_ready(out)
    ref = reference_forward(x, params)

    assert out.shape == (batch, output_dim), out.shape
    assert bool(jnp.all(jnp.isfinite(out)))
    # softmax rows sum to 1 (approx reciprocal => small tolerance)
    assert bool(jnp.allclose(jnp.sum(out, axis=1), 1.0, atol=2e-3))
    # matches the f32 reference within mixed-precision (bf16 MXU) tolerance
    assert bool(jnp.allclose(out, ref, atol=5e-2)), float(jnp.max(jnp.abs(out - ref)))
    print("KERNEL_OK")
</pallas_src>

<mosaic_0001>
module attributes {stable_mosaic.version = 11 : i64} {
  func.func @convnet_kernel(%arg0: i32, %arg1: memref<1x16x16x4xf32, #tpu.memory_space<vmem>>, %arg2: memref<2x2x4x16xbf16, #tpu.memory_space<vmem>>, %arg3: memref<1x1x16xf32, #tpu.memory_space<vmem>>, %arg4: memref<2x2x16x16xbf16, #tpu.memory_space<vmem>>, %arg5: memref<1x1x16xf32, #tpu.memory_space<vmem>>, %arg6: memref<2x2x16x16xbf16, #tpu.memory_space<vmem>>, %arg7: memref<1x1x16xf32, #tpu.memory_space<vmem>>, %arg8: memref<2x2x16x64xbf16, #tpu.memory_space<vmem>>, %arg9: memref<1x64xf32, #tpu.memory_space<vmem>>, %arg10: memref<64x4xbf16, #tpu.memory_space<vmem>>, %arg11: memref<1x4xf32, #tpu.memory_space<vmem>>, %arg12: memref<1x1x4xf32, #tpu.memory_space<vmem>>, %arg13: memref<18x18x4xf32, #tpu.memory_space<vmem>>, %arg14: memref<10x10x16xf32, #tpu.memory_space<vmem>>, %arg15: memref<6x6x16xf32, #tpu.memory_space<vmem>>) attributes {dimension_semantics = [#tpu.dimension_semantics<parallel>], iteration_bounds = array<i64: 2>, scalar_prefetch = 0 : i64, scratch_operands = 3 : i64, tpu.core_type = #tpu.core_type<tc>, window_params = [{transform_indices = @transform_0, window_bounds = array<i64: 1, 16, 16, 4>}, {pipeline_mode = #tpu.pipeline_mode<synchronous>, transform_indices = @transform_1, window_bounds = array<i64: 2, 2, 4, 16>}, {pipeline_mode = #tpu.pipeline_mode<synchronous>, transform_indices = @transform_2, window_bounds = array<i64: 1, 1, 16>}, {pipeline_mode = #tpu.pipeline_mode<synchronous>, transform_indices = @transform_3, window_bounds = array<i64: 2, 2, 16, 16>}, {pipeline_mode = #tpu.pipeline_mode<synchronous>, transform_indices = @transform_4, window_bounds = array<i64: 1, 1, 16>}, {pipeline_mode = #tpu.pipeline_mode<synchronous>, transform_indices = @transform_5, window_bounds = array<i64: 2, 2, 16, 16>}, {pipeline_mode = #tpu.pipeline_mode<synchronous>, transform_indices = @transform_6, window_bounds = array<i64: 1, 1, 16>}, {pipeline_mode = #tpu.pipeline_mode<synchronous>, transform_indices = @transform_7, window_bounds = array<i64: 2, 2, 16, 64>}, {pipeline_mode = #tpu.pipeline_mode<synchronous>, transform_indices = @transform_8, window_bounds = array<i64: 1, 64>}, {pipeline_mode = #tpu.pipeline_mode<synchronous>, transform_indices = @transform_9, window_bounds = array<i64: 64, 4>}, {pipeline_mode = #tpu.pipeline_mode<synchronous>, transform_indices = @transform_10, window_bounds = array<i64: 1, 4>}, {transform_indices = @transform_11, window_bounds = array<i64: 1, 1, 4>}]} {
    %c0 = arith.constant 0 : index
    %c0_0 = arith.constant 0 : index
    %c0_1 = arith.constant 0 : index
    %c0_2 = arith.constant 0 : index
    %0 = vector.load %arg1[%c0, %c0_0, %c0_1, %c0_2] : memref<1x16x16x4xf32, #tpu.memory_space<vmem>>, vector<1x16x16x4xf32>
    %1 = vector.shape_cast %0 : vector<1x16x16x4xf32> to vector<16x16x4xf32>
    %cst = arith.constant 0.000000e+00 : f32
    %2 = vector.broadcast %cst : f32 to vector<18x18x4xf32>
    %c0_3 = arith.constant 0 : index
    %c0_4 = arith.constant 0 : index
    %c0_5 = arith.constant 0 : index
    %3 = vector.load %arg13[%c0_3, %c0_4, %c0_5] : memref<18x18x4xf32, #tpu.memory_space<vmem>>, vector<18x18x4xf32>
    tpu.vector_store %arg13[%c0_3, %c0_4, %c0_5], %2 {strides = array<i32>} : memref<18x18x4xf32, #tpu.memory_space<vmem>>, vector<18x18x4xf32>,
    %c1 = arith.constant 1 : index
    %c1_6 = arith.constant 1 : index
    %c0_7 = arith.constant 0 : index
    %4 = vector.load %arg13[%c1, %c1_6, %c0_7] : memref<18x18x4xf32, #tpu.memory_space<vmem>>, vector<16x16x4xf32>
    tpu.vector_store %arg13[%c1, %c1_6, %c0_7], %1 {strides = array<i32>} : memref<18x18x4xf32, #tpu.memory_space<vmem>>, vector<16x16x4xf32>,
    %c0_8 = arith.constant 0 : index
    %c0_9 = arith.constant 0 : index
    %c0_10 = arith.constant 0 : index
    %5 = vector.load %arg13[%c0_8, %c0_9, %c0_10] : memref<18x18x4xf32, #tpu.memory_space<vmem>>, vector<17x17x4xf32>
    %6 = arith.truncf %5 : vector<17x17x4xf32> to vector<17x17x4xbf16>
    %c0_11 = arith.constant 0 : index
    %c0_12 = arith.constant 0 : index
    %c0_13 = arith.constant 0 : index
    %c0_14 = arith.constant 0 : index
    %7 = vector.load %arg2[%c0_11, %c0_12, %c0_13, %c0_14] : memref<2x2x4x16xbf16, #tpu.memory_space<vmem>>, vector<1x1x4x16xbf16>
    %8 = vector.shape_cast %7 : vector<1x1x4x16xbf16> to vector<4x16xbf16>
    %9 = vector.shape_cast %8 : vector<4x16xbf16> to vector<1x4x16xbf16>
    %10 = vector.broadcast %9 : vector<1x4x16xbf16> to vector<17x4x16xbf16>
    "tpu.trace_start"() <{level = 10 : i32, message = "hwc,hcd->hwd"}> : () -> ()
    %cst_15 = arith.constant dense<0.000000e+00> : vector<17x17x16xf32>
    %11 = tpu.matmul %6, %10, %cst_15 {dimension_numbers = #tpu.dot_dimension_numbers<[2], [1], [1], [2], [0, 0, 0, 1, 1, 2], [0], [0]>} : vector<17x17x4xbf16>, vector<17x4x16xbf16>, vector<17x17x16xf32> -> vector<17x17x16xf32>
    "tpu.trace_stop"() : () -> ()
    %c0_16 = arith.constant 0 : index
    %c1_17 = arith.constant 1 : index
    %c0_18 = arith.constant 0 : index
    %12 = vector.load %arg13[%c0_16, %c1_17, %c0_18] : memref<18x18x4xf32, #tpu.memory_space<vmem>>, vector<17x17x4xf32>
    %13 = arith.truncf %12 : vector<17x17x4xf32> to vector<17x17x4xbf16>
    %c0_19 = arith.constant 0 : index
    %c1_20 = arith.constant 1 : index
    %c0_21 = arith.constant 0 : index
    %c0_22 = arith.constant 0 : index
    %14 = vector.load %arg2[%c0_19, %c1_20, %c0_21, %c0_22] : memref<2x2x4x16xbf16, #tpu.memory_space<vmem>>, vector<1x1x4x16xbf16>
    %15 = vector.shape_cast %14 : vector<1x1x4x16xbf16> to vector<4x16xbf16>
    %16 = vector.shape_cast %15 : vector<4x16xbf16> to vector<1x4x16xbf16>
    %17 = vector.broadcast %16 : vector<1x4x16xbf16> to vector<17x4x16xbf16>
    "tpu.trace_start"() <{level = 10 : i32, message = "hwc,hcd->hwd"}> : () -> ()
    %cst_23 = arith.constant dense<0.000000e+00> : vector<17x17x16xf32>
    %18 = tpu.matmul %13, %17, %cst_23 {dimension_numbers = #tpu.dot_dimension_numbers<[2], [1], [1], [2], [0, 0, 0, 1, 1, 2], [0], [0]>} : vector<17x17x4xbf16>, vector<17x4x16xbf16>, vector<17x17x16xf32> -> vector<17x17x16xf32>
    "tpu.trace_stop"() : () -> ()
    %19 = arith.addf %11, %18 : vector<17x17x16xf32>
    %c1_24 = arith.constant 1 : index
    %c0_25 = arith.constant 0 : index
    %c0_26 = arith.constant 0 : index
    %20 = vector.load %arg13[%c1_24, %c0_25, %c0_26] : memref<18x18x4xf32, #tpu.memory_space<vmem>>, vector<17x17x4xf32>
    %21 = arith.truncf %20 : vector<17x17x4xf32> to vector<17x17x4xbf16>
    %c1_27 = arith.constant 1 : index
    %c0_28 = arith.constant 0 : index
    %c0_29 = arith.constant 0 : index
    %c0_30 = arith.constant 0 : index
    %22 = vector.load %arg2[%c1_27, %c0_28, %c0_29, %c0_30] : memref<2x2x4x16xbf16, #tpu.memory_space<vmem>>, vector<1x1x4x16xbf16>
    %23 = vector.shape_cast %22 : vector<1x1x4x16xbf16> to vector<4x16xbf16>
    %24 = vector.shape_cast %23 : vector<4x16xbf16> to vector<1x4x16xbf16>
    %25 = vector.broadcast %24 : vector<1x4x16xbf16> to vector<17x4x16xbf16>
    "tpu.trace_start"() <{level = 10 : i32, message = "hwc,hcd->hwd"}> : () -> ()
    %cst_31 = arith.constant dense<0.000000e+00> : vector<17x17x16xf32>
    %26 = tpu.matmul %21, %25, %cst_31 {dimension_numbers = #tpu.dot_dimension_numbers<[2], [1], [1], [2], [0, 0, 0, 1, 1, 2], [0], [0]>} : vector<17x17x4xbf16>, vector<17x4x16xbf16>, vector<17x17x16xf32> -> vector<17x17x16xf32>
    "tpu.trace_stop"() : () -> ()
    %27 = arith.addf %19, %26 : vector<17x17x16xf32>
    %c1_32 = arith.constant 1 : index
    %c1_33 = arith.constant 1 : index
    %c0_34 = arith.constant 0 : index
    %28 = vector.load %arg13[%c1_32, %c1_33, %c0_34] : memref<18x18x4xf32, #tpu.memory_space<vmem>>, vector<17x17x4xf32>
    %29 = arith.truncf %28 : vector<17x17x4xf32> to vector<17x17x4xbf16>
    %c1_35 = arith.constant 1 : index
    %c1_36 = arith.constant 1 : index
    %c0_37 = arith.constant 0 : index
    %c0_38 = arith.constant 0 : index
    %30 = vector.load %arg2[%c1_35, %c1_36, %c0_37, %c0_38] : memref<2x2x4x16xbf16, #tpu.memory_space<vmem>>, vector<1x1x4x16xbf16>
    %31 = vector.shape_cast %30 : vector<1x1x4x16xbf16> to vector<4x16xbf16>
    %32 = vector.shape_cast %31 : vector<4x16xbf16> to vector<1x4x16xbf16>
    %33 = vector.broadcast %32 : vector<1x4x16xbf16> to vector<17x4x16xbf16>
    "tpu.trace_start"() <{level = 10 : i32, message = "hwc,hcd->hwd"}> : () -> ()
    %cst_39 = arith.constant dense<0.000000e+00> : vector<17x17x16xf32>
    %34 = tpu.matmul %29, %33, %cst_39 {dimension_numbers = #tpu.dot_dimension_numbers<[2], [1], [1], [2], [0, 0, 0, 1, 1, 2], [0], [0]>} : vector<17x17x4xbf16>, vector<17x4x16xbf16>, vector<17x17x16xf32> -> vector<17x17x16xf32>
    "tpu.trace_stop"() : () -> ()
    %35 = arith.addf %27, %34 : vector<17x17x16xf32>
    %c0_40 = arith.constant 0 : index
    %c0_41 = arith.constant 0 : index
    %c0_42 = arith.constant 0 : index
    %36 = vector.load %arg3[%c0_40, %c0_41, %c0_42] : memref<1x1x16xf32, #tpu.memory_space<vmem>>, vector<1x1x16xf32>
    %37 = vector.broadcast %36 : vector<1x1x16xf32> to vector<17x17x16xf32>
    %38 = arith.addf %35, %37 : vector<17x17x16xf32>
    %cst_43 = arith.constant 0.000000e+00 : f32
    %39 = vector.broadcast %cst_43 : f32 to vector<17x17x16xf32>
    %40 = arith.maximumf %38, %39 : vector<17x17x16xf32>
    %41 = vector.extract_strided_slice %40 {offsets = [0, 0, 0], sizes = [16, 17, 16], strides = [1, 1, 1]} : vector<17x17x16xf32> to vector<16x17x16xf32>
    %42 = vector.shape_cast %41 : vector<16x17x16xf32> to vector<8x2x17x16xf32>
    %43 = vector.extract_strided_slice %42 {offsets = [0, 0, 0, 0], sizes = [8, 1, 17, 16], strides = [1, 1, 1, 1]} : vector<8x2x17x16xf32> to vector<8x1x17x16xf32>
    %44 = vector.shape_cast %43 : vector<8x1x17x16xf32> to vector<8x17x16xf32>
    %45 = vector.extract_strided_slice %42 {offsets = [0, 1, 0, 0], sizes = [8, 1, 17, 16], strides = [1, 1, 1, 1]} : vector<8x2x17x16xf32> to vector<8x1x17x16xf32>
    %46 = vector.shape_cast %45 : vector<8x1x17x16xf32> to vector<8x17x16xf32>
    %47 = arith.maximumf %44, %46 : vector<8x17x16xf32>
    %48 = tpu.iota {dimensions = array<i32: 0>} : vector<8x17xi32>
    %49 = tpu.iota {dimensions = array<i32: 1>} : vector<8x17xi32>
    %c2_i32 = arith.constant 2 : i32
    %50 = vector.broadcast %c2_i32 : i32 to vector<8x17xi32>
    %51 = arith.muli %50, %48 : vector<8x17xi32>
    %52 = arith.cmpi eq, %49, %51 : vector<8x17xi32>
    %53 = arith.extui %52 : vector<8x17xi1> to vector<8x17xi32>
    %54 = arith.sitofp %53 : vector<8x17xi32> to vector<8x17xf32>
    %c2_i32_44 = arith.constant 2 : i32
    %55 = vector.broadcast %c2_i32_44 : i32 to vector<8x17xi32>
    %56 = arith.muli %55, %48 : vector<8x17xi32>
    %c1_i32 = arith.constant 1 : i32
    %57 = vector.broadcast %c1_i32 : i32 to vector<8x17xi32>
    %58 = arith.addi %56, %57 : vector<8x17xi32>
    %59 = arith.cmpi eq, %49, %58 : vector<8x17xi32>
    %60 = arith.extui %59 : vector<8x17xi1> to vector<8x17xi32>
    %61 = arith.sitofp %60 : vector<8x17xi32> to vector<8x17xf32>
    %62 = vector.shape_cast %54 : vector<8x17xf32> to vector<1x8x17xf32>
    %63 = vector.broadcast %62 : vector<1x8x17xf32> to vector<8x8x17xf32>
    "tpu.trace_start"() <{level = 10 : i32, message = "pqw,pwc->pqc"}> : () -> ()
    %cst_45 = arith.constant dense<0.000000e+00> : vector<8x8x16xf32>
    %64 = tpu.matmul %63, %47, %cst_45 {dimension_numbers = #tpu.dot_dimension_numbers<[2], [1], [1], [2], [0, 0, 0, 1, 1, 2], [0], [0]>} : vector<8x8x17xf32>, vector<8x17x16xf32>, vector<8x8x16xf32> -> vector<8x8x16xf32>
    "tpu.trace_stop"() : () -> ()
    %65 = vector.shape_cast %61 : vector<8x17xf32> to vector<1x8x17xf32>
    %66 = vector.broadcast %65 : vector<1x8x17xf32> to vector<8x8x17xf32>
    "tpu.trace_start"() <{level = 10 : i32, message = "pqw,pwc->pqc"}> : () -> ()
    %cst_46 = arith.constant dense<0.000000e+00> : vector<8x8x16xf32>
    %67 = tpu.matmul %66, %47, %cst_46 {dimension_numbers = #tpu.dot_dimension_numbers<[2], [1], [1], [2], [0, 0, 0, 1, 1, 2], [0], [0]>} : vector<8x8x17xf32>, vector<8x17x16xf32>, vector<8x8x16xf32> -> vector<8x8x16xf32>
    "tpu.trace_stop"() : () -> ()
    %68 = arith.maximumf %64, %67 : vector<8x8x16xf32>
    %cst_47 = arith.constant 0.000000e+00 : f32
    %69 = vector.broadcast %cst_47 : f32 to vector<10x10x16xf32>
    %c0_48 = arith.constant 0 : index
    %c0_49 = arith.constant 0 : index
    %c0_50 = arith.constant 0 : index
    %70 = vector.load %arg14[%c0_48, %c0_49, %c0_50] : memref<10x10x16xf32, #tpu.memory_space<vmem>>, vector<10x10x16xf32>
    tpu.vector_store %arg14[%c0_48, %c0_49, %c0_50], %69 {strides = array<i32>} : memref<10x10x16xf32, #tpu.memory_space<vmem>>, vector<10x10x16xf32>,
    %c1_51 = arith.constant 1 : index
    %c1_52 = arith.constant 1 : index
    %c0_53 = arith.constant 0 : index
    %71 = vector.load %arg14[%c1_51, %c1_52, %c0_53] : memref<10x10x16xf32, #tpu.memory_space<vmem>>, vector<8x8x16xf32>
    tpu.vector_store %arg14[%c1_51, %c1_52, %c0_53], %68 {strides = array<i32>} : memref<10x10x16xf32, #tpu.memory_space<vmem>>, vector<8x8x16xf32>,
    %c0_54 = arith.constant 0 : index
    %c0_55 = arith.constant 0 : index
    %c0_56 = arith.constant 0 : index
    %72 = vector.load %arg14[%c0_54, %c0_55, %c0_56] : memref<10x10x16xf32, #tpu.memory_space<vmem>>, vector<9x9x16xf32>
    %73 = arith.truncf %72 : vector<9x9x16xf32> to vector<9x9x16xbf16>
    %c0_57 = arith.constant 0 : index
    %c0_58 = arith.constant 0 : index
    %c0_59 = arith.constant 0 : index
    %c0_60 = arith.constant 0 : index
    %74 = vector.load %arg4[%c0_57, %c0_58, %c0_59, %c0_60] : memref<2x2x16x16xbf16, #tpu.memory_space<vmem>>, vector<1x1x16x16xbf16>
    %75 = vector.shape_cast %74 : vector<1x1x16x16xbf16> to vector<16x16xbf16>
    %76 = vector.shape_cast %75 : vector<16x16xbf16> to vector<1x16x16xbf16>
    %77 = vector.broadcast %76 : vector<1x16x16xbf16> to vector<9x16x16xbf16>
    "tpu.trace_start"() <{level = 10 : i32, message = "hwc,hcd->hwd"}> : () -> ()
    %cst_61 = arith.constant dense<0.000000e+00> : vector<9x9x16xf32>
    %78 = tpu.matmul %73, %77, %cst_61 {dimension_numbers = #tpu.dot_dimension_numbers<[2], [1], [1], [2], [0, 0, 0, 1, 1, 2], [0], [0]>} : vector<9x9x16xbf16>, vector<9x16x16xbf16>, vector<9x9x16xf32> -> vector<9x9x16xf32>
    "tpu.trace_stop"() : () -> ()
    %c0_62 = arith.constant 0 : index
    %c1_63 = arith.constant 1 : index
    %c0_64 = arith.constant 0 : index
    %79 = vector.load %arg14[%c0_62, %c1_63, %c0_64] : memref<10x10x16xf32, #tpu.memory_space<vmem>>, vector<9x9x16xf32>
    %80 = arith.truncf %79 : vector<9x9x16xf32> to vector<9x9x16xbf16>
    %c0_65 = arith.constant 0 : index
    %c1_66 = arith.constant 1 : index
    %c0_67 = arith.constant 0 : index
    %c0_68 = arith.constant 0 : index
    %81 = vector.load %arg4[%c0_65, %c1_66, %c0_67, %c0_68] : memref<2x2x16x16xbf16, #tpu.memory_space<vmem>>, vector<1x1x16x16xbf16>
    %82 = vector.shape_cast %81 : vector<1x1x16x16xbf16> to vector<16x16xbf16>
    %83 = vector.shape_cast %82 : vector<16x16xbf16> to vector<1x16x16xbf16>
    %84 = vector.broadcast %83 : vector<1x16x16xbf16> to vector<9x16x16xbf16>
    "tpu.trace_start"() <{level = 10 : i32, message = "hwc,hcd->hwd"}> : () -> ()
    %cst_69 = arith.constant dense<0.000000e+00> : vector<9x9x16xf32>
    %85 = tpu.matmul %80, %84, %cst_69 {dimension_numbers = #tpu.dot_dimension_numbers<[2], [1], [1], [2], [0, 0, 0, 1, 1, 2], [0], [0]>} : vector<9x9x16xbf16>, vector<9x16x16xbf16>, vector<9x9x16xf32> -> vector<9x9x16xf32>
    "tpu.trace_stop"() : () -> ()
    %86 = arith.addf %78, %85 : vector<9x9x16xf32>
    %c1_70 = arith.constant 1 : index
    %c0_71 = arith.constant 0 : index
    %c0_72 = arith.constant 0 : index
    %87 = vector.load %arg14[%c1_70, %c0_71, %c0_72] : memref<10x10x16xf32, #tpu.memory_space<vmem>>, vector<9x9x16xf32>
    %88 = arith.truncf %87 : vector<9x9x16xf32> to vector<9x9x16xbf16>
    %c1_73 = arith.constant 1 : index
    %c0_74 = arith.constant 0 : index
    %c0_75 = arith.constant 0 : index
    %c0_76 = arith.constant 0 : index
    %89 = vector.load %arg4[%c1_73, %c0_74, %c0_75, %c0_76] : memref<2x2x16x16xbf16, #tpu.memory_space<vmem>>, vector<1x1x16x16xbf16>
    %90 = vector.shape_cast %89 : vector<1x1x16x16xbf16> to vector<16x16xbf16>
    %91 = vector.shape_cast %90 : vector<16x16xbf16> to vector<1x16x16xbf16>
    %92 = vector.broadcast %91 : vector<1x16x16xbf16> to vector<9x16x16xbf16>
    "tpu.trace_start"() <{level = 10 : i32, message = "hwc,hcd->hwd"}> : () -> ()
    %cst_77 = arith.constant dense<0.000000e+00> : vector<9x9x16xf32>
    %93 = tpu.matmul %88, %92, %cst_77 {dimension_numbers = #tpu.dot_dimension_numbers<[2], [1], [1], [2], [0, 0, 0, 1, 1, 2], [0], [0]>} : vector<9x9x16xbf16>, vector<9x16x16xbf16>, vector<9x9x16xf32> -> vector<9x9x16xf32>
    "tpu.trace_stop"() : () -> ()
    %94 = arith.addf %86, %93 : vector<9x9x16xf32>
    %c1_78 = arith.constant 1 : index
    %c1_79 = arith.constant 1 : index
    %c0_80 = arith.constant 0 : index
    %95 = vector.load %arg14[%c1_78, %c1_79, %c0_80] : memref<10x10x16xf32, #tpu.memory_space<vmem>>, vector<9x9x16xf32>
    %96 = arith.truncf %95 : vector<9x9x16xf32> to vector<9x9x16xbf16>
    %c1_81 = arith.constant 1 : index
    %c1_82 = arith.constant 1 : index
    %c0_83 = arith.constant 0 : index
    %c0_84 = arith.constant 0 : index
    %97 = vector.load %arg4[%c1_81, %c1_82, %c0_83, %c0_84] : memref<2x2x16x16xbf16, #tpu.memory_space<vmem>>, vector<1x1x16x16xbf16>
    %98 = vector.shape_cast %97 : vector<1x1x16x16xbf16> to vector<16x16xbf16>
    %99 = vector.shape_cast %98 : vector<16x16xbf16> to vector<1x16x16xbf16>
    %100 = vector.broadcast %99 : vector<1x16x16xbf16> to vector<9x16x16xbf16>
    "tpu.trace_start"() <{level = 10 : i32, message = "hwc,hcd->hwd"}> : () -> ()
    %cst_85 = arith.constant dense<0.000000e+00> : vector<9x9x16xf32>
    %101 = tpu.matmul %96, %100, %cst_85 {dimension_numbers = #tpu.dot_dimension_numbers<[2], [1], [1], [2], [0, 0, 0, 1, 1, 2], [0], [0]>} : vector<9x9x16xbf16>, vector<9x16x16xbf16>, vector<9x9x16xf32> -> vector<9x9x16xf32>
    "tpu.trace_stop"() : () -> ()
    %102 = arith.addf %94, %101 : vector<9x9x16xf32>
    %c0_86 = arith.constant 0 : index
    %c0_87 = arith.constant 0 : index
    %c0_88 = arith.constant 0 : index
    %103 = vector.load %arg5[%c0_86, %c0_87, %c0_88] : memref<1x1x16xf32, #tpu.memory_space<vmem>>, vector<1x1x16xf32>
    %104 = vector.broadcast %103 : vector<1x1x16xf32> to vector<9x9x16xf32>
    %105 = arith.addf %102, %104 : vector<9x9x16xf32>
    %cst_89 = arith.constant 0.000000e+00 : f32
    %106 = vector.broadcast %cst_89 : f32 to vector<9x9x16xf32>
    %107 = arith.maximumf %105, %106 : vector<9x9x16xf32>
    %108 = vector.extract_strided_slice %107 {offsets = [0, 0, 0], sizes = [8, 9, 16], strides = [1, 1, 1]} : vector<9x9x16xf32> to vector<8x9x16xf32>
    %109 = vector.shape_cast %108 : vector<8x9x16xf32> to vector<4x2x9x16xf32>
    %110 = vector.extract_strided_slice %109 {offsets = [0, 0, 0, 0], sizes = [4, 1, 9, 16], strides = [1, 1, 1, 1]} : vector<4x2x9x16xf32> to vector<4x1x9x16xf32>
    %111 = vector.shape_cast %110 : vector<4x1x9x16xf32> to vector<4x9x16xf32>
    %112 = vector.extract_strided_slice %109 {offsets = [0, 1, 0, 0], sizes = [4, 1, 9, 16], strides = [1, 1, 1, 1]} : vector<4x2x9x16xf32> to vector<4x1x9x16xf32>
    %113 = vector.shape_cast %112 : vector<4x1x9x16xf32> to vector<4x9x16xf32>
    %114 = arith.maximumf %111, %113 : vector<4x9x16xf32>
    %115 = tpu.iota {dimensions = array<i32: 0>} : vector<4x9xi32>
    %116 = tpu.iota {dimensions = array<i32: 1>} : vector<4x9xi32>
    %c2_i32_90 = arith.constant 2 : i32
    %117 = vector.broadcast %c2_i32_90 : i32 to vector<4x9xi32>
    %118 = arith.muli %117, %115 : vector<4x9xi32>
    %119 = arith.cmpi eq, %116, %118 : vector<4x9xi32>
    %120 = arith.extui %119 : vector<4x9xi1> to vector<4x9xi32>
    %121 = arith.sitofp %120 : vector<4x9xi32> to vector<4x9xf32>
    %c2_i32_91 = arith.constant 2 : i32
    %122 = vector.broadcast %c2_i32_91 : i32 to vector<4x9xi32>
    %123 = arith.muli %122, %115 : vector<4x9xi32>
    %c1_i32_92 = arith.constant 1 : i32
    %124 = vector.broadcast %c1_i32_92 : i32 to vector<4x9xi32>
    %125 = arith.addi %123, %124 : vector<4x9xi32>
    %126 = arith.cmpi eq, %116, %125 : vector<4x9xi32>
    %127 = arith.extui %126 : vector<4x9xi1> to vector<4x9xi32>
    %128 = arith.sitofp %127 : vector<4x9xi32> to vector<4x9xf32>
    %129 = vector.shape_cast %121 : vector<4x9xf32> to vector<1x4x9xf32>
    %130 = vector.broadcast %129 : vector<1x4x9xf32> to vector<4x4x9xf32>
    "tpu.trace_start"() <{level = 10 : i32, message = "pqw,pwc->pqc"}> : () -> ()
    %cst_93 = arith.constant dense<0.000000e+00> : vector<4x4x16xf32>
    %131 = tpu.matmul %130, %114, %cst_93 {dimension_numbers = #tpu.dot_dimension_numbers<[2], [1], [1], [2], [0, 0, 0, 1, 1, 2], [0], [0]>} : vector<4x4x9xf32>, vector<4x9x16xf32>, vector<4x4x16xf32> -> vector<4x4x16xf32>
    "tpu.trace_stop"() : () -> ()
    %132 = vector.shape_cast %128 : vector<4x9xf32> to vector<1x4x9xf32>
    %133 = vector.broadcast %132 : vector<1x4x9xf32> to vector<4x4x9xf32>
    "tpu.trace_start"() <{level = 10 : i32, message = "pqw,pwc->pqc"}> : () -> ()
    %cst_94 = arith.constant dense<0.000000e+00> : vector<4x4x16xf32>
    %134 = tpu.matmul %133, %114, %cst_94 {dimension_numbers = #tpu.dot_dimension_numbers<[2], [1], [1], [2], [0, 0, 0, 1, 1, 2], [0], [0]>} : vector<4x4x9xf32>, vector<4x9x16xf32>, vector<4x4x16xf32> -> vector<4x4x16xf32>
    "tpu.trace_stop"() : () -> ()
    %135 = arith.maximumf %131, %134 : vector<4x4x16xf32>
    %cst_95 = arith.constant 0.000000e+00 : f32
    %136 = vector.broadcast %cst_95 : f32 to vector<6x6x16xf32>
    %c0_96 = arith.constant 0 : index
    %c0_97 = arith.constant 0 : index
    %c0_98 = arith.constant 0 : index
    %137 = vector.load %arg15[%c0_96, %c0_97, %c0_98] : memref<6x6x16xf32, #tpu.memory_space<vmem>>, vector<6x6x16xf32>
    tpu.vector_store %arg15[%c0_96, %c0_97, %c0_98], %136 {strides = array<i32>} : memref<6x6x16xf32, #tpu.memory_space<vmem>>, vector<6x6x16xf32>,
    %c1_99 = arith.constant 1 : index
    %c1_100 = arith.constant 1 : index
    %c0_101 = arith.constant 0 : index
    %138 = vector.load %arg15[%c1_99, %c1_100, %c0_101] : memref<6x6x16xf32, #tpu.memory_space<vmem>>, vector<4x4x16xf32>
    tpu.vector_store %arg15[%c1_99, %c1_100, %c0_101], %135 {strides = array<i32>} : memref<6x6x16xf32, #tpu.memory_space<vmem>>, vector<4x4x16xf32>,
    %c0_102 = arith.constant 0 : index
    %c0_103 = arith.constant 0 : index
    %c0_104 = arith.constant 0 : index
    %139 = vector.load %arg15[%c0_102, %c0_103, %c0_104] : memref<6x6x16xf32, #tpu.memory_space<vmem>>, vector<5x5x16xf32>
    %140 = arith.truncf %139 : vector<5x5x16xf32> to vector<5x5x16xbf16>
    %c0_105 = arith.constant 0 : index
    %c0_106 = arith.constant 0 : index
    %c0_107 = arith.constant 0 : index
    %c0_108 = arith.constant 0 : index
    %141 = vector.load %arg6[%c0_105, %c0_106, %c0_107, %c0_108] : memref<2x2x16x16xbf16, #tpu.memory_space<vmem>>, vector<1x1x16x16xbf16>
    %142 = vector.shape_cast %141 : vector<1x1x16x16xbf16> to vector<16x16xbf16>
    %143 = vector.shape_cast %142 : vector<16x16xbf16> to vector<1x16x16xbf16>
    %144 = vector.broadcast %143 : vector<1x16x16xbf16> to vector<5x16x16xbf16>
    "tpu.trace_start"() <{level = 10 : i32, message = "hwc,hcd->hwd"}> : () -> ()
    %cst_109 = arith.constant dense<0.000000e+00> : vector<5x5x16xf32>
    %145 = tpu.matmul %140, %144, %cst_109 {dimension_numbers = #tpu.dot_dimension_numbers<[2], [1], [1], [2], [0, 0, 0, 1, 1, 2], [0], [0]>} : vector<5x5x16xbf16>, vector<5x16x16xbf16>, vector<5x5x16xf32> -> vector<5x5x16xf32>
    "tpu.trace_stop"() : () -> ()
    %c0_110 = arith.constant 0 : index
    %c1_111 = arith.constant 1 : index
    %c0_112 = arith.constant 0 : index
    %146 = vector.load %arg15[%c0_110, %c1_111, %c0_112] : memref<6x6x16xf32, #tpu.memory_space<vmem>>, vector<5x5x16xf32>
    %147 = arith.truncf %146 : vector<5x5x16xf32> to vector<5x5x16xbf16>
    %c0_113 = arith.constant 0 : index
    %c1_114 = arith.constant 1 : index
    %c0_115 = arith.constant 0 : index
    %c0_116 = arith.constant 0 : index
    %148 = vector.load %arg6[%c0_113, %c1_114, %c0_115, %c0_116] : memref<2x2x16x16xbf16, #tpu.memory_space<vmem>>, vector<1x1x16x16xbf16>
    %149 = vector.shape_cast %148 : vector<1x1x16x16xbf16> to vector<16x16xbf16>
    %150 = vector.shape_cast %149 : vector<16x16xbf16> to vector<1x16x16xbf16>
    %151 = vector.broadcast %150 : vector<1x16x16xbf16> to vector<5x16x16xbf16>
    "tpu.trace_start"() <{level = 10 : i32, message = "hwc,hcd->hwd"}> : () -> ()
    %cst_117 = arith.constant dense<0.000000e+00> : vector<5x5x16xf32>
    %152 = tpu.matmul %147, %151, %cst_117 {dimension_numbers = #tpu.dot_dimension_numbers<[2], [1], [1], [2], [0, 0, 0, 1, 1, 2], [0], [0]>} : vector<5x5x16xbf16>, vector<5x16x16xbf16>, vector<5x5x16xf32> -> vector<5x5x16xf32>
    "tpu.trace_stop"() : () -> ()
    %153 = arith.addf %145, %152 : vector<5x5x16xf32>
    %c1_118 = arith.constant 1 : index
    %c0_119 = arith.constant 0 : index
    %c0_120 = arith.constant 0 : index
    %154 = vector.load %arg15[%c1_118, %c0_119, %c0_120] : memref<6x6x16xf32, #tpu.memory_space<vmem>>, vector<5x5x16xf32>
    %155 = arith.truncf %154 : vector<5x5x16xf32> to vector<5x5x16xbf16>
    %c1_121 = arith.constant 1 : index
    %c0_122 = arith.constant 0 : index
    %c0_123 = arith.constant 0 : index
    %c0_124 = arith.constant 0 : index
    %156 = vector.load %arg6[%c1_121, %c0_122, %c0_123, %c0_124] : memref<2x2x16x16xbf16, #tpu.memory_space<vmem>>, vector<1x1x16x16xbf16>
    %157 = vector.shape_cast %156 : vector<1x1x16x16xbf16> to vector<16x16xbf16>
    %158 = vector.shape_cast %157 : vector<16x16xbf16> to vector<1x16x16xbf16>
    %159 = vector.broadcast %158 : vector<1x16x16xbf16> to vector<5x16x16xbf16>
    "tpu.trace_start"() <{level = 10 : i32, message = "hwc,hcd->hwd"}> : () -> ()
    %cst_125 = arith.constant dense<0.000000e+00> : vector<5x5x16xf32>
    %160 = tpu.matmul %155, %159, %cst_125 {dimension_numbers = #tpu.dot_dimension_numbers<[2], [1], [1], [2], [0, 0, 0, 1, 1, 2], [0], [0]>} : vector<5x5x16xbf16>, vector<5x16x16xbf16>, vector<5x5x16xf32> -> vector<5x5x16xf32>
    "tpu.trace_stop"() : () -> ()
    %161 = arith.addf %153, %160 : vector<5x5x16xf32>
    %c1_126 = arith.constant 1 : index
    %c1_127 = arith.constant 1 : index
    %c0_128 = arith.constant 0 : index
    %162 = vector.load %arg15[%c1_126, %c1_127, %c0_128] : memref<6x6x16xf32, #tpu.memory_space<vmem>>, vector<5x5x16xf32>
    %163 = arith.truncf %162 : vector<5x5x16xf32> to vector<5x5x16xbf16>
    %c1_129 = arith.constant 1 : index
    %c1_130 = arith.constant 1 : index
    %c0_131 = arith.constant 0 : index
    %c0_132 = arith.constant 0 : index
    %164 = vector.load %arg6[%c1_129, %c1_130, %c0_131, %c0_132] : memref<2x2x16x16xbf16, #tpu.memory_space<vmem>>, vector<1x1x16x16xbf16>
    %165 = vector.shape_cast %164 : vector<1x1x16x16xbf16> to vector<16x16xbf16>
    %166 = vector.shape_cast %165 : vector<16x16xbf16> to vector<1x16x16xbf16>
    %167 = vector.broadcast %166 : vector<1x16x16xbf16> to vector<5x16x16xbf16>
    "tpu.trace_start"() <{level = 10 : i32, message = "hwc,hcd->hwd"}> : () -> ()
    %cst_133 = arith.constant dense<0.000000e+00> : vector<5x5x16xf32>
    %168 = tpu.matmul %163, %167, %cst_133 {dimension_numbers = #tpu.dot_dimension_numbers<[2], [1], [1], [2], [0, 0, 0, 1, 1, 2], [0], [0]>} : vector<5x5x16xbf16>, vector<5x16x16xbf16>, vector<5x5x16xf32> -> vector<5x5x16xf32>
    "tpu.trace_stop"() : () -> ()
    %169 = arith.addf %161, %168 : vector<5x5x16xf32>
    %c0_134 = arith.constant 0 : index
    %c0_135 = arith.constant 0 : index
    %c0_136 = arith.constant 0 : index
    %170 = vector.load %arg7[%c0_134, %c0_135, %c0_136] : memref<1x1x16xf32, #tpu.memory_space<vmem>>, vector<1x1x16xf32>
    %171 = vector.broadcast %170 : vector<1x1x16xf32> to vector<5x5x16xf32>
    %172 = arith.addf %169, %171 : vector<5x5x16xf32>
    %cst_137 = arith.constant 0.000000e+00 : f32
    %173 = vector.broadcast %cst_137 : f32 to vector<5x5x16xf32>
    %174 = arith.maximumf %172, %173 : vector<5x5x16xf32>
    %175 = vector.extract_strided_slice %174 {offsets = [0, 0, 0], sizes = [4, 5, 16], strides = [1, 1, 1]} : vector<5x5x16xf32> to vector<4x5x16xf32>
    %176 = vector.shape_cast %175 : vector<4x5x16xf32> to vector<2x2x5x16xf32>
    %177 = vector.extract_strided_slice %176 {offsets = [0, 0, 0, 0], sizes = [2, 1, 5, 16], strides = [1, 1, 1, 1]} : vector<2x2x5x16xf32> to vector<2x1x5x16xf32>
    %178 = vector.shape_cast %177 : vector<2x1x5x16xf32> to vector<2x5x16xf32>
    %179 = vector.extract_strided_slice %176 {offsets = [0, 1, 0, 0], sizes = [2, 1, 5, 16], strides = [1, 1, 1, 1]} : vector<2x2x5x16xf32> to vector<2x1x5x16xf32>
    %180 = vector.shape_cast %179 : vector<2x1x5x16xf32> to vector<2x5x16xf32>
    %181 = arith.maximumf %178, %180 : vector<2x5x16xf32>
    %182 = tpu.iota {dimensions = array<i32: 0>} : vector<2x5xi32>
    %183 = tpu.iota {dimensions = array<i32: 1>} : vector<2x5xi32>
    %c2_i32_138 = arith.constant 2 : i32
    %184 = vector.broadcast %c2_i32_138 : i32 to vector<2x5xi32>
    %185 = arith.muli %184, %182 : vector<2x5xi32>
    %186 = arith.cmpi eq, %183, %185 : vector<2x5xi32>
    %187 = arith.extui %186 : vector<2x5xi1> to vector<2x5xi32>
    %188 = arith.sitofp %187 : vector<2x5xi32> to vector<2x5xf32>
    %c2_i32_139 = arith.constant 2 : i32
    %189 = vector.broadcast %c2_i32_139 : i32 to vector<2x5xi32>
    %190 = arith.muli %189, %182 : vector<2x5xi32>
    %c1_i32_140 = arith.constant 1 : i32
    %191 = vector.broadcast %c1_i32_140 : i32 to vector<2x5xi32>
    %192 = arith.addi %190, %191 : vector<2x5xi32>
    %193 = arith.cmpi eq, %183, %192 : vector<2x5xi32>
    %194 = arith.extui %193 : vector<2x5xi1> to vector<2x5xi32>
    %195 = arith.sitofp %194 : vector<2x5xi32> to vector<2x5xf32>
    %196 = vector.shape_cast %188 : vector<2x5xf32> to vector<1x2x5xf32>
    %197 = vector.broadcast %196 : vector<1x2x5xf32> to vector<2x2x5xf32>
    "tpu.trace_start"() <{level = 10 : i32, message = "pqw,pwc->pqc"}> : () -> ()
    %cst_141 = arith.constant dense<0.000000e+00> : vector<2x2x16xf32>
    %198 = tpu.matmul %197, %181, %cst_141 {dimension_numbers = #tpu.dot_dimension_numbers<[2], [1], [1], [2], [0, 0, 0, 1, 1, 2], [0], [0]>} : vector<2x2x5xf32>, vector<2x5x16xf32>, vector<2x2x16xf32> -> vector<2x2x16xf32>
    "tpu.trace_stop"() : () -> ()
    %199 = vector.shape_cast %195 : vector<2x5xf32> to vector<1x2x5xf32>
    %200 = vector.broadcast %199 : vector<1x2x5xf32> to vector<2x2x5xf32>
    "tpu.trace_start"() <{level = 10 : i32, message = "pqw,pwc->pqc"}> : () -> ()
    %cst_142 = arith.constant dense<0.000000e+00> : vector<2x2x16xf32>
    %201 = tpu.matmul %200, %181, %cst_142 {dimension_numbers = #tpu.dot_dimension_numbers<[2], [1], [1], [2], [0, 0, 0, 1, 1, 2], [0], [0]>} : vector<2x2x5xf32>, vector<2x5x16xf32>, vector<2x2x16xf32> -> vector<2x2x16xf32>
    "tpu.trace_stop"() : () -> ()
    %202 = arith.maximumf %198, %201 : vector<2x2x16xf32>
    %203 = vector.extract_strided_slice %202 {offsets = [0, 0, 0], sizes = [1, 2, 16], strides = [1, 1, 1]} : vector<2x2x16xf32> to vector<1x2x16xf32>
    %204 = vector.shape_cast %203 : vector<1x2x16xf32> to vector<2x16xf32>
    %205 = vector.extract_strided_slice %204 {offsets = [0, 0], sizes = [1, 16], strides = [1, 1]} : vector<2x16xf32> to vector<1x16xf32>
    %206 = arith.truncf %205 : vector<1x16xf32> to vector<1x16xbf16>
    %c0_143 = arith.constant 0 : index
    %c0_144 = arith.constant 0 : index
    %c0_145 = arith.constant 0 : index
    %c0_146 = arith.constant 0 : index
    %207 = vector.load %arg8[%c0_143, %c0_144, %c0_145, %c0_146] : memref<2x2x16x64xbf16, #tpu.memory_space<vmem>>, vector<1x1x16x64xbf16>
    %208 = vector.shape_cast %207 : vector<1x1x16x64xbf16> to vector<16x64xbf16>
    %cst_147 = arith.constant dense<0.000000e+00> : vector<1x64xf32>
    %209 = tpu.matmul %206, %208, %cst_147 {dimension_numbers = #tpu.dot_dimension_numbers<[1], [0], [0], [1], [0, 0, 1, 1], [], []>} : vector<1x16xbf16>, vector<16x64xbf16>, vector<1x64xf32> -> vector<1x64xf32>
    %210 = vector.extract_strided_slice %204 {offsets = [1, 0], sizes = [1, 16], strides = [1, 1]} : vector<2x16xf32> to vector<1x16xf32>
    %211 = arith.truncf %210 : vector<1x16xf32> to vector<1x16xbf16>
    %c0_148 = arith.constant 0 : index
    %c1_149 = arith.constant 1 : index
    %c0_150 = arith.constant 0 : index
    %c0_151 = arith.constant 0 : index
    %212 = vector.load %arg8[%c0_148, %c1_149, %c0_150, %c0_151] : memref<2x2x16x64xbf16, #tpu.memory_space<vmem>>, vector<1x1x16x64xbf16>
    %213 = vector.shape_cast %212 : vector<1x1x16x64xbf16> to vector<16x64xbf16>
    %cst_152 = arith.constant dense<0.000000e+00> : vector<1x64xf32>
    %214 = tpu.matmul %211, %213, %cst_152 {dimension_numbers = #tpu.dot_dimension_numbers<[1], [0], [0], [1], [0, 0, 1, 1], [], []>} : vector<1x16xbf16>, vector<16x64xbf16>, vector<1x64xf32> -> vector<1x64xf32>
    %215 = arith.addf %209, %214 : vector<1x64xf32>
    %216 = vector.extract_strided_slice %202 {offsets = [1, 0, 0], sizes = [1, 2, 16], strides = [1, 1, 1]} : vector<2x2x16xf32> to vector<1x2x16xf32>
    %217 = vector.shape_cast %216 : vector<1x2x16xf32> to vector<2x16xf32>
    %218 = vector.extract_strided_slice %217 {offsets = [0, 0], sizes = [1, 16], strides = [1, 1]} : vector<2x16xf32> to vector<1x16xf32>
    %219 = arith.truncf %218 : vector<1x16xf32> to vector<1x16xbf16>
    %c1_153 = arith.constant 1 : index
    %c0_154 = arith.constant 0 : index
    %c0_155 = arith.constant 0 : index
    %c0_156 = arith.constant 0 : index
    %220 = vector.load %arg8[%c1_153, %c0_154, %c0_155, %c0_156] : memref<2x2x16x64xbf16, #tpu.memory_space<vmem>>, vector<1x1x16x64xbf16>
    %221 = vector.shape_cast %220 : vector<1x1x16x64xbf16> to vector<16x64xbf16>
    %cst_157 = arith.constant dense<0.000000e+00> : vector<1x64xf32>
    %222 = tpu.matmul %219, %221, %cst_157 {dimension_numbers = #tpu.dot_dimension_numbers<[1], [0], [0], [1], [0, 0, 1, 1], [], []>} : vector<1x16xbf16>, vector<16x64xbf16>, vector<1x64xf32> -> vector<1x64xf32>
    %223 = arith.addf %215, %222 : vector<1x64xf32>
    %224 = vector.extract_strided_slice %217 {offsets = [1, 0], sizes = [1, 16], strides = [1, 1]} : vector<2x16xf32> to vector<1x16xf32>
    %225 = arith.truncf %224 : vector<1x16xf32> to vector<1x16xbf16>
    %c1_158 = arith.constant 1 : index
    %c1_159 = arith.constant 1 : index
    %c0_160 = arith.constant 0 : index
    %c0_161 = arith.constant 0 : index
    %226 = vector.load %arg8[%c1_158, %c1_159, %c0_160, %c0_161] : memref<2x2x16x64xbf16, #tpu.memory_space<vmem>>, vector<1x1x16x64xbf16>
    %227 = vector.shape_cast %226 : vector<1x1x16x64xbf16> to vector<16x64xbf16>
    %cst_162 = arith.constant dense<0.000000e+00> : vector<1x64xf32>
    %228 = tpu.matmul %225, %227, %cst_162 {dimension_numbers = #tpu.dot_dimension_numbers<[1], [0], [0], [1], [0, 0, 1, 1], [], []>} : vector<1x16xbf16>, vector<16x64xbf16>, vector<1x64xf32> -> vector<1x64xf32>
    %229 = arith.addf %223, %228 : vector<1x64xf32>
    %c0_163 = arith.constant 0 : index
    %c0_164 = arith.constant 0 : index
    %230 = vector.load %arg9[%c0_163, %c0_164] : memref<1x64xf32, #tpu.memory_space<vmem>>, vector<1x64xf32>
    %231 = arith.addf %229, %230 : vector<1x64xf32>
    %cst_165 = arith.constant 0.000000e+00 : f32
    %232 = vector.broadcast %cst_165 : f32 to vector<1x64xf32>
    %233 = arith.maximumf %231, %232 : vector<1x64xf32>
    %234 = arith.truncf %233 : vector<1x64xf32> to vector<1x64xbf16>
    %c0_166 = arith.constant 0 : index
    %c0_167 = arith.constant 0 : index
    %235 = vector.load %arg10[%c0_166, %c0_167] : memref<64x4xbf16, #tpu.memory_space<vmem>>, vector<64x4xbf16>
    %cst_168 = arith.constant dense<0.000000e+00> : vector<1x4xf32>
    %236 = tpu.matmul %234, %235, %cst_168 {dimension_numbers = #tpu.dot_dimension_numbers<[1], [0], [0], [1], [0, 0, 1, 1], [], []>} : vector<1x64xbf16>, vector<64x4xbf16>, vector<1x4xf32> -> vector<1x4xf32>
    %c0_169 = arith.constant 0 : index
    %c0_170 = arith.constant 0 : index
    %237 = vector.load %arg11[%c0_169, %c0_170] : memref<1x4xf32, #tpu.memory_space<vmem>>, vector<1x4xf32>
    %238 = arith.addf %236, %237 : vector<1x4xf32>
    %cst_171 = arith.constant dense<0xFF800000> : vector<1xf32>
    %239 = vector.multi_reduction <maximumf>, %238, %cst_171 [1] : vector<1x4xf32> to vector<1xf32>
    %240 = vector.shape_cast %239 : vector<1xf32> to vector<1x1xf32>
    %241 = vector.broadcast %240 : vector<1x1xf32> to vector<1x4xf32>
    %242 = arith.subf %238, %241 : vector<1x4xf32>
    %243 = math.exp %242 : vector<1x4xf32>
    %cst_172 = arith.constant dense<0.000000e+00> : vector<1xf32>
    %244 = vector.multi_reduction <add>, %243, %cst_172 [1] : vector<1x4xf32> to vector<1xf32>
    %245 = vector.shape_cast %244 : vector<1xf32> to vector<1x1xf32>
    %246 = tpu.reciprocal %245 {approx = true} : vector<1x1xf32> -> vector<1x1xf32>
    %247 = vector.broadcast %246 : vector<1x1xf32> to vector<1x4xf32>
    %248 = arith.mulf %243, %247 : vector<1x4xf32>
    %c0_173 = arith.constant 0 : index
    %c0_174 = arith.constant 0 : index
    %c0_175 = arith.constant 0 : index
    %249 = vector.load %arg12[%c0_173, %c0_174, %c0_175] : memref<1x1x4xf32, #tpu.memory_space<vmem>>, vector<1x1x4xf32>
    %250 = vector.shape_cast %249 : vector<1x1x4xf32> to vector<1x4xf32>
    %251 = vector.shape_cast %248 : vector<1x4xf32> to vector<1x1x4xf32>
    tpu.vector_store %arg12[%c0_173, %c0_174, %c0_175], %251 {strides = array<i32>} : memref<1x1x4xf32, #tpu.memory_space<vmem>>, vector<1x1x4xf32>,
    return
  }
  func.func @transform_0(%arg0: i32) -> (i32, i32, i32, i32) {
    %c0_i32 = arith.constant 0 : i32
    %c0_i32_0 = arith.constant 0 : i32
    %c0_i32_1 = arith.constant 0 : i32
    %c0_i32_2 = arith.constant 0 : i32
    return %arg0, %c0_i32, %c0_i32_0, %c0_i32_1 : i32, i32, i32, i32
  }
  func.func @transform_1(%arg0: i32) -> (i32, i32, i32, i32) {
    %c0_i32 = arith.constant 0 : i32
    %c0_i32_0 = arith.constant 0 : i32
    %c0_i32_1 = arith.constant 0 : i32
    %c0_i32_2 = arith.constant 0 : i32
    %c0_i32_3 = arith.constant 0 : i32
    return %c0_i32, %c0_i32_0, %c0_i32_1, %c0_i32_2 : i32, i32, i32, i32
  }
  func.func @transform_2(%arg0: i32) -> (i32, i32, i32) {
    %c0_i32 = arith.constant 0 : i32
    %c0_i32_0 = arith.constant 0 : i32
    %c0_i32_1 = arith.constant 0 : i32
    %c0_i32_2 = arith.constant 0 : i32
    return %c0_i32, %c0_i32_0, %c0_i32_1 : i32, i32, i32
  }
  func.func @transform_3(%arg0: i32) -> (i32, i32, i32, i32) {
    %c0_i32 = arith.constant 0 : i32
    %c0_i32_0 = arith.constant 0 : i32
    %c0_i32_1 = arith.constant 0 : i32
    %c0_i32_2 = arith.constant 0 : i32
    %c0_i32_3 = arith.constant 0 : i32
    return %c0_i32, %c0_i32_0, %c0_i32_1, %c0_i32_2 : i32, i32, i32, i32
  }
  func.func @transform_4(%arg0: i32) -> (i32, i32, i32) {
    %c0_i32 = arith.constant 0 : i32
    %c0_i32_0 = arith.constant 0 : i32
    %c0_i32_1 = arith.constant 0 : i32
    %c0_i32_2 = arith.constant 0 : i32
    return %c0_i32, %c0_i32_0, %c0_i32_1 : i32, i32, i32
  }
  func.func @transform_5(%arg0: i32) -> (i32, i32, i32, i32) {
    %c0_i32 = arith.constant 0 : i32
    %c0_i32_0 = arith.constant 0 : i32
    %c0_i32_1 = arith.constant 0 : i32
    %c0_i32_2 = arith.constant 0 : i32
    %c0_i32_3 = arith.constant 0 : i32
    return %c0_i32, %c0_i32_0, %c0_i32_1, %c0_i32_2 : i32, i32, i32, i32
  }
  func.func @transform_6(%arg0: i32) -> (i32, i32, i32) {
    %c0_i32 = arith.constant 0 : i32
    %c0_i32_0 = arith.constant 0 : i32
    %c0_i32_1 = arith.constant 0 : i32
    %c0_i32_2 = arith.constant 0 : i32
    return %c0_i32, %c0_i32_0, %c0_i32_1 : i32, i32, i32
  }
  func.func @transform_7(%arg0: i32) -> (i32, i32, i32, i32) {
    %c0_i32 = arith.constant 0 : i32
    %c0_i32_0 = arith.constant 0 : i32
    %c0_i32_1 = arith.constant 0 : i32
    %c0_i32_2 = arith.constant 0 : i32
    %c0_i32_3 = arith.constant 0 : i32
    return %c0_i32, %c0_i32_0, %c0_i32_1, %c0_i32_2 : i32, i32, i32, i32
  }
  func.func @transform_8(%arg0: i32) -> (i32, i32) {
    %c0_i32 = arith.constant 0 : i32
    %c0_i32_0 = arith.constant 0 : i32
    %c0_i32_1 = arith.constant 0 : i32
    return %c0_i32, %c0_i32_0 : i32, i32
  }
  func.func @transform_9(%arg0: i32) -> (i32, i32) {
    %c0_i32 = arith.constant 0 : i32
    %c0_i32_0 = arith.constant 0 : i32
    %c0_i32_1 = arith.constant 0 : i32
    return %c0_i32, %c0_i32_0 : i32, i32
  }
  func.func @transform_10(%arg0: i32) -> (i32, i32) {
    %c0_i32 = arith.constant 0 : i32
    %c0_i32_0 = arith.constant 0 : i32
    %c0_i32_1 = arith.constant 0 : i32
    return %c0_i32, %c0_i32_0 : i32, i32
  }
  func.func @transform_11(%arg0: i32) -> (i32, i32, i32) {
    %c0_i32 = arith.constant 0 : i32
    %c0_i32_0 = arith.constant 0 : i32
    %c0_i32_1 = arith.constant 0 : i32
    return %arg0, %c0_i32, %c0_i32_0 : i32, i32, i32
  }
}

</mosaic_0001>

<bundles_post_ra>
// kernel: convnet_forward.1
= control target key start
LH: loop header
LB: loop body
LE: loop exit
PB: predicated region body
PF: predicated region fallthrough
CT: control target
= control target key end

     0   :  { %s13318_s0 = inlined_call_operand.vmem [shape: f32[2,16,16,4], index: 0, kind: input, shape index: {}]   ;;  %s13319_s1 = inlined_call_operand.vmem [shape: bf16[2,2,4,16], index: 1, kind: input, shape index: {}]   ;;  %s13320_s2 = inlined_call_operand.vmem [shape: f32[1,1,16], index: 2, kind: input, shape index: {}]   ;;  %s13321_s3 = inlined_call_operand.vmem [shape: bf16[2,2,16,16], index: 3, kind: input, shape index: {}]   ;;  %s13322_s4 = inlined_call_operand.vmem [shape: f32[1,1,16], index: 4, kind: input, shape index: {}]   ;;  %s13323_s5 = inlined_call_operand.vmem [shape: bf16[2,2,16,16], index: 5, kind: input, shape index: {}]   ;;  %s13324_s6 = inlined_call_operand.vmem [shape: f32[1,1,16], index: 6, kind: input, shape index: {}]   ;;  %s13325_s7 = inlined_call_operand.vmem [shape: bf16[2,2,16,64], index: 7, kind: input, shape index: {}]   ;;  %s13326_s8 = inlined_call_operand.vmem [shape: f32[1,64], index: 8, kind: input, shape index: {}]   ;;  %s13327_s9 = inlined_call_operand.vmem [shape: bf16[64,4], index: 9, kind: input, shape index: {}]   ;;  %s13328_s10 = inlined_call_operand.vmem [shape: f32[1,4], index: 10, kind: input, shape index: {}]   ;;  %s13329_s11 = inlined_call_operand.hbm [shape: f32[2,1,4], index: 11, kind: output, shape index: {}]  }
   0x1   :  { %13332 = sst [smem:[#allocation49_spill]] %s13318_s0 }
   0x2   :  { %13333 = sst [smem:[#allocation50_spill]] %s13319_s1 }
   0x3   :  { %16 = vsyncpa [#allocation6], 0 }
   0x4   :  { %18 = vsyncpa [#allocation6 + $0x1], 0  ;;  %s11255_s17 = smov 0   ;;  %s11257_s18 = smov 0  }
   0x5   :  { %s11259_s19 = smov 0   ;;  %s11261_s20 = smov 0  }
   0x6 LB: > { %s11276_s21 = sadd.s32 4294967295, %s11190_s20   ;;  %s9391_s22 = sadd.s32 4294967294, %s11190_s20   ;;  %s11190_s20 = sphi %s11261_s20, %s13426_s20   ;;  %s11186_s19 = sphi %s11259_s19, %s13425_s19   ;;  %s11182_s18 = sphi %s11257_s18, %s13424_s18   ;;  %s11178_s17 = sphi %s11255_s17, %s13423_s17  }
   0x7   : > { %s11280_s23 = sadd.s32 1, %s11190_s20   ;;  %s267_s24 = sadd.s32 1, %s11186_s19 }
   0x8   : > { %s264_s25 = ssub.s32 %s11190_s20, %s11280_s23  ;;  %p277_p0 = scmp.ne.s32.totalorder %s11186_s19, %s11182_s18 }
   0x9   : > { %p265_p1 = scmp.eq.s32.totalorder %s264_s25, 0  ;;  %p278_p2 = scmp.eq.s32.totalorder %s11276_s21, 1 }
   0xa   : > { %p283_p3 = scmp.ne.s32.totalorder %s11182_s18, %s11178_s17  ;;  %p284_p4 = scmp.eq.s32.totalorder %s9391_s22, 1 }
   0xb   : > { %s11291_s26 = scalar_select %p265_p1, %s11186_s19, %s267_s24  }
   0xc   : > { %p11293_p5 = por %p278_p2, %p277_p0  ;;  %p11297_p6 = por %p284_p4, %p283_p3 }
   0xd   : > { %p9394_p7 = scmp.ge.s32.totalorder %s11190_s20, 1  ;;  %p340_p8 = scmp.lt.s32.totalorder %s11190_s20, 3 }
   0xf   : > { %p341_p9 = pnand %p9394_p7, %p340_p8 }
  0x11   : > { %344 = sbr.rel (%p341_p9) target bundleno = 2439 (0x987), region = 64 }
  0x16   : > { %s13336_s1 = sld [smem:[#allocation50_spill]]  ;;  %vm675_vm0 = vcmask 1041408   ;;  %vm417_vm1 = vcmask 31744   ;;  %vm420_vm2 = vcmask 25600   ;;  %v13330_v2 = vmov 0.0   ;;  %p379_p10 = scmp.lt.s32.totalorder %s11276_s21, 1 }
  0x17   : > { %418 = vst.msk [vmem:[#allocation2] sm:$0xff] %vm417_vm1, %v13330_v2  ;;  %419 = vst.msk [vmem:[#allocation2 + $0x8] sm:$0xff] %vm417_vm1, %v13330_v2  ;;  %s13337_s0 = sld [smem:[#allocation49_spill]]  ;;  %vm11193_vm3 = vmmov 0   ;;  %vm4541_vm4 = vcmask 1040384   ;;  %vm4537_vm6 = vcmask 138240  }
  0x18   : > { %421 = vst.msk [vmem:[#allocation2 + $0x10] sm:$0x3] %vm420_vm2, %v13330_v2  ;;  %424 = vst.msk [vmem:[#allocation2 + $0x28] sm:$0x3] %vm420_vm2, %v13330_v2  ;;  %s380_s12 = scalar_select %p379_p10, %s11276_s21, 1  ;;  %vm5697_vm8 = vcmask 130048  }
  0x19   : > { %422 = vst.msk [vmem:[#allocation2 + $0x18] sm:$0xff] %vm417_vm1, %v13330_v2  ;;  %423 = vst.msk [vmem:[#allocation2 + $0x20] sm:$0xff] %vm417_vm1, %v13330_v2  ;;  %vm5699_vm9 = vcmask 123904   ;;  %vm7346_vm10 = vcmask 72704   ;;  %vm7927_vm11 = vcmask 128000   ;;  %vm7935_vm12 = vcmask 125952  }
  0x1a   : > { %425 = vst.msk [vmem:[#allocation2 + $0x30] sm:$0xff] %vm417_vm1, %v13330_v2  ;;  %426 = vst.msk [vmem:[#allocation2 + $0x38] sm:$0xff] %vm417_vm1, %v13330_v2  ;;  %s9679_s13 = sshll.u32 %s380_s12, 8  ;;  %vm8723_vm13 = vcmask 1044480   ;;  %vm8720_vm14 = vcmask 39936   ;;  %vm9266_vm15 = vcmask 523264  }
  0x1b   : > { %427 = vst.msk [vmem:[#allocation2 + $0x40] sm:$0x3] %vm420_vm2, %v13330_v2  ;;  %430 = vst.msk [vmem:[#allocation2 + $0x58] sm:$0x3] %vm420_vm2, %v13330_v2  ;;  %s377_s15 = sand.u32 1, %s11182_s18   ;;  %s11194_s14 = smov [#allocation5]  }
  0x1c   : > { %v11306_v0 = vld [vmem:[%s13336_s1 + $0x2] sm:$0x3]  ;;  %428 = vst.msk [vmem:[#allocation2 + $0x48] sm:$0xff] %vm417_vm1, %v13330_v2  ;;  %429 = vst.msk [vmem:[#allocation2 + $0x50] sm:$0xff] %vm417_vm1, %v13330_v2  ;;  %s378_s22 = scalar_lea.vmem [#allocation5], %s377_s15  ;;  %s9324_s12 = scalar_lea.sflag [#allocation6], %s377_s15 }
  0x1d   : > { %11005 = vmatprep.subr.msk.bf16.mxu1 %vm675_vm0, %v11306_v0  ;;  %v11312_v1 = vsel %vm675_vm0, %v11306_v0, 0  ;;  %431 = vst.msk [vmem:[#allocation2 + $0x60] sm:$0xff] %vm417_vm1, %v13330_v2  ;;  %432 = vst.msk [vmem:[#allocation2 + $0x68] sm:$0xff] %vm417_vm1, %v13330_v2  ;;  %11007 = vmatprep.subr.msk.bf16.mxu0 %vm675_vm0, %v11306_v0  ;;  %s11429_s16 = scalar_lea.vmem %s13337_s0, %s9679_s13  ;;  %s9336_s24 = sshll.u32 %s378_s22, 4  ;;  %s9337_s24 = int_to_ptr.vmem [resolvable:$true] %s9336_s24 }
  0x1e   : > { %433 = vst.msk [vmem:[#allocation2 + $0x70] sm:$0x3] %vm420_vm2, %v13330_v2  ;;  %436 = vst.msk [vmem:[#allocation2 + $0x88] sm:$0x3] %vm420_vm2, %v13330_v2  ;;  %10078 = vmatpush3.bf16.msra.mxu1 %v11312_v1  ;;  %10090 = vmatpush3.bf16.msra.mxu0 %v11312_v1  ;;  %v387_v3 = vld [vmem:[%s11429_s16 + $0x10] sm:$0xff]  ;;  %v388_v4 = vld [vmem:[%s11429_s16 + $0x18] sm:$0xff] }
  0x1f   : > { %434 = vst.msk [vmem:[#allocation2 + $0x78] sm:$0xff] %vm417_vm1, %v13330_v2  ;;  %435 = vst.msk [vmem:[#allocation2 + $0x80] sm:$0xff] %vm417_vm1, %v13330_v2  ;;  %11006 = vmatprep.subr.msk.bf16.mxu1 %vm675_vm0, %v11306_v0  ;;  %11009 = vmatprep.subr.msk.bf16.mxu0 %vm675_vm0, %v11306_v0  ;;  %v385_v5 = vld [vmem:[%s11429_s16] sm:$0xff]  ;;  %v588_v7 = vld [vmem:[#allocation2 + $0x9] sm:$0xff]  ;;  %s11130_s13 = scalar_lea.vmem %s9337_s24, 16  ;;  %s11134_s0 = sshll.u32 %s11194_s14, 4  ;;  %s11135_s0 = int_to_ptr.vmem [resolvable:$false] %s11134_s0 }
  0x20   : > { %437 = vst.msk [vmem:[#allocation2 + $0x90] sm:$0xff] %vm417_vm1, %v13330_v2  ;;  %438 = vst.msk [vmem:[#allocation2 + $0x98] sm:$0xff] %vm417_vm1, %v13330_v2  ;;  %v587_v6 = vld [vmem:[#allocation2 + $0x1] sm:$0xff]  ;;  %v589_v8 = vld [vmem:[#allocation2 + $0x11] sm:$0x1]  ;;  %p11131_p11 = scmp.ne.s32.totalorder %s9337_s24, %s11130_s13  ;;  %p11137_p0 = scmp.lt.s32.totalorder %s9337_s24, %s11135_s0 }
  0x21   : > { %439 = vst.msk [vmem:[#allocation2 + $0xa0] sm:$0x3] %vm420_vm2, %v13330_v2  ;;  %442 = vst.msk [vmem:[#allocation2 + $0xb8] sm:$0x3] %vm420_vm2, %v13330_v2  ;;  %v635_v9 = vpack.c.bf16 %v588_v7, %v587_v6  ;;  %v636_v10 = vpack.c.bf16 %v589_v8, %v589_v8  ;;  %v386_v11 = vld [vmem:[%s11429_s16 + $0x8] sm:$0xff]  ;;  %v391_v12 = vld [vmem:[%s11429_s16 + $0x30] sm:$0xff] }
  0x22   : > { %440 = vst.msk [vmem:[#allocation2 + $0xa8] sm:$0xff] %vm417_vm1, %v13330_v2  ;;  %441 = vst.msk [vmem:[#allocation2 + $0xb0] sm:$0xff] %vm417_vm1, %v13330_v2  ;;  %v392_v13 = vld [vmem:[%s11429_s16 + $0x38] sm:$0xff]  ;;  %v389_v14 = vld [vmem:[%s11429_s16 + $0x20] sm:$0xff]  ;;  %p11132_p12 = pnand %p11131_p11, %p11293_p5 }
  0x23   : > { %443 = vst.msk [vmem:[#allocation2 + $0xc0] sm:$0xff] %vm417_vm1, %v13330_v2  ;;  %444 = vst.msk [vmem:[#allocation2 + $0xc8] sm:$0xff] %vm417_vm1, %v13330_v2  ;;  %10079 = vmatprep.mubr.msk.bf16.mxu1 %vm417_vm1, %v635_v9  ;;  %v390_v15 = vld [vmem:[%s11429_s16 + $0x28] sm:$0xff]  ;;  %v595_v16 = vld [vmem:[#allocation2 + $0x41] sm:$0x1] }
  0x24   : > { %445 = vst.msk [vmem:[#allocation2 + $0xd0] sm:$0x3] %vm420_vm2, %v13330_v2  ;;  %448 = vst.msk [vmem:[#allocation2 + $0xe8] sm:$0x3] %vm420_vm2, %v13330_v2  ;;  %10080 = vmatmul.mubr.msk.bf16.vlgmr.msra.gmra.mxu1 %vm417_vm1, %v636_v10  ;;  %v395_v17 = vld [vmem:[%s11429_s16 + $0x50] sm:$0xff]  ;;  %v396_v18 = vld [vmem:[%s11429_s16 + $0x58] sm:$0xff]  ;;  %v640_v26 = vpack.c.bf16 %v595_v16, %v595_v16  ;;  %p11133_p13 = pneg %p11132_p12 }
  0x25   : > { %446 = vst.msk [vmem:[#allocation2 + $0xd8] sm:$0xff] %vm417_vm1, %v13330_v2  ;;  %447 = vst.msk [vmem:[#allocation2 + $0xe0] sm:$0xff] %vm417_vm1, %v13330_v2  ;;  %10084 = vmatpush3.bf16.msra.mxu1 %v11312_v1  ;;  %v393_v19 = vld [vmem:[%s11429_s16 + $0x40] sm:$0xff]  ;;  %v394_v20 = vld [vmem:[%s11429_s16 + $0x48] sm:$0xff] }
  0x26   : > { %449 = vst.msk [vmem:[#allocation2 + $0xf0] sm:$0xff] %vm417_vm1, %v13330_v2  ;;  %450 = vst.msk [vmem:[#allocation2 + $0xf8] sm:$0xff] %vm417_vm1, %v13330_v2  ;;  %v592_v21 = vld [vmem:[#allocation2 + $0x29] sm:$0x1]  ;;  %11008 = vmatprep.subr.msk.bf16.mxu1 %vm675_vm0, %v11306_v0  ;;  %v399_v22 = vld [vmem:[%s11429_s16 + $0x70] sm:$0xff] }
  0x27   : > { %451 = vst.msk [vmem:[#allocation2 + $0x100] sm:$0x3] %vm420_vm2, %v13330_v2  ;;  %454 = vst.msk [vmem:[#allocation2 + $0x118] sm:$0x3] %vm420_vm2, %v13330_v2  ;;  %v400_v23 = vld [vmem:[%s11429_s16 + $0x78] sm:$0xff]  ;;  %v397_v29 = vld [vmem:[%s11429_s16 + $0x60] sm:$0xff]  ;;  %v638_v32 = vpack.c.bf16 %v592_v21, %v592_v21 }
  0x28   : > { %452 = vst.msk [vmem:[#allocation2 + $0x108] sm:$0xff] %vm417_vm1, %v13330_v2  ;;  %453 = vst.msk [vmem:[#allocation2 + $0x110] sm:$0xff] %vm417_vm1, %v13330_v2  ;;  %v398_v30 = vld [vmem:[%s11429_s16 + $0x68] sm:$0xff]  ;;  %v403_v33 = vld [vmem:[%s11429_s16 + $0x90] sm:$0xff] }
  0x29   : > { %455 = vst.msk [vmem:[#allocation2 + $0x120] sm:$0xff] %vm417_vm1, %v13330_v2  ;;  %456 = vst.msk [vmem:[#allocation2 + $0x128] sm:$0xff] %vm417_vm1, %v13330_v2  ;;  %v404_v34 = vld [vmem:[%s11429_s16 + $0x98] sm:$0xff]  ;;  %v401_v41 = vld [vmem:[%s11429_s16 + $0x80] sm:$0xff] }
  0x2a   : > { %457 = vst.msk [vmem:[#allocation2 + $0x130] sm:$0x3] %vm420_vm2, %v13330_v2  ;;  %460 = vst.msk [vmem:[#allocation2 + $0x148] sm:$0x3] %vm420_vm2, %v13330_v2  ;;  %v601_v42 = vld [vmem:[#allocation2 + $0x71] sm:$0x1] }
  0x2b   : > { %458 = vst.msk [vmem:[#allocation2 + $0x138] sm:$0xff] %vm417_vm1, %v13330_v2  ;;  %459 = vst.msk [vmem:[#allocation2 + $0x140] sm:$0xff] %vm417_vm1, %v13330_v2  ;;  %v402_v44 = vld [vmem:[%s11429_s16 + $0x88] sm:$0xff]  ;;  %v598_v47 = vld [vmem:[#allocation2 + $0x59] sm:$0x1]  ;;  %v644_v50 = vpack.c.bf16 %v601_v42, %v601_v42 }
  0x2c   : > { %461 = vst.msk [vmem:[#allocation2 + $0x150] sm:$0xff] %vm417_vm1, %v13330_v2  ;;  %462 = vst.msk [vmem:[#allocation2 + $0x158] sm:$0xff] %vm417_vm1, %v13330_v2  ;;  %v407_v49 = vld [vmem:[%s11429_s16 + $0xb0] sm:$0xff]  ;;  %v408_v52 = vld [vmem:[%s11429_s16 + $0xb8] sm:$0xff]  ;;  %v642_v56 = vpack.c.bf16 %v598_v47, %v598_v47 }
  0x2d   : > { %463 = vst.msk [vmem:[#allocation2 + $0x160] sm:$0x3] %vm420_vm2, %v13330_v2  ;;  %466 = vst.msk [vmem:[#allocation2 + $0x178] sm:$0x3] %vm420_vm2, %v13330_v2  ;;  %v405_v53 = vld [vmem:[%s11429_s16 + $0xa0] sm:$0xff]  ;;  %v406_v55 = vld [vmem:[%s11429_s16 + $0xa8] sm:$0xff] }
  0x2e   : > { %464 = vst.msk [vmem:[#allocation2 + $0x168] sm:$0xff] %vm417_vm1, %v13330_v2  ;;  %465 = vst.msk [vmem:[#allocation2 + $0x170] sm:$0xff] %vm417_vm1, %v13330_v2  ;;  %v411_v58 = vld [vmem:[%s11429_s16 + $0xd0] sm:$0xff]  ;;  %v412_v59 = vld [vmem:[%s11429_s16 + $0xd8] sm:$0xff] }
  0x2f   : > { %467 = vst.msk [vmem:[#allocation2 + $0x180] sm:$0xff] %vm417_vm1, %v13330_v2  ;;  %468 = vst.msk [vmem:[#allocation2 + $0x188] sm:$0xff] %vm417_vm1, %v13330_v2  ;;  %v409_v60 = vld [vmem:[%s11429_s16 + $0xc0] sm:$0xff]  ;;  %v410_v61 = vld [vmem:[%s11429_s16 + $0xc8] sm:$0xff] }
  0x30   : > { %469 = vst.msk [vmem:[#allocation2 + $0x190] sm:$0x3] %vm420_vm2, %v13330_v2  ;;  %v607_v62 = vld [vmem:[#allocation2 + $0xa1] sm:$0x1]  ;;  %v414_v6 = vld [vmem:[%s11429_s16 + $0xe8] sm:$0xff] }
  0x31   : > { %476 = vst.msk [vmem:[#allocation2 + $0x31] sm:$0xff] %vm417_vm1, %v387_v3  ;;  %477 = vst.msk [vmem:[#allocation2 + $0x39] sm:$0xff] %vm417_vm1, %v388_v4  ;;  %v413_v4 = vld [vmem:[%s11429_s16 + $0xe0] sm:$0xff]  ;;  %v648_v7 = vpack.c.bf16 %v607_v62, %v607_v62  ;;  %v610_v16 = vld [vmem:[#allocation2 + $0xb9] sm:$0x1] }
  0x32   : > { %474 = vst.msk [vmem:[#allocation2 + $0x19] sm:$0xff] %vm417_vm1, %v385_v5  ;;  %475 = vst.msk [vmem:[#allocation2 + $0x21] sm:$0xff] %vm417_vm1, %v386_v11  ;;  %v604_v5 = vld [vmem:[#allocation2 + $0x89] sm:$0x1]  ;;  %v650_v21 = vpack.c.bf16 %v610_v16, %v610_v16  ;;  %v11591_v47 = vld [vmem:[%s13336_s1] sm:$0x3] }
  0x33   : > { %480 = vst.msk [vmem:[#allocation2 + $0x61] sm:$0xff] %vm417_vm1, %v391_v12  ;;  %481 = vst.msk [vmem:[#allocation2 + $0x69] sm:$0xff] %vm417_vm1, %v392_v13  ;;  %v646_v11 = vpack.c.bf16 %v604_v5, %v604_v5  ;;  %v613_v13 = vld [vmem:[#allocation2 + $0xd1] sm:$0x1] }
  0x34   : > { %478 = vst.msk [vmem:[#allocation2 + $0x49] sm:$0xff] %vm417_vm1, %v389_v14  ;;  %479 = vst.msk [vmem:[#allocation2 + $0x51] sm:$0xff] %vm417_vm1, %v390_v15 }
  0x35   : > { %484 = vst.msk [vmem:[#allocation2 + $0x91] sm:$0xff] %vm417_vm1, %v395_v17  ;;  %485 = vst.msk [vmem:[#allocation2 + $0x99] sm:$0xff] %vm417_vm1, %v396_v18  ;;  %v652_v17 = vpack.c.bf16 %v613_v13, %v613_v13 }
  0x36   : > { %482 = vst.msk [vmem:[#allocation2 + $0x79] sm:$0xff] %vm417_vm1, %v393_v19  ;;  %483 = vst.msk [vmem:[#allocation2 + $0x81] sm:$0xff] %vm417_vm1, %v394_v20 }
  0x37   : > { %488 = vst.msk [vmem:[#allocation2 + $0xc1] sm:$0xff] %vm417_vm1, %v399_v22  ;;  %489 = vst.msk [vmem:[#allocation2 + $0xc9] sm:$0xff] %vm417_vm1, %v400_v23  ;;  %v619_v23 = vld [vmem:[#allocation2 + $0x101] sm:$0x1] }
  0x38   : > { %v593_v24 = vld [vmem:[#allocation2 + $0x31] sm:$0xff]  ;;  %v594_v25 = vld [vmem:[#allocation2 + $0x39] sm:$0xff]  ;;  %486 = vst.msk [vmem:[#allocation2 + $0xa9] sm:$0xff] %vm417_vm1, %v397_v29  ;;  %487 = vst.msk [vmem:[#allocation2 + $0xb1] sm:$0xff] %vm417_vm1, %v398_v30 }
  0x39   : > { %v590_v27 = vld [vmem:[#allocation2 + $0x19] sm:$0xff]  ;;  %v11464_v28 = vpack.c.bf16 %v594_v25, %v593_v24  ;;  %v591_v31 = vld [vmem:[#allocation2 + $0x21] sm:$0xff]  ;;  %492 = vst.msk [vmem:[#allocation2 + $0xf1] sm:$0xff] %vm417_vm1, %v403_v33  ;;  %493 = vst.msk [vmem:[#allocation2 + $0xf9] sm:$0xff] %vm417_vm1, %v404_v34 }
  0x3a   : > { %v11474_v35 = vpack.c.bf16 %v591_v31, %v590_v27  ;;  %v599_v36 = vld [vmem:[#allocation2 + $0x61] sm:$0xff]  ;;  %v600_v37 = vld [vmem:[#allocation2 + $0x69] sm:$0xff]  ;;  %490 = vst.msk [vmem:[#allocation2 + $0xd9] sm:$0xff] %vm417_vm1, %v401_v41  ;;  %491 = vst.msk [vmem:[#allocation2 + $0xe1] sm:$0xff] %vm417_vm1, %v402_v44  ;;  %v656_v27 = vpack.c.bf16 %v619_v23, %v619_v23 }
  0x3b   : > { %10091 = vmatprep.mubr.msk.bf16.mxu0 %vm417_vm1, %v11464_v28  ;;  %v11479_v38 = vpack.c.bf16 %v600_v37, %v599_v36  ;;  %v596_v39 = vld [vmem:[#allocation2 + $0x49] sm:$0xff]  ;;  %v597_v40 = vld [vmem:[#allocation2 + $0x51] sm:$0xff]  ;;  %496 = vst.msk [vmem:[#allocation2 + $0x121] sm:$0xff] %vm417_vm1, %v407_v49  ;;  %497 = vst.msk [vmem:[#allocation2 + $0x129] sm:$0xff] %vm417_vm1, %v408_v52 }
  0x3c   : > { %10092 = vmatmul.mubr.msk.bf16.vlgmr.msra.gmra.mxu0 %vm417_vm1, %v640_v26  ;;  %10085 = vmatprep.mubr.msk.bf16.mxu1 %vm417_vm1, %v11474_v35  ;;  %v11485_v43 = vpack.c.bf16 %v597_v40, %v596_v39  ;;  %v605_v45 = vld [vmem:[#allocation2 + $0x91] sm:$0xff]  ;;  %v606_v46 = vld [vmem:[#allocation2 + $0x99] sm:$0xff]  ;;  %494 = vst.msk [vmem:[#allocation2 + $0x109] sm:$0xff] %vm417_vm1, %v405_v53  ;;  %495 = vst.msk [vmem:[#allocation2 + $0x111] sm:$0xff] %vm417_vm1, %v406_v55 }
  0x3d   : > { %10102 = vmatpush3.bf16.msra.mxu0 %v11312_v1  ;;  %10086 = vmatmul.mubr.msk.bf16.vlgmr.msra.gmra.mxu1 %vm417_vm1, %v638_v32  ;;  %v602_v48 = vld [vmem:[#allocation2 + $0x79] sm:$0xff]  ;;  %v603_v51 = vld [vmem:[#allocation2 + $0x81] sm:$0xff]  ;;  %v11504_v54 = vpack.c.bf16 %v606_v46, %v605_v45  ;;  %500 = vst.msk [vmem:[#allocation2 + $0x151] sm:$0xff] %vm417_vm1, %v411_v58  ;;  %501 = vst.msk [vmem:[#allocation2 + $0x159] sm:$0xff] %vm417_vm1, %v412_v59  ;;  %v11607_v59 = vsel %vm675_vm0, %v11591_v47, 0 }
  0x3e   : > { %10103 = vmatprep.mubr.msk.bf16.mxu0 %vm417_vm1, %v11479_v38  ;;  %10096 = vmatpush3.bf16.msra.mxu1 %v11312_v1  ;;  %v11510_v57 = vpack.c.bf16 %v603_v51, %v602_v48  ;;  %498 = vst.msk [vmem:[#allocation2 + $0x139] sm:$0xff] %vm417_vm1, %v409_v60  ;;  %499 = vst.msk [vmem:[#allocation2 + $0x141] sm:$0xff] %vm417_vm1, %v410_v61  ;;  %v611_v63 = vld [vmem:[#allocation2 + $0xc1] sm:$0xff]  ;;  %v612_v3 = vld [vmem:[#allocation2 + $0xc9] sm:$0xff] }
  0x3f   : > { %10097 = vmatprep.mubr.msk.bf16.mxu1 %vm417_vm1, %v11485_v43  ;;  %11011 = vmatprep.subr.msk.bf16.mxu0 %vm675_vm0, %v11306_v0  ;;  %502 = vst.msk [vmem:[#allocation2 + $0x169] sm:$0xff] %vm417_vm1, %v413_v4  ;;  %v608_v8 = vld [vmem:[#allocation2 + $0xa9] sm:$0xff]  ;;  %v609_v9 = vld [vmem:[#allocation2 + $0xb1] sm:$0xff]  ;;  %503 = vst.msk [vmem:[#allocation2 + $0x171] sm:$0xff] %vm417_vm1, %v414_v6  ;;  %v11536_v10 = vpack.c.bf16 %v612_v3, %v611_v63 }
  0x40   : > { %11010 = vmatprep.subr.msk.bf16.mxu1 %vm675_vm0, %v11306_v0  ;;  %v11538_v12 = vpack.c.bf16 %v609_v9, %v608_v8  ;;  %v617_v14 = vld [vmem:[#allocation2 + $0xf1] sm:$0xff]  ;;  %v618_v15 = vld [vmem:[#allocation2 + $0xf9] sm:$0xff]  ;;  %v616_v26 = vld [vmem:[#allocation2 + $0xe9] sm:$0x1] }
  0x41   : > { %v614_v18 = vld [vmem:[#allocation2 + $0xd9] sm:$0xff]  ;;  %v615_v19 = vld [vmem:[#allocation2 + $0xe1] sm:$0xff]  ;;  %v11552_v20 = vpack.c.bf16 %v618_v15, %v617_v14  ;;  %v654_v32 = vpack.c.bf16 %v616_v26, %v616_v26  ;;  %v625_v34 = vld [vmem:[#allocation2 + $0x131] sm:$0x1] }
  0x42   : > { %v11554_v22 = vpack.c.bf16 %v615_v19, %v614_v18  ;;  %v623_v24 = vld [vmem:[#allocation2 + $0x121] sm:$0xff]  ;;  %v624_v25 = vld [vmem:[#allocation2 + $0x129] sm:$0xff]  ;;  %v622_v36 = vld [vmem:[#allocation2 + $0x119] sm:$0x1]  ;;  %v660_v42 = vpack.c.bf16 %v625_v34, %v625_v34 }
  0x43   : > { %v620_v29 = vld [vmem:[#allocation2 + $0x109] sm:$0xff]  ;;  %v621_v30 = vld [vmem:[#allocation2 + $0x111] sm:$0xff]  ;;  %v11568_v31 = vpack.c.bf16 %v624_v25, %v623_v24  ;;  %v658_v45 = vpack.c.bf16 %v622_v36, %v622_v36  ;;  %v631_v48 = vld [vmem:[#allocation2 + $0x161] sm:$0x1] }
  0x44   : > { %10104 = vmatmul.mubr.msk.bf16.vlgmr.msra.gmra.mxu0 %vm417_vm1, %v644_v50  ;;  %v11570_v33 = vpack.c.bf16 %v621_v30, %v620_v29  ;;  %v629_v37 = vld [vmem:[#allocation2 + $0x151] sm:$0xff]  ;;  %v630_v39 = vld [vmem:[#allocation2 + $0x159] sm:$0xff]  ;;  %v507_v50 = vld [vmem:[#allocation2 + $0x8] sm:$0xff]  ;;  %v664_v52 = vpack.c.bf16 %v631_v48, %v631_v48 }
  0x45   : > { %10114 = vmatpush3.bf16.msra.mxu0 %v11312_v1  ;;  %10115 = vmatprep.mubr.msk.bf16.mxu0 %vm417_vm1, %v11504_v54  ;;  %v626_v40 = vld [vmem:[#allocation2 + $0x139] sm:$0xff]  ;;  %v627_v41 = vld [vmem:[#allocation2 + $0x141] sm:$0xff]  ;;  %v11584_v44 = vpack.c.bf16 %v630_v39, %v629_v37  ;;  %v628_v51 = vld [vmem:[#allocation2 + $0x149] sm:$0x1] }
  0x46   : > { %10098 = vmatmul.mubr.msk.bf16.vlgmr.msra.gmra.mxu1 %vm417_vm1, %v642_v56  ;;  %11013 = vmatprep.subr.msk.bf16.mxu0 %vm675_vm0, %v11306_v0  ;;  %v11586_v46 = vpack.c.bf16 %v627_v41, %v626_v40  ;;  %v506_v49 = vld [vmem:[#allocation2] sm:$0xff]  ;;  %v632_v53 = vld [vmem:[#allocation2 + $0x169] sm:$0xff]  ;;  %v633_v55 = vld [vmem:[#allocation2 + $0x171] sm:$0xff]  ;;  %v662_v58 = vpack.c.bf16 %v628_v51, %v628_v51 }
  0x47   : > { %10108 = vmatpush3.bf16.msra.mxu1 %v11312_v1  ;;  %10109 = vmatprep.mubr.msk.bf16.mxu1 %vm417_vm1, %v11510_v57  ;;  %v554_v56 = vpack.c.bf16 %v507_v50, %v506_v49  ;;  %v415_v60 = vld [vmem:[%s11429_s16 + $0xf0] sm:$0xff]  ;;  %v416_v61 = vld [vmem:[%s11429_s16 + $0xf8] sm:$0xff]  ;;  %v11611_v62 = vpack.c.bf16 %v633_v55, %v632_v53  ;;  %v518_v13 = vld [vmem:[#allocation2 + $0x60] sm:$0xff]  ;;  %s9676_s16 = sshll.u32 %s11276_s21, 4  ;;  %s11136_s21 = scalar_lea.vmem %s11135_s0, 32 }
  0x48   : > { %11012 = vmatprep.subr.msk.bf16.mxu1 %vm675_vm0, %v11306_v0  ;;  %504 = vst.msk [vmem:[#allocation2 + $0x181] sm:$0xff] %vm417_vm1, %v415_v60  ;;  %505 = vst.msk [vmem:[#allocation2 + $0x189] sm:$0xff] %vm417_vm1, %v416_v61  ;;  %v512_v63 = vld [vmem:[#allocation2 + $0x30] sm:$0xff]  ;;  %v513_v3 = vld [vmem:[#allocation2 + $0x38] sm:$0xff]  ;;  %s9334_s30 = scalar_lea.hbm %s13329_s11, %s9676_s16  ;;  %p11138_p1 = scmp.lt.s32.totalorder %s11136_s21, %s11130_s13 }
  0x49   : > { %v634_v4 = vld [vmem:[#allocation2 + $0x179] sm:$0x1]  ;;  %v11626_v8 = vpack.c.bf16 %v513_v3, %v512_v63  ;;  %v519_v14 = vld [vmem:[#allocation2 + $0x68] sm:$0xff]  ;;  %v516_v18 = vld [vmem:[#allocation2 + $0x50] sm:$0xff] }
  0x4a   : > { %v509_v6 = vld [vmem:[#allocation2 + $0x18] sm:$0xff]  ;;  %v666_v9 = vpack.c.bf16 %v634_v4, %v634_v4  ;;  %v511_v15 = vld [vmem:[#allocation2 + $0x28] sm:$0x1]  ;;  %v11642_v19 = vpack.c.bf16 %v519_v14, %v518_v13  ;;  %v520_v24 = vld [vmem:[#allocation2 + $0x70] sm:$0x1]  ;;  %p11139_p2 = por %p11138_p1, %p11137_p0 }
  0x4b   : > { %v524_v25 = vld [vmem:[#allocation2 + $0x90] sm:$0xff]  ;;  %v525_v26 = vld [vmem:[#allocation2 + $0x98] sm:$0xff]  ;;  %v563_v29 = vpack.c.bf16 %v520_v24, %v520_v24  ;;  %v526_v39 = vld [vmem:[#allocation2 + $0xa0] sm:$0x1] }
  0x4c   : > { %10116 = vmatmul.mubr.msk.bf16.vlgmr.msra.gmra.mxu0 %vm417_vm1, %v648_v7  ;;  %v510_v7 = vld [vmem:[#allocation2 + $0x20] sm:$0xff]  ;;  %v521_v30 = vld [vmem:[#allocation2 + $0x78] sm:$0xff]  ;;  %v11658_v34 = vpack.c.bf16 %v525_v26, %v524_v25  ;;  %v531_v41 = vld [vmem:[#allocation2 + $0xc8] sm:$0xff]  ;;  %p11140_p3 = pnand %p11139_p2, %p11133_p13 }
  0x4d   : > { %10126 = vmatpush3.bf16.msra.mxu0 %v11312_v1  ;;  %10127 = vmatprep.mubr.msk.bf16.mxu0 %vm417_vm1, %v11536_v10  ;;  %v530_v40 = vld [vmem:[#allocation2 + $0xc0] sm:$0xff]  ;;  %v527_v48 = vld [vmem:[#allocation2 + $0xa8] sm:$0xff]  ;;  %v528_v49 = vld [vmem:[#allocation2 + $0xb0] sm:$0xff] }
  0x4e   : > { %10110 = vmatmul.mubr.msk.bf16.vlgmr.msra.gmra.mxu1 %vm417_vm1, %v646_v11  ;;  %11015 = vmatprep.subr.msk.bf16.mxu0 %vm675_vm0, %v11306_v0  ;;  %v11628_v11 = vpack.c.bf16 %v510_v7, %v509_v6  ;;  %v11674_v50 = vpack.c.bf16 %v531_v41, %v530_v40  ;;  %v532_v53 = vld [vmem:[#allocation2 + $0xd0] sm:$0x1]  ;;  %v533_v61 = vld [vmem:[#allocation2 + $0xd8] sm:$0xff]  ;;  %v542_v6 = vld [vmem:[#allocation2 + $0x120] sm:$0xff] }
  0x4f   : > { %10120 = vmatpush3.bf16.msra.mxu1 %v11312_v1  ;;  %10121 = vmatprep.mubr.msk.bf16.mxu1 %vm417_vm1, %v11538_v12  ;;  %v536_v55 = vld [vmem:[#allocation2 + $0xf0] sm:$0xff]  ;;  %v571_v60 = vpack.c.bf16 %v532_v53, %v532_v53  ;;  %v543_v7 = vld [vmem:[#allocation2 + $0x128] sm:$0xff]  ;;  %v549_v24 = vld [vmem:[#allocation2 + $0x158] sm:$0xff] }
  0x50   : > { %11014 = vmatprep.subr.msk.bf16.mxu1 %vm675_vm0, %v11306_v0  ;;  %v539_v13 = vld [vmem:[#allocation2 + $0x108] sm:$0xff]  ;;  %v540_v14 = vld [vmem:[#allocation2 + $0x110] sm:$0xff]  ;;  %v541_v25 = vld [vmem:[#allocation2 + $0x118] sm:$0x1] }
  0x51   : > { %v550_v40 = vld [vmem:[#allocation2 + $0x160] sm:$0x1]  ;;  %v547_v41 = vld [vmem:[#allocation2 + $0x148] sm:$0x1] }
  0x54   : > { %10128 = vmatmul.mubr.msk.bf16.vlgmr.msra.gmra.mxu0 %vm417_vm1, %v652_v17  ;;  %v515_v17 = vld [vmem:[#allocation2 + $0x48] sm:$0xff] }
  0x55   : > { %10138 = vmatpush3.bf16.msra.mxu0 %v11312_v1  ;;  %10139 = vmatprep.mubr.msk.bf16.mxu0 %vm417_vm1, %v11552_v20  ;;  %v11644_v23 = vpack.c.bf16 %v516_v18, %v515_v17  ;;  %v11708_v17 = vpack.c.bf16 %v540_v14, %v539_v13  ;;  %v544_v18 = vld [vmem:[#allocation2 + $0x130] sm:$0x1]  ;;  %v2442_v14 = vld [vmem:[#allocation2 + $0x148] sm:$0x1] }
  0x56   : > { %10122 = vmatmul.mubr.msk.bf16.vlgmr.msra.gmra.mxu1 %vm417_vm1, %v650_v21  ;;  %11017 = vmatprep.subr.msk.bf16.mxu0 %vm675_vm0, %v11306_v0  ;;  %v557_v21 = vpack.c.bf16 %v511_v15, %v511_v15  ;;  %v11706_v15 = vpack.c.bf16 %v543_v7, %v542_v6  ;;  %v579_v26 = vpack.c.bf16 %v544_v18, %v544_v18  ;;  %v11836_v18 = vld [vmem:[%s13336_s1 + $0x6] sm:$0x3] }
  0x57   : > { %10132 = vmatpush3.bf16.msra.mxu1 %v11312_v1  ;;  %10133 = vmatprep.mubr.msk.bf16.mxu1 %vm417_vm1, %v11554_v22 }
  0x58   : > { %11016 = vmatprep.subr.msk.bf16.mxu1 %vm675_vm0, %v11306_v0 }
  0x5c   : > { %10140 = vmatmul.mubr.msk.bf16.vlgmr.msra.gmra.mxu0 %vm417_vm1, %v656_v27  ;;  %v517_v27 = vld [vmem:[#allocation2 + $0x58] sm:$0x1] }
  0x5d   : > { %10150 = vmatpush3.bf16.msra.mxu0 %v11312_v1  ;;  %10151 = vmatprep.mubr.msk.bf16.mxu0 %vm417_vm1, %v11568_v31  ;;  %v561_v36 = vpack.c.bf16 %v517_v27, %v517_v27  ;;  %v545_v27 = vld [vmem:[#allocation2 + $0x138] sm:$0xff] }
  0x5e   : > { %10134 = vmatmul.mubr.msk.bf16.vlgmr.msra.gmra.mxu1 %vm417_vm1, %v654_v32  ;;  %11019 = vmatprep.subr.msk.bf16.mxu0 %vm675_vm0, %v11306_v0  ;;  %v522_v32 = vld [vmem:[#allocation2 + $0x80] sm:$0xff] }
  0x5f   : > { %10144 = vmatpush3.bf16.msra.mxu1 %v11312_v1  ;;  %10145 = vmatprep.mubr.msk.bf16.mxu1 %vm417_vm1, %v11570_v33  ;;  %v11660_v37 = vpack.c.bf16 %v522_v32, %v521_v30  ;;  %v577_v32 = vpack.c.bf16 %v541_v25, %v541_v25  ;;  %v2449_v25 = vld [vmem:[#allocation2 + $0x180] sm:$0xff] }
  0x60   : > { %11018 = vmatprep.subr.msk.bf16.mxu1 %vm675_vm0, %v11306_v0 }
  0x64   : > { %10152 = vmatmul.mubr.msk.bf16.vlgmr.msra.gmra.mxu0 %vm417_vm1, %v660_v42  ;;  %v523_v42 = vld [vmem:[#allocation2 + $0x88] sm:$0x1] }
  0x65   : > { %10162 = vmatpush3.bf16.msra.mxu0 %v11312_v1  ;;  %10163 = vmatprep.mubr.msk.bf16.mxu0 %vm417_vm1, %v11584_v44  ;;  %v565_v51 = vpack.c.bf16 %v523_v42, %v523_v42  ;;  %v583_v42 = vpack.c.bf16 %v550_v40, %v550_v40 }
  0x66   : > { %10146 = vmatmul.mubr.msk.bf16.vlgmr.msra.gmra.mxu1 %vm417_vm1, %v658_v45  ;;  %11021 = vmatprep.subr.msk.bf16.mxu0 %vm675_vm0, %v11591_v47  ;;  %v567_v45 = vpack.c.bf16 %v526_v39, %v526_v39  ;;  %v11729_v39 = vld [vmem:[%s13336_s1 + $0x4] sm:$0x3] }
  0x67   : > { %10156 = vmatpush3.bf16.msra.mxu1 %v11312_v1  ;;  %10157 = vmatprep.mubr.msk.bf16.mxu1 %vm417_vm1, %v11586_v46 }
  0x68   : > { %11020 = vmatprep.subr.msk.bf16.mxu1 %vm675_vm0, %v11306_v0  ;;  %v508_v0 = vld [vmem:[#allocation2 + $0x10] sm:$0x1] }
  0x69   : > { %v555_v5 = vpack.c.bf16 %v508_v0, %v508_v0  ;;  %v534_v0 = vld [vmem:[#allocation2 + $0xe0] sm:$0xff] }
  0x6a   : > { %v11692_v4 = vpack.c.bf16 %v534_v0, %v533_v61 }
  0x6c   : > { %10164 = vmatmul.mubr.msk.bf16.vlgmr.msra.gmra.mxu0 %vm417_vm1, %v664_v52  ;;  %v11676_v52 = vpack.c.bf16 %v528_v49, %v527_v48  ;;  %v552_v48 = vld [vmem:[#allocation2 + $0x170] sm:$0xff]  ;;  %v581_v49 = vpack.c.bf16 %v547_v41, %v547_v41 }
  0x6d   : > { %10174 = vmatpush3.bf16.msra.mxu0 %v11607_v59  ;;  %10175 = vmatprep.mubr.msk.bf16.mxu0 %vm417_vm1, %v554_v56  ;;  %v537_v56 = vld [vmem:[#allocation2 + $0xf8] sm:$0xff] }
  0x6e   : > { %10158 = vmatmul.mubr.msk.bf16.vlgmr.msra.gmra.mxu1 %vm417_vm1, %v662_v58  ;;  %11023 = vmatprep.subr.msk.bf16.mxu0 %vm675_vm0, %v11591_v47  ;;  %v529_v58 = vld [vmem:[#allocation2 + $0xb8] sm:$0x1]  ;;  %v11690_v63 = vpack.c.bf16 %v537_v56, %v536_v55  ;;  %v2406_v55 = vld [vmem:[#allocation2 + $0x28] sm:$0x1] }
  0x6f   : > { %10168 = vmatpush3.bf16.msra.mxu1 %v11312_v1  ;;  %10169 = vmatprep.mubr.msk.bf16.mxu1 %vm417_vm1, %v11611_v62  ;;  %v514_v1 = vld [vmem:[#allocation2 + $0x40] sm:$0x1]  ;;  %v569_v3 = vpack.c.bf16 %v529_v58, %v529_v58  ;;  %v2453_v56 = vpack.c.bf16 %v2406_v55, %v2406_v55  ;;  %v3415_v55 = vld [vmem:[#allocation2 + $0x89] sm:$0x1] }
  0x70   : > { %11022 = vmatprep.subr.msk.bf16.mxu1 %vm675_vm0, %v11591_v47  ;;  %v559_v16 = vpack.c.bf16 %v514_v1, %v514_v1 }
  0x74   : > { %10176 = vmatmul.mubr.msk.bf16.vlgmr.msra.gmra.mxu0 %vm417_vm1, %v555_v5  ;;  %v538_v5 = vld [vmem:[#allocation2 + $0x100] sm:$0x1] }
  0x75   : > { %10186 = vmatpush3.bf16.msra.mxu0 %v11607_v59  ;;  %10187 = vmatprep.mubr.msk.bf16.mxu0 %vm417_vm1, %v11626_v8  ;;  %v575_v1 = vpack.c.bf16 %v538_v5, %v538_v5 }
  0x76   : > { %10170 = vmatmul.mubr.msk.bf16.vlgmr.msra.gmra.mxu1 %vm417_vm1, %v666_v9  ;;  %11025 = vmatprep.subr.msk.bf16.mxu0 %vm675_vm0, %v11591_v47  ;;  %v535_v9 = vld [vmem:[#allocation2 + $0xe8] sm:$0x1] }
  0x77   : > { %10180 = vmatpush3.bf16.msra.mxu1 %v11607_v59  ;;  %10181 = vmatprep.mubr.msk.bf16.mxu1 %vm417_vm1, %v11628_v11 }
  0x78   : > { %11024 = vmatprep.subr.msk.bf16.mxu1 %vm675_vm0, %v11591_v47 }
  0x7c   : > { %10188 = vmatmul.mubr.msk.bf16.vlgmr.msra.gmra.mxu0 %vm417_vm1, %v559_v16  ;;  %v573_v16 = vpack.c.bf16 %v535_v9, %v535_v9 }
  0x7d   : > { %10198 = vmatpush3.bf16.msra.mxu0 %v11607_v59  ;;  %10199 = vmatprep.mubr.msk.bf16.mxu0 %vm417_vm1, %v11642_v19 }
  0x7e   : > { %10182 = vmatmul.mubr.msk.bf16.vlgmr.msra.gmra.mxu1 %vm417_vm1, %v557_v21  ;;  %11027 = vmatprep.subr.msk.bf16.mxu0 %vm675_vm0, %v11591_v47  ;;  %v548_v21 = vld [vmem:[#allocation2 + $0x150] sm:$0xff] }
  0x7f   : > { %10192 = vmatpush3.bf16.msra.mxu1 %v11607_v59  ;;  %10193 = vmatprep.mubr.msk.bf16.mxu1 %vm417_vm1, %v11644_v23  ;;  %v11722_v30 = vpack.c.bf16 %v549_v24, %v548_v21  ;;  %v2448_v21 = vld [vmem:[#allocation2 + $0x178] sm:$0x1] }
  0x80   : > { %11026 = vmatprep.subr.msk.bf16.mxu1 %vm675_vm0, %v11591_v47  ;;  %v2481_v24 = vpack.c.bf16 %v2448_v21, %v2448_v21 }
  0x84   : > { %10200 = vmatmul.mubr.msk.bf16.vlgmr.msra.gmra.mxu0 %vm417_vm1, %v563_v29  ;;  %v546_v29 = vld [vmem:[#allocation2 + $0x140] sm:$0xff] }
  0x85   : > { %10210 = vmatpush3.bf16.msra.mxu0 %v11607_v59  ;;  %10211 = vmatprep.mubr.msk.bf16.mxu0 %vm417_vm1, %v11658_v34 }
  0x86   : > { %10194 = vmatmul.mubr.msk.bf16.vlgmr.msra.gmra.mxu1 %vm417_vm1, %v561_v36  ;;  %11029 = vmatprep.subr.msk.bf16.mxu0 %vm675_vm0, %v11591_v47  ;;  %v11724_v36 = vpack.c.bf16 %v546_v29, %v545_v27  ;;  %v11852_v29 = vsel %vm675_vm0, %v11836_v18, 0 }
  0x87   : > { %10204 = vmatpush3.bf16.msra.mxu1 %v11607_v59  ;;  %10205 = vmatprep.mubr.msk.bf16.mxu1 %vm417_vm1, %v11660_v37 }
  0x88   : > { %11028 = vmatprep.subr.msk.bf16.mxu1 %vm675_vm0, %v11591_v47 }
  0x8c   : > { %10212 = vmatmul.mubr.msk.bf16.vlgmr.msra.gmra.mxu0 %vm417_vm1, %v567_v45  ;;  %v551_v45 = vld [vmem:[#allocation2 + $0x168] sm:$0xff] }
  0x8d   : > { %10222 = vmatpush3.bf16.msra.mxu0 %v11607_v59  ;;  %10223 = vmatprep.mubr.msk.bf16.mxu0 %vm417_vm1, %v11674_v50  ;;  %v11747_v53 = vpack.c.bf16 %v552_v48, %v551_v45  ;;  %v3406_v45 = vld [vmem:[#allocation2 + $0x41] sm:$0x1] }
  0x8e   : > { %10206 = vmatmul.mubr.msk.bf16.vlgmr.msra.gmra.mxu1 %vm417_vm1, %v565_v51  ;;  %11031 = vmatprep.subr.msk.bf16.mxu0 %vm675_vm0, %v11591_v47  ;;  %v11745_v51 = vsel %vm675_vm0, %v11729_v39, 0 }
  0x8f   : > { %10216 = vmatpush3.bf16.msra.mxu1 %v11607_v59  ;;  %10217 = vmatprep.mubr.msk.bf16.mxu1 %vm417_vm1, %v11676_v52 }
  0x90   : > { %11030 = vmatprep.subr.msk.bf16.mxu1 %vm675_vm0, %v11591_v47 }
  0x94   : > { %10224 = vmatmul.mubr.msk.bf16.vlgmr.msra.gmra.mxu0 %vm417_vm1, %v571_v60 }
  0x95   : > { %10234 = vmatpush3.bf16.msra.mxu0 %v11607_v59  ;;  %10235 = vmatprep.mubr.msk.bf16.mxu0 %vm417_vm1, %v11690_v63 }
  0x96   : > { %10218 = vmatmul.mubr.msk.bf16.vlgmr.msra.gmra.mxu1 %vm417_vm1, %v569_v3  ;;  %11033 = vmatprep.subr.msk.bf16.mxu0 %vm675_vm0, %v11591_v47 }
  0x97   : > { %10228 = vmatpush3.bf16.msra.mxu1 %v11607_v59  ;;  %10229 = vmatprep.mubr.msk.bf16.mxu1 %vm417_vm1, %v11692_v4 }
  0x98   : > { %11032 = vmatprep.subr.msk.bf16.mxu1 %vm675_vm0, %v11591_v47 }
  0x9c   : > { %10236 = vmatmul.mubr.msk.bf16.vlgmr.msra.gmra.mxu0 %vm417_vm1, %v575_v1 }
  0x9d   : > { %10246 = vmatpush3.bf16.msra.mxu0 %v11607_v59  ;;  %10247 = vmatprep.mubr.msk.bf16.mxu0 %vm417_vm1, %v11706_v15 }
  0x9e   : > { %10230 = vmatmul.mubr.msk.bf16.vlgmr.msra.gmra.mxu1 %vm417_vm1, %v573_v16  ;;  %11035 = vmatprep.subr.msk.bf16.mxu0 %vm675_vm0, %v11591_v47  ;;  %v2477_v16 = vpack.c.bf16 %v2442_v14, %v2442_v14 }
  0x9f   : > { %10240 = vmatpush3.bf16.msra.mxu1 %v11607_v59  ;;  %10241 = vmatprep.mubr.msk.bf16.mxu1 %vm417_vm1, %v11708_v17 }
  0xa0   : > { %11034 = vmatprep.subr.msk.bf16.mxu1 %vm675_vm0, %v11591_v47 }
  0xa4   : > { %10248 = vmatmul.mubr.msk.bf16.vlgmr.msra.gmra.mxu0 %vm417_vm1, %v579_v26  ;;  %v2450_v26 = vld [vmem:[#allocation2 + $0x188] sm:$0xff] }
  0xa5   : > { %10258 = vmatpush3.bf16.msra.mxu0 %v11607_v59  ;;  %10259 = vmatprep.mubr.msk.bf16.mxu0 %vm417_vm1, %v11722_v30 }
  0xa6   : > { %10242 = vmatmul.mubr.msk.bf16.vlgmr.msra.gmra.mxu1 %vm417_vm1, %v577_v32  ;;  %11037 = vmatprep.subr.msk.bf16.mxu0 %vm675_vm0, %v11729_v39  ;;  %v2482_v32 = vpack.c.bf16 %v2450_v26, %v2449_v25  ;;  %v3430_v26 = vld [vmem:[#allocation2 + $0x101] sm:$0x1] }
  0xa7   : > { %10252 = vmatpush3.bf16.msra.mxu1 %v11607_v59  ;;  %10253 = vmatprep.mubr.msk.bf16.mxu1 %vm417_vm1, %v11724_v36 }
  0xa8   : > { %11036 = vmatprep.subr.msk.bf16.mxu1 %vm675_vm0, %v11591_v47  ;;  %v553_v47 = vld [vmem:[#allocation2 + $0x178] sm:$0x1] }
  0xa9   : > { %v585_v58 = vpack.c.bf16 %v553_v47, %v553_v47 }
  0xac   : > { %10260 = vmatmul.mubr.msk.bf16.vlgmr.msra.gmra.mxu0 %vm417_vm1, %v583_v42 }
  0xad   : > { %10270 = vmatpush3.bf16.msra.mxu0 %v11745_v51  ;;  %10271 = vmatprep.mubr.msk.bf16.mxu0 %vm417_vm1, %v11628_v11  ;;  %v2412_v11 = vld [vmem:[#allocation2 + $0x58] sm:$0x1] }
  0xae   : > { %10254 = vmatmul.mubr.msk.bf16.vlgmr.msra.gmra.mxu1 %vm417_vm1, %v581_v49  ;;  %11039 = vmatprep.subr.msk.bf16.mxu0 %vm675_vm0, %v11729_v39  ;;  %v2457_v60 = vpack.c.bf16 %v2412_v11, %v2412_v11 }
  0xaf   : > { %10264 = vmatpush3.bf16.msra.mxu1 %v11607_v59  ;;  %10265 = vmatprep.mubr.msk.bf16.mxu1 %vm417_vm1, %v11747_v53  ;;  %v2409_v59 = vld [vmem:[#allocation2 + $0x40] sm:$0x1] }
  0xb0   : > { %11038 = vmatprep.subr.msk.bf16.mxu1 %vm675_vm0, %v11729_v39  ;;  %v2455_v61 = vpack.c.bf16 %v2409_v59, %v2409_v59 }
  0xb4   : > { %10272 = vmatmul.mubr.msk.bf16.vlgmr.msra.gmra.mxu0 %vm417_vm1, %v2453_v56  ;;  %v3412_v56 = vld [vmem:[#allocation2 + $0x71] sm:$0x1] }
  0xb5   : > { %10282 = vmatpush3.bf16.msra.mxu0 %v11745_v51  ;;  %10283 = vmatprep.mubr.msk.bf16.mxu0 %vm417_vm1, %v11644_v23  ;;  %v2418_v23 = vld [vmem:[#allocation2 + $0x88] sm:$0x1] }
  0xb6   : > { %10266 = vmatmul.mubr.msk.bf16.vlgmr.msra.gmra.mxu1 %vm417_vm1, %v585_v58  ;;  %11041 = vmatprep.subr.msk.bf16.mxu0 %vm675_vm0, %v11729_v39  ;;  %v2461_v0 = vpack.c.bf16 %v2418_v23, %v2418_v23 }
  0xb7   : > { %10276 = vmatpush3.bf16.msra.mxu1 %v11745_v51  ;;  %10277 = vmatprep.mubr.msk.bf16.mxu1 %vm417_vm1, %v11626_v8  ;;  %v2415_v8 = vld [vmem:[#allocation2 + $0x70] sm:$0x1] }
  0xb8   : > { %11040 = vmatprep.subr.msk.bf16.mxu1 %vm675_vm0, %v11729_v39  ;;  %v2459_v3 = vpack.c.bf16 %v2415_v8, %v2415_v8 }
  0xbc   : > { %10284 = vmatmul.mubr.msk.bf16.vlgmr.msra.gmra.mxu0 %vm417_vm1, %v2457_v60 }
  0xbd   : > { %10294 = vmatpush3.bf16.msra.mxu0 %v11745_v51  ;;  %10295 = vmatprep.mubr.msk.bf16.mxu0 %vm417_vm1, %v11660_v37  ;;  %v2424_v37 = vld [vmem:[#allocation2 + $0xb8] sm:$0x1] }
  0xbe   : > { %10278 = vmatmul.mubr.msk.bf16.vlgmr.msra.gmra.mxu1 %vm417_vm1, %v2455_v61  ;;  %11043 = vmatprep.subr.msk.bf16.mxu0 %vm675_vm0, %v11729_v39  ;;  %v2465_v5 = vpack.c.bf16 %v2424_v37, %v2424_v37  ;;  %v3456_v61 = vpack.c.bf16 %v3412_v56, %v3412_v56  ;;  %v3418_v37 = vld [vmem:[#allocation2 + $0xa1] sm:$0x1] }
  0xbf   : > { %10288 = vmatpush3.bf16.msra.mxu1 %v11745_v51  ;;  %10289 = vmatprep.mubr.msk.bf16.mxu1 %vm417_vm1, %v11642_v19  ;;  %v2421_v19 = vld [vmem:[#allocation2 + $0xa0] sm:$0x1] }
  0xc0   : > { %11042 = vmatprep.subr.msk.bf16.mxu1 %vm675_vm0, %v11729_v39  ;;  %v2463_v6 = vpack.c.bf16 %v2421_v19, %v2421_v19 }
  0xc4   : > { %10296 = vmatmul.mubr.msk.bf16.vlgmr.msra.gmra.mxu0 %vm417_vm1, %v2461_v0 }
  0xc5   : > { %10306 = vmatpush3.bf16.msra.mxu0 %v11745_v51  ;;  %10307 = vmatprep.mubr.msk.bf16.mxu0 %vm417_vm1, %v11676_v52  ;;  %v2430_v52 = vld [vmem:[#allocation2 + $0xe8] sm:$0x1] }
  0xc6   : > { %10290 = vmatmul.mubr.msk.bf16.vlgmr.msra.gmra.mxu1 %vm417_vm1, %v2459_v3  ;;  %11045 = vmatprep.subr.msk.bf16.mxu0 %vm675_vm0, %v11729_v39  ;;  %v2469_v7 = vpack.c.bf16 %v2430_v52, %v2430_v52 }
  0xc7   : > { %10300 = vmatpush3.bf16.msra.mxu1 %v11745_v51  ;;  %10301 = vmatprep.mubr.msk.bf16.mxu1 %vm417_vm1, %v11658_v34  ;;  %v2427_v34 = vld [vmem:[#allocation2 + $0xd0] sm:$0x1] }
  0xc8   : > { %11044 = vmatprep.subr.msk.bf16.mxu1 %vm675_vm0, %v11729_v39  ;;  %v2467_v9 = vpack.c.bf16 %v2427_v34, %v2427_v34  ;;  %v3460_v34 = vpack.c.bf16 %v3418_v37, %v3418_v37 }
  0xcc   : > { %10308 = vmatmul.mubr.msk.bf16.vlgmr.msra.gmra.mxu0 %vm417_vm1, %v2465_v5 }
  0xcd   : > { %10318 = vmatpush3.bf16.msra.mxu0 %v11745_v51  ;;  %10319 = vmatprep.mubr.msk.bf16.mxu0 %vm417_vm1, %v11692_v4  ;;  %v2436_v4 = vld [vmem:[#allocation2 + $0x118] sm:$0x1] }
  0xce   : > { %10302 = vmatmul.mubr.msk.bf16.vlgmr.msra.gmra.mxu1 %vm417_vm1, %v2463_v6  ;;  %11047 = vmatprep.subr.msk.bf16.mxu0 %vm675_vm0, %v11729_v39  ;;  %v2473_v1 = vpack.c.bf16 %v2436_v4, %v2436_v4 }
  0xcf   : > { %10312 = vmatpush3.bf16.msra.mxu1 %v11745_v51  ;;  %10313 = vmatprep.mubr.msk.bf16.mxu1 %vm417_vm1, %v11674_v50  ;;  %v2433_v50 = vld [vmem:[#allocation2 + $0x100] sm:$0x1] }
  0xd0   : > { %11046 = vmatprep.subr.msk.bf16.mxu1 %vm675_vm0, %v11729_v39  ;;  %v2471_v13 = vpack.c.bf16 %v2433_v50, %v2433_v50 }
  0xd4   : > { %10320 = vmatmul.mubr.msk.bf16.vlgmr.msra.gmra.mxu0 %vm417_vm1, %v2469_v7 }
  0xd5   : > { %10330 = vmatpush3.bf16.msra.mxu0 %v11745_v51  ;;  %10331 = vmatprep.mubr.msk.bf16.mxu0 %vm417_vm1, %v11708_v17 }
  0xd6   : > { %10314 = vmatmul.mubr.msk.bf16.vlgmr.msra.gmra.mxu1 %vm417_vm1, %v2467_v9  ;;  %11049 = vmatprep.subr.msk.bf16.mxu0 %vm675_vm0, %v11729_v39 }
  0xd7   : > { %10324 = vmatpush3.bf16.msra.mxu1 %v11745_v51  ;;  %10325 = vmatprep.mubr.msk.bf16.mxu1 %vm417_vm1, %v11690_v63  ;;  %v2439_v63 = vld [vmem:[#allocation2 + $0x130] sm:$0x1] }
  0xd8   : > { %11048 = vmatprep.subr.msk.bf16.mxu1 %vm675_vm0, %v11729_v39  ;;  %v2475_v17 = vpack.c.bf16 %v2439_v63, %v2439_v63 }
  0xdc   : > { %10332 = vmatmul.mubr.msk.bf16.vlgmr.msra.gmra.mxu0 %vm417_vm1, %v2473_v1  ;;  %v3424_v1 = vld [vmem:[#allocation2 + $0xd1] sm:$0x1] }
  0xdd   : > { %10342 = vmatpush3.bf16.msra.mxu0 %v11745_v51  ;;  %10343 = vmatprep.mubr.msk.bf16.mxu0 %vm417_vm1, %v11724_v36  ;;  %v2451_v36 = vld [vmem:[#allocation2 + $0x190] sm:$0x1] }
  0xde   : > { %10326 = vmatmul.mubr.msk.bf16.vlgmr.msra.gmra.mxu1 %vm417_vm1, %v2471_v13  ;;  %11051 = vmatprep.subr.msk.bf16.mxu0 %vm675_vm0, %v11729_v39  ;;  %v2483_v40 = vpack.c.bf16 %v2451_v36, %v2451_v36 }
  0xdf   : > { %10336 = vmatpush3.bf16.msra.mxu1 %v11745_v51  ;;  %10337 = vmatprep.mubr.msk.bf16.mxu1 %vm417_vm1, %v11706_v15  ;;  %v2445_v15 = vld [vmem:[#allocation2 + $0x160] sm:$0x1] }
  0xe0   : > { %11050 = vmatprep.subr.msk.bf16.mxu1 %vm675_vm0, %v11729_v39  ;;  %v2479_v27 = vpack.c.bf16 %v2445_v15, %v2445_v15 }
  0xe4   : > { %10344 = vmatmul.mubr.msk.bf16.vlgmr.msra.gmra.mxu0 %vm417_vm1, %v2477_v16  ;;  %v11866_v41 = vpop.f32.mrf.mxu1 }
  0xe5   : > { %10354 = vmatpush3.bf16.msra.mxu0 %v11745_v51  ;;  %10355 = vmatprep.mubr.msk.bf16.mxu0 %vm417_vm1, %v11747_v53 }
  0xe6   : > { %10338 = vmatmul.mubr.msk.bf16.vlgmr.msra.gmra.mxu1 %vm417_vm1, %v2475_v17  ;;  %11053 = vmatprep.subr.msk.bf16.mxu0 %vm675_vm0, %v11836_v18  ;;  %v11874_v42 = vpop.f32.mrf.mxu1  ;;  %v3464_v17 = vpack.c.bf16 %v3424_v1, %v3424_v1 }
  0xe7   : > { %10348 = vmatpush3.bf16.msra.mxu1 %v11745_v51  ;;  %10349 = vmatprep.mubr.msk.bf16.mxu1 %vm417_vm1, %v11722_v30  ;;  %v3403_v30 = vld [vmem:[#allocation2 + $0x29] sm:$0x1] }
  0xe8   : > { %11052 = vmatprep.subr.msk.bf16.mxu1 %vm675_vm0, %v11729_v39  ;;  %v3450_v39 = vpack.c.bf16 %v3403_v30, %v3403_v30  ;;  %v10082_v49 = vpop.f32.mrf.mxu1 }
  0xe9   : > { %v3436_v49 = vld [vmem:[#allocation2 + $0x131] sm:$0x1] }
  0xec   : > { %10356 = vmatmul.mubr.msk.bf16.vlgmr.msra.gmra.mxu0 %vm417_vm1, %v2481_v24 }
  0xed   : > { %10366 = vmatpush3.bf16.msra.mxu0 %v11852_v29  ;;  %10367 = vmatprep.mubr.msk.bf16.mxu0 %vm417_vm1, %v11474_v35  ;;  %v3409_v35 = vld [vmem:[#allocation2 + $0x59] sm:$0x1] }
  0xee   : > { %10350 = vmatmul.mubr.msk.bf16.vlgmr.msra.gmra.mxu1 %vm417_vm1, %v2479_v27  ;;  %11055 = vmatprep.subr.msk.bf16.mxu0 %vm675_vm0, %v11836_v18  ;;  %v3454_v48 = vpack.c.bf16 %v3409_v35, %v3409_v35 }
  0xef   : > { %10360 = vmatpush3.bf16.msra.mxu1 %v11745_v51  ;;  %10361 = vmatprep.mubr.msk.bf16.mxu1 %vm417_vm1, %v2482_v32  ;;  %v11881_v51 = vpop.f32.mrf.mxu1 }
  0xf0   : > { %11054 = vmatprep.subr.msk.bf16.mxu1 %vm675_vm0, %v11836_v18 }
  0xf4   : > { %10368 = vmatmul.mubr.msk.bf16.vlgmr.msra.gmra.mxu0 %vm417_vm1, %v3450_v39  ;;  %v3468_v39 = vpack.c.bf16 %v3430_v26, %v3430_v26 }
  0xf5   : > { %10378 = vmatpush3.bf16.msra.mxu0 %v11852_v29  ;;  %10379 = vmatprep.mubr.msk.bf16.mxu0 %vm417_vm1, %v11485_v43  ;;  %v3452_v43 = vpack.c.bf16 %v3406_v45, %v3406_v45 }
  0xf6   : > { %10362 = vmatmul.mubr.msk.bf16.vlgmr.msra.gmra.mxu1 %vm417_vm1, %v2483_v40  ;;  %11057 = vmatprep.subr.msk.bf16.mxu0 %vm675_vm0, %v11836_v18 }
  0xf7   : > { %10372 = vmatpush3.bf16.msra.mxu1 %v11852_v29  ;;  %10373 = vmatprep.mubr.msk.bf16.mxu1 %vm417_vm1, %v11464_v28 }
  0xf8   : > { %11056 = vmatprep.subr.msk.bf16.mxu1 %vm675_vm0, %v11836_v18 }
  0xfc   : > { %v11883_v53 = vpop.f32.mrf.mxu0  ;;  %10380 = vmatmul.mubr.msk.bf16.vlgmr.msra.gmra.mxu0 %vm417_vm1, %v3454_v48 }
  0xfd   : > { %10390 = vmatpush3.bf16.msra.mxu0 %v11852_v29  ;;  %10391 = vmatprep.mubr.msk.bf16.mxu0 %vm417_vm1, %v11510_v57  ;;  %v11889_v28 = vpop.f32.mrf.mxu1  ;;  %v3458_v57 = vpack.c.bf16 %v3415_v55, %v3415_v55 }
  0xfe   : > { %v11891_v47 = vpop.f32.mrf.mxu0  ;;  %10374 = vmatmul.mubr.msk.bf16.vlgmr.msra.gmra.mxu1 %vm417_vm1, %v3452_v43  ;;  %11059 = vmatprep.subr.msk.bf16.mxu0 %vm675_vm0, %v11836_v18 }
  0xff   : > { %10384 = vmatpush3.bf16.msra.mxu1 %v11852_v29  ;;  %10385 = vmatprep.mubr.msk.bf16.mxu1 %vm417_vm1, %v11479_v38  ;;  %v11899_v58 = vpop.f32.mrf.mxu1  ;;  %v3421_v38 = vld [vmem:[#allocation2 + $0xb9] sm:$0x1] }
 0x100   : > { %v10094_v11 = vpop.f32.mrf.mxu0  ;;  %11058 = vmatprep.subr.msk.bf16.mxu1 %vm675_vm0, %v11836_v18 }
 0x101   : > { %v10088_v59 = vpop.f32.mrf.mxu1 }
 0x102   : > { %v11903_v60 = vpop.f32.mrf.mxu0 }
 0x103   : > { %v11905_v23 = vpop.f32.mrf.mxu1 }
 0x104   : > { %v11907_v8 = vpop.f32.mrf.mxu0  ;;  %10392 = vmatmul.mubr.msk.bf16.vlgmr.msra.gmra.mxu0 %vm417_vm1, %v3458_v57  ;;  %v3472_v57 = vpack.c.bf16 %v3436_v49, %v3436_v49 }
 0x105   : > { %10402 = vmatpush3.bf16.msra.mxu0 %v11852_v29  ;;  %10403 = vmatprep.mubr.msk.bf16.mxu0 %vm417_vm1, %v11538_v12  ;;  %v3462_v12 = vpack.c.bf16 %v3421_v38, %v3421_v38 }
 0x106   : > { %v11913_v0 = vpop.f32.mrf.mxu1  ;;  %v11915_v3 = vpop.f32.mrf.mxu0  ;;  %10386 = vmatmul.mubr.msk.bf16.vlgmr.msra.gmra.mxu1 %vm417_vm1, %v3456_v61  ;;  %11061 = vmatprep.subr.msk.bf16.mxu0 %vm675_vm0, %v11836_v18 }
 0x107   : > { %10396 = vmatpush3.bf16.msra.mxu1 %v11852_v29  ;;  %10397 = vmatprep.mubr.msk.bf16.mxu1 %vm417_vm1, %v11504_v54  ;;  %v3427_v54 = vld [vmem:[#allocation2 + $0xe9] sm:$0x1] }
 0x108   : > { %v11923_v19 = vpop.f32.mrf.mxu1  ;;  %v10106_v5 = vpop.f32.mrf.mxu0  ;;  %11060 = vmatprep.subr.msk.bf16.mxu1 %vm675_vm0, %v11836_v18 }
 0x109   : > { %v3442_v5 = vld [vmem:[#allocation2 + $0x161] sm:$0x1] }
 0x10a   : > { %v10100_v6 = vpop.f32.mrf.mxu1  ;;  %v11927_v52 = vpop.f32.mrf.mxu0 }
 0x10c   : > { %v11929_v7 = vpop.f32.mrf.mxu1  ;;  %v11931_v9 = vpop.f32.mrf.mxu0  ;;  %10404 = vmatmul.mubr.msk.bf16.vlgmr.msra.gmra.mxu0 %vm417_vm1, %v3462_v12 }
 0x10d   : > { %10414 = vmatpush3.bf16.msra.mxu0 %v11852_v29  ;;  %10415 = vmatprep.mubr.msk.bf16.mxu0 %vm417_vm1, %v11554_v22  ;;  %v3466_v22 = vpack.c.bf16 %v3427_v54, %v3427_v54  ;;  %v3447_v54 = vld [vmem:[#allocation2 + $0x189] sm:$0xff] }
 0x10e   : > { %v11937_v4 = vpop.f32.mrf.mxu1  ;;  %v11939_v50 = vpop.f32.mrf.mxu0  ;;  %10398 = vmatmul.mubr.msk.bf16.vlgmr.msra.gmra.mxu1 %vm417_vm1, %v3460_v34  ;;  %11063 = vmatprep.subr.msk.bf16.mxu0 %vm675_vm0, %v11836_v18 }
 0x10f   : > { %10408 = vmatpush3.bf16.msra.mxu1 %v11852_v29  ;;  %10409 = vmatprep.mubr.msk.bf16.mxu1 %vm417_vm1, %v11536_v10  ;;  %v3433_v10 = vld [vmem:[#allocation2 + $0x119] sm:$0x1] }
 0x110   : > { %v11947_v13 = vpop.f32.mrf.mxu1  ;;  %v10118_v14 = vpop.f32.mrf.mxu0  ;;  %11062 = vmatprep.subr.msk.bf16.mxu1 %vm675_vm0, %v11836_v18 }
 0x112   : > { %v10112_v63 = vpop.f32.mrf.mxu1  ;;  %v11951_v16 = vpop.f32.mrf.mxu0 }
 0x113   : > { %13338 = vst [vmem:[#allocation8_spill] sm:$0xff] %v11951_v16 }
 0x114   : > { %v11953_v21 = vpop.f32.mrf.mxu1  ;;  %v11955_v15 = vpop.f32.mrf.mxu0  ;;  %10416 = vmatmul.mubr.msk.bf16.vlgmr.msra.gmra.mxu0 %vm417_vm1, %v3466_v22  ;;  %v3476_v22 = vpack.c.bf16 %v3442_v5, %v3442_v5 }
 0x115   : > { %13339 = vst [vmem:[#allocation9_spill] sm:$0xff] %v11953_v21  ;;  %10426 = vmatpush3.bf16.msra.mxu0 %v11852_v29  ;;  %10427 = vmatprep.mubr.msk.bf16.mxu0 %vm417_vm1, %v11570_v33  ;;  %v3470_v33 = vpack.c.bf16 %v3433_v10, %v3433_v10 }
 0x116   : > { %v11961_v24 = vpop.f32.mrf.mxu1  ;;  %v11963_v25 = vpop.f32.mrf.mxu0  ;;  %10410 = vmatmul.mubr.msk.bf16.vlgmr.msra.gmra.mxu1 %vm417_vm1, %v3464_v17  ;;  %11065 = vmatprep.subr.msk.bf16.mxu0 %vm675_vm0, %v11836_v18 }
 0x117   : > { %10420 = vmatpush3.bf16.msra.mxu1 %v11852_v29  ;;  %10421 = vmatprep.mubr.msk.bf16.mxu1 %vm417_vm1, %v11552_v20  ;;  %v3439_v20 = vld [vmem:[#allocation2 + $0x149] sm:$0x1] }
 0x118   : > { %v11971_v27 = vpop.f32.mrf.mxu1  ;;  %v10130_v32 = vpop.f32.mrf.mxu0  ;;  %11064 = vmatprep.subr.msk.bf16.mxu1 %vm675_vm0, %v11836_v18 }
 0x11a   : > { %v10124_v30 = vpop.f32.mrf.mxu1  ;;  %v11975_v36 = vpop.f32.mrf.mxu0 }
 0x11b   : > { %13340 = vst [vmem:[#allocation10_spill] sm:$0xff] %v11975_v36 }
 0x11c   : > { %v11977_v40 = vpop.f32.mrf.mxu1  ;;  %v11979_v35 = vpop.f32.mrf.mxu0  ;;  %10428 = vmatmul.mubr.msk.bf16.vlgmr.msra.gmra.mxu0 %vm417_vm1, %v3470_v33 }
 0x11d   : > { %13341 = vst [vmem:[#allocation11_spill] sm:$0xff] %v11977_v40  ;;  %10438 = vmatpush3.bf16.msra.mxu0 %v11852_v29  ;;  %10439 = vmatprep.mubr.msk.bf16.mxu0 %vm417_vm1, %v11586_v46  ;;  %v3474_v46 = vpack.c.bf16 %v3439_v20, %v3439_v20 }
 0x11e   : > { %v11985_v45 = vpop.f32.mrf.mxu1  ;;  %v11987_v48 = vpop.f32.mrf.mxu0  ;;  %10422 = vmatmul.mubr.msk.bf16.vlgmr.msra.gmra.mxu1 %vm417_vm1, %v3468_v39  ;;  %11067 = vmatprep.subr.msk.bf16.mxu0 %vm675_vm0, %v11836_v18 }
 0x11f   : > { %10432 = vmatpush3.bf16.msra.mxu1 %v11852_v29  ;;  %10433 = vmatprep.mubr.msk.bf16.mxu1 %vm417_vm1, %v11568_v31  ;;  %v3445_v31 = vld [vmem:[#allocation2 + $0x179] sm:$0x1] }
 0x120   : > { %v11995_v43 = vpop.f32.mrf.mxu1  ;;  %v10142_v55 = vpop.f32.mrf.mxu0  ;;  %11066 = vmatprep.subr.msk.bf16.mxu1 %vm675_vm0, %v11836_v18  ;;  %v3478_v34 = vpack.c.bf16 %v3445_v31, %v3445_v31 }
 0x122   : > { %v10136_v56 = vpop.f32.mrf.mxu1  ;;  %v11999_v11 = vpop.f32.mrf.mxu0 }
 0x123   : > { %13342 = vst [vmem:[#allocation12_spill] sm:$0xff] %v11999_v11 }
 0x124   : > { %v12001_v59 = vpop.f32.mrf.mxu1  ;;  %v12003_v61 = vpop.f32.mrf.mxu0  ;;  %10440 = vmatmul.mubr.msk.bf16.vlgmr.msra.gmra.mxu0 %vm417_vm1, %v3474_v46 }
 0x125   : > { %13343 = vst [vmem:[#allocation13_spill] sm:$0xff] %v12001_v59  ;;  %10450 = vmatpush3.bf16.msra.mxu0 %v11852_v29  ;;  %10451 = vmatprep.mubr.msk.bf16.mxu0 %vm417_vm1, %v11611_v62  ;;  %v3446_v62 = vld [vmem:[#allocation2 + $0x181] sm:$0xff] }
 0x126   : > { %v12009_v38 = vpop.f32.mrf.mxu1  ;;  %v12011_v37 = vpop.f32.mrf.mxu0  ;;  %10434 = vmatmul.mubr.msk.bf16.vlgmr.msra.gmra.mxu1 %vm417_vm1, %v3472_v57  ;;  %10461 = vmatprep.subr.mxu0 %v13330_v2  ;;  %v3479_v63 = vpack.c.bf16 %v3447_v54, %v3446_v62 }
 0x127   : > { %10444 = vmatpush3.bf16.msra.mxu1 %v11852_v29  ;;  %10445 = vmatprep.mubr.msk.bf16.mxu1 %vm417_vm1, %v11584_v44 }
 0x128   : > { %v12018_v12 = vpop.f32.mrf.mxu1  ;;  %v10154_v6 = vpop.f32.mrf.mxu0  ;;  %11068 = vmatprep.subr.msk.bf16.mxu1 %vm675_vm0, %v11836_v18  ;;  %v3448_v18 = vld [vmem:[#allocation2 + $0x191] sm:$0x1]  ;;  %vm9310_vm0 = vcmask 24576  }
 0x129   : > { %v3480_v20 = vpack.c.bf16 %v3448_v18, %v3448_v18 }
 0x12a   : > { %v10148_v1 = vpop.f32.mrf.mxu1  ;;  %v12022_v14 = vpop.f32.mrf.mxu0 }
 0x12b   : > { %13344 = vst [vmem:[#allocation14_spill] sm:$0xff] %v12022_v14 }
 0x12c   : > { %v12024_v17 = vpop.f32.mrf.mxu1  ;;  %v12026_v10 = vpop.f32.mrf.mxu0  ;;  %10452 = vmatmul.mubr.msk.bf16.vlgmr.msra.gmra.mxu0 %vm417_vm1, %v3478_v34 }
 0x12d   : > { %13345 = vst [vmem:[#allocation15_spill] sm:$0xff] %v12024_v17 }
 0x12e   : > { %v12029_v44 = vpop.f32.mrf.mxu1  ;;  %v12031_v26 = vpop.f32.mrf.mxu0  ;;  %10446 = vmatmul.mubr.msk.bf16.vlgmr.msra.gmra.mxu1 %vm417_vm1, %v3476_v22 }
 0x12f   : > { %10456 = vmatpush3.bf16.msra.mxu1 %v11852_v29  ;;  %10457 = vmatprep.mubr.msk.bf16.mxu1 %vm417_vm1, %v3479_v63 }
 0x130   : > { %v12036_v32 = vpop.f32.mrf.mxu1  ;;  %v10166_v33 = vpop.f32.mrf.mxu0  ;;  %10470 = vmatprep.subr.mxu1 %v13330_v2 }
 0x132   : > { %v10160_v30 = vpop.f32.mrf.mxu1  ;;  %v12039_v39 = vpop.f32.mrf.mxu0 }
 0x133   : > { %13346 = vst [vmem:[#allocation16_spill] sm:$0xff] %v12039_v39 }
 0x134   : > { %v12041_v49 = vpop.f32.mrf.mxu1  ;;  %v10177_v55 = vpop.f32.mrf.mxu0 }
 0x135   : > { %13347 = vst [vmem:[#allocation17_spill] sm:$0xff] %v12041_v49  ;;  %v12044_v46 = vadd.f32 %v10177_v55, %v11866_v41 }
 0x136   : > { %v12046_v56 = vpop.f32.mrf.mxu1  ;;  %v1580_v29 = vpop.f32.mrf.mxu0  ;;  %10458 = vmatmul.mubr.msk.bf16.vlgmr.msra.gmra.mxu1 %vm417_vm1, %v3480_v20 }
 0x137   : > { %v12050_v57 = vadd.f32 %v1580_v29, %v11874_v42 }
 0x138   : > { %v12052_v31 = vpop.f32.mrf.mxu1  ;;  %v10178_v5 = vpop.f32.mrf.mxu0 }
 0x13a   : > { %v10172_v6 = vpop.f32.mrf.mxu1  ;;  %v12054_v34 = vpop.f32.mrf.mxu0 }
 0x13c   : > { %v12056_v62 = vpop.f32.mrf.mxu1  ;;  %v10189_v54 = vpop.f32.mrf.mxu0 }
 0x13d   : > { %13348 = vst [vmem:[#allocation18_spill] sm:$0xff] %v12056_v62  ;;  %v12059_v41 = vadd.f32 %v10189_v54, %v11883_v53 }
 0x13e   : > { %v10183_v1 = vpop.f32.mrf.mxu1  ;;  %v1688_v22 = vpop.f32.mrf.mxu0 }
 0x13f   : > { %v12062_v63 = vadd.f32 %v10183_v1, %v11889_v28  ;;  %v12065_v42 = vadd.f32 %v1688_v22, %v11891_v47 }
 0x140   : > { %v1634_v18 = vpop.f32.mrf.mxu1  ;;  %v10190_v33 = vpop.f32.mrf.mxu0 }
 0x141   : > { %v12068_v30 = vadd.f32 %v1634_v18, %v11899_v58 }
 0x142   : > { %v10184_v20 = vpop.f32.mrf.mxu1  ;;  %v12070_v55 = vpop.f32.mrf.mxu0 }
 0x144   : > { %v12072_v29 = vpop.f32.mrf.mxu1  ;;  %v10201_v53 = vpop.f32.mrf.mxu0 }
 0x145   : > { %v12075_v5 = vadd.f32 %v10201_v53, %v11907_v8 }
 0x146   : > { %v10195_v6 = vpop.f32.mrf.mxu1  ;;  %v1796_v28 = vpop.f32.mrf.mxu0 }
 0x147   : > { %v12078_v54 = vadd.f32 %v10195_v6, %v11913_v0  ;;  %v12081_v47 = vadd.f32 %v1796_v28, %v11915_v3 }
 0x148   : > { %v1742_v1 = vpop.f32.mrf.mxu1  ;;  %v10202_v58 = vpop.f32.mrf.mxu0 }
 0x149   : > { %v12084_v22 = vadd.f32 %v1742_v1, %v11923_v19 }
 0x14a   : > { %v10196_v18 = vpop.f32.mrf.mxu1  ;;  %v12086_v33 = vpop.f32.mrf.mxu0 }
 0x14c   : > { %v12088_v20 = vpop.f32.mrf.mxu1  ;;  %v10213_v8 = vpop.f32.mrf.mxu0 }
 0x14d   : > { %v12091_v53 = vadd.f32 %v10213_v8, %v11931_v9 }
 0x14e   : > { %v10207_v2 = vpop.f32.mrf.mxu1  ;;  %v1904_v0 = vpop.f32.mrf.mxu0 }
 0x14f   : > { %v12094_v6 = vadd.f32 %v10207_v2, %v11937_v4  ;;  %v12097_v3 = vadd.f32 %v1904_v0, %v11939_v50  ;;  %v13352_v50 = vmov 0.0  }
 0x150   : > { %v1850_v28 = vpop.f32.mrf.mxu1  ;;  %v10214_v19 = vpop.f32.mrf.mxu0  ;;  %10467 = vmatprep.mubr.msk.f32.mxu0 %vm11193_vm3, %v13352_v50  ;;  %10476 = vmatprep.mubr.msk.f32.mxu1 %vm11193_vm3, %v13352_v50  ;;  %5701 = vst.msk [vmem:[#allocation3 + $0x10] sm:$0xff] %vm5697_vm8, %v13352_v50  ;;  %5698 = vst.msk [vmem:[#allocation3] sm:$0xff] %vm5697_vm8, %v13352_v50 }
 0x151   : > { %v12100_v1 = vadd.f32 %v1850_v28, %v11947_v13  ;;  %5702 = vst.msk [vmem:[#allocation3 + $0x18] sm:$0x3] %vm5699_vm9, %v13352_v50  ;;  %5700 = vst.msk [vmem:[#allocation3 + $0x8] sm:$0x3] %vm5699_vm9, %v13352_v50 }
 0x152   : > { %v10208_v58 = vpop.f32.mrf.mxu1  ;;  %v12102_v18 = vpop.f32.mrf.mxu0  ;;  %5703 = vst.msk [vmem:[#allocation3 + $0x20] sm:$0xff] %vm5697_vm8, %v13352_v50  ;;  %5705 = vst.msk [vmem:[#allocation3 + $0x30] sm:$0xff] %vm5697_vm8, %v13352_v50 }
 0x153   : > { %13349 = vst [vmem:[#allocation19_spill] sm:$0xff] %v12102_v18  ;;  %5704 = vst.msk [vmem:[#allocation3 + $0x28] sm:$0x3] %vm5699_vm9, %v13352_v50 }
 0x154   : > { %v12104_v62 = vpop.f32.mrf.mxu1  ;;  %v10225_v9 = vpop.f32.mrf.mxu0  ;;  %5706 = vst.msk [vmem:[#allocation3 + $0x38] sm:$0x3] %vm5699_vm9, %v13352_v50  ;;  %5708 = vst.msk [vmem:[#allocation3 + $0x48] sm:$0x3] %vm5699_vm9, %v13352_v50 }
 0x155   : > { %13350 = vst [vmem:[#allocation20_spill] sm:$0xff] %v12104_v62  ;;  %v12107_v8 = vadd.f32 %v10225_v9, %v11955_v15  ;;  %5707 = vst.msk [vmem:[#allocation3 + $0x40] sm:$0xff] %vm5697_vm8, %v13352_v50 }
 0x156   : > { %v10219_v39 = vpop.f32.mrf.mxu1  ;;  %v12109_v2 = vpop.f32.mrf.mxu0  ;;  %5709 = vst.msk [vmem:[#allocation3 + $0x50] sm:$0xff] %vm5697_vm8, %v13352_v50  ;;  %5711 = vst.msk [vmem:[#allocation3 + $0x60] sm:$0xff] %vm5697_vm8, %v13352_v50 }
 0x157   : > { %v12112_v4 = vadd.f32 %v10219_v39, %v11961_v24  ;;  %5710 = vst.msk [vmem:[#allocation3 + $0x58] sm:$0x3] %vm5699_vm9, %v13352_v50  ;;  %5712 = vst.msk [vmem:[#allocation3 + $0x68] sm:$0x3] %vm5699_vm9, %v13352_v50 }
 0x158   : > { %v1958_v13 = vpop.f32.mrf.mxu1  ;;  %v10226_v0 = vpop.f32.mrf.mxu0  ;;  %5713 = vst.msk [vmem:[#allocation3 + $0x70] sm:$0xff] %vm5697_vm8, %v13352_v50  ;;  %5715 = vst.msk [vmem:[#allocation3 + $0x80] sm:$0xff] %vm5697_vm8, %v13352_v50 }
 0x159   : > { %13351 = vst [vmem:[#allocation21_spill] sm:$0xff] %v12112_v4  ;;  %v12119_v28 = vadd.f32 %v1958_v13, %v11971_v27  ;;  %5714 = vst.msk [vmem:[#allocation3 + $0x78] sm:$0x3] %vm5699_vm9, %v13352_v50 }
 0x15a   : > { %v10220_v15 = vpop.f32.mrf.mxu1  ;;  %v12121_v19 = vpop.f32.mrf.mxu0  ;;  %5716 = vst.msk [vmem:[#allocation3 + $0x88] sm:$0x3] %vm5699_vm9, %v13352_v50 }
 0x15b   : > { %13353 = vst [vmem:[#allocation22_spill] sm:$0xff] %v12121_v19  ;;  %7928 = vst.msk [vmem:[#allocation4] sm:$0x3f] %vm7927_vm11, %v13352_v50 }
 0x15c   : > { %v12123_v58 = vpop.f32.mrf.mxu1  ;;  %v10237_v9 = vpop.f32.mrf.mxu0  ;;  %7929 = vst.msk [vmem:[#allocation4 + $0x8] sm:$0x3f] %vm7927_vm11, %v13352_v50  ;;  %7930 = vst.msk [vmem:[#allocation4 + $0x10] sm:$0x3f] %vm7927_vm11, %v13352_v50 }
 0x15d   : > { %13354 = vst [vmem:[#allocation23_spill] sm:$0xff] %v12123_v58  ;;  %v12126_v24 = vadd.f32 %v10237_v9, %v11979_v35  ;;  %7931 = vst.msk [vmem:[#allocation4 + $0x18] sm:$0x3f] %vm7927_vm11, %v13352_v50 }
 0x15e   : > { %v10231_v39 = vpop.f32.mrf.mxu1  ;;  %v12128_v49 = vpop.f32.mrf.mxu0  ;;  %7932 = vst.msk [vmem:[#allocation4 + $0x20] sm:$0x3f] %vm7927_vm11, %v13352_v50 }
 0x15f   : > { %v12131_v14 = vadd.f32 %v10231_v39, %v11985_v45 }
 0x160   : > { %v12133_v17 = vpop.f32.mrf.mxu1  ;;  %v10238_v0 = vpop.f32.mrf.mxu0 }
 0x161   : > { %13355 = vst [vmem:[#allocation24_spill] sm:$0xff] %v12131_v14 }
 0x162   : > { %v10232_v27 = vpop.f32.mrf.mxu1  ;;  %v12135_v13 = vpop.f32.mrf.mxu0 }
 0x163   : > { %13356 = vst [vmem:[#allocation25_spill] sm:$0xff] %v12135_v13 }
 0x164   : > { %v12137_v15 = vpop.f32.mrf.mxu1  ;;  %v10249_v11 = vpop.f32.mrf.mxu0 }
 0x165   : > { %13357 = vst [vmem:[#allocation26_spill] sm:$0xff] %v12137_v15  ;;  %v12140_v59 = vadd.f32 %v10249_v11, %v12003_v61 }
 0x166   : > { %v10243_v35 = vpop.f32.mrf.mxu1  ;;  %v12142_v9 = vpop.f32.mrf.mxu0 }
 0x167   : > { %v12145_v19 = vadd.f32 %v10243_v35, %v12009_v38 }
 0x168   : > { %v12147_v45 = vpop.f32.mrf.mxu1  ;;  %v10250_v39 = vpop.f32.mrf.mxu0 }
 0x169   : > { %13358 = vst [vmem:[#allocation27_spill] sm:$0xff] %v12145_v19 }
 0x16a   : > { %v10244_v14 = vpop.f32.mrf.mxu1  ;;  %v12149_v0 = vpop.f32.mrf.mxu0 }
 0x16b   : > { %13359 = vst [vmem:[#allocation28_spill] sm:$0xff] %v12149_v0 }
 0x16c   : > { %v12151_v27 = vpop.f32.mrf.mxu1  ;;  %v10261_v13 = vpop.f32.mrf.mxu0 }
 0x16d   : > { %13360 = vst [vmem:[#allocation29_spill] sm:$0xff] %v12151_v27  ;;  %v12154_v15 = vadd.f32 %v10261_v13, %v12026_v10 }
 0x16e   : > { %v10255_v11 = vpop.f32.mrf.mxu1  ;;  %v12156_v61 = vpop.f32.mrf.mxu0 }
 0x16f   : > { %v12159_v36 = vadd.f32 %v10255_v11, %v12029_v44 }
 0x170   : > { %v12161_v38 = vpop.f32.mrf.mxu1  ;;  %v10262_v35 = vpop.f32.mrf.mxu0 }
 0x171   : > { %13361 = vst [vmem:[#allocation30_spill] sm:$0xff] %v12159_v36 }
 0x172   : > { %v10256_v19 = vpop.f32.mrf.mxu1  ;;  %v12163_v39 = vpop.f32.mrf.mxu0 }
 0x173   : > { %13362 = vst [vmem:[#allocation31_spill] sm:$0xff] %v12163_v39 }
 0x174   : > { %v12165_v14 = vpop.f32.mrf.mxu1  ;;  %v10273_v0 = vpop.f32.mrf.mxu0 }
 0x175   : > { %13363 = vst [vmem:[#allocation32_spill] sm:$0xff] %v12165_v14  ;;  %v12168_v27 = vadd.f32 %v10273_v0, %v12044_v46 }
 0x176   : > { %v10267_v10 = vpop.f32.mrf.mxu1  ;;  %v2529_v13 = vpop.f32.mrf.mxu0 }
 0x177   : > { %v12171_v58 = vadd.f32 %v10267_v10, %v12046_v56  ;;  %v12174_v44 = vadd.f32 %v2529_v13, %v12050_v57 }
 0x178   : > { %v12176_v11 = vpop.f32.mrf.mxu1  ;;  %v10274_v35 = vpop.f32.mrf.mxu0 }
 0x179   : > { %13364 = vst [vmem:[#allocation33_spill] sm:$0xff] %v12171_v58 }
 0x17a   : > { %v10268_v19 = vpop.f32.mrf.mxu1  ;;  %v12178_v36 = vpop.f32.mrf.mxu0 }
 0x17c   : > { %v12180_v39 = vpop.f32.mrf.mxu1  ;;  %v10285_v14 = vpop.f32.mrf.mxu0 }
 0x17d   : > { %13365 = vst [vmem:[#allocation34_spill] sm:$0xff] %v12180_v39  ;;  %v12183_v46 = vadd.f32 %v10285_v14, %v12059_v41 }
 0x17e   : > { %v12185_v0 = vpop.f32.mrf.mxu1  ;;  %v2637_v40 = vpop.f32.mrf.mxu0 }
 0x17f   : > { %v12188_v56 = vadd.f32 %v2637_v40, %v12065_v42 }
 0x180   : > { %v2583_v57 = vpop.f32.mrf.mxu1  ;;  %v10286_v10 = vpop.f32.mrf.mxu0 }
 0x181   : > { %v12191_v13 = vadd.f32 %v2583_v57, %v12068_v30 }
 0x182   : > { %v10280_v35 = vpop.f32.mrf.mxu1  ;;  %v12193_v19 = vpop.f32.mrf.mxu0 }
 0x184   : > { %v12195_v58 = vpop.f32.mrf.mxu1  ;;  %v10297_v39 = vpop.f32.mrf.mxu0 }
 0x185   : > { %v12198_v41 = vadd.f32 %v10297_v39, %v12075_v5 }
 0x186   : > { %v12200_v14 = vpop.f32.mrf.mxu1  ;;  %v2745_v4 = vpop.f32.mrf.mxu0 }
 0x187   : > { %v12203_v40 = vadd.f32 %v2745_v4, %v12081_v47 }
 0x188   : > { %v2691_v42 = vpop.f32.mrf.mxu1  ;;  %v10298_v10 = vpop.f32.mrf.mxu0 }
 0x189   : > { %v12206_v30 = vadd.f32 %v2691_v42, %v12084_v22 }
 0x18a   : > { %v10292_v57 = vpop.f32.mrf.mxu1  ;;  %v12208_v35 = vpop.f32.mrf.mxu0 }
 0x18b   : > { %13366 = vst [vmem:[#allocation35_spill] sm:$0xff] %v12208_v35 }
 0x18c   : > { %v12210_v18 = vpop.f32.mrf.mxu1  ;;  %v10309_v16 = vpop.f32.mrf.mxu0 }
 0x18d   : > { %v12213_v5 = vadd.f32 %v10309_v16, %v12091_v53  ;;  %v2013_v16 = vadd.f32 %v12109_v2, %v11963_v25  ;;  %v2121_v25 = vadd.f32 %v12128_v49, %v11987_v48 }
 0x18e   : > { %v12215_v39 = vpop.f32.mrf.mxu1  ;;  %v2853_v62 = vpop.f32.mrf.mxu0 }
 0x18f   : > { %13367 = vst [vmem:[#allocation36_spill] sm:$0xff] %v12213_v5  ;;  %v12218_v47 = vadd.f32 %v2853_v62, %v12097_v3 }
 0x190   : > { %v2799_v4 = vpop.f32.mrf.mxu1  ;;  %v10310_v10 = vpop.f32.mrf.mxu0 }
 0x191   : > { %13368 = vst [vmem:[#allocation37_spill] sm:$0xff] %v12218_v47  ;;  %v12221_v22 = vadd.f32 %v2799_v4, %v12100_v1 }
 0x192   : > { %v10304_v42 = vpop.f32.mrf.mxu1  ;;  %v12223_v57 = vpop.f32.mrf.mxu0 }
 0x193   : > { %13369 = vst [vmem:[#allocation38_spill] sm:$0xff] %v12223_v57 }
 0x194   : > { %v12225_v21 = vpop.f32.mrf.mxu1  ;;  %v10321_v35 = vpop.f32.mrf.mxu0 }
 0x195   : > { %13370 = vst [vmem:[#allocation39_spill] sm:$0xff] %v12225_v21  ;;  %v12230_v53 = vadd.f32 %v10321_v35, %v12107_v8 }
 0x196   : > { %v12232_v5 = vpop.f32.mrf.mxu1  ;;  %v2961_v62 = vpop.f32.mrf.mxu0 }
 0x197   : > { %v12234_v3 = vadd.f32 %v2961_v62, %v2013_v16  ;;  %v2067_v16 = vadd.f32 %v12133_v17, %v11995_v43  ;;  %v2175_v17 = vadd.f32 %v12147_v45, %v12018_v12  ;;  %v2283_v45 = vadd.f32 %v12161_v38, %v12036_v32 }
 0x198   : > { %v2907_v10 = vpop.f32.mrf.mxu1  ;;  %v10322_v1 = vpop.f32.mrf.mxu0 }
 0x199   : > { %13371 = vst [vmem:[#allocation40_spill] sm:$0xff] %v12234_v3  ;;  %v12237_v4 = vadd.f32 %v2907_v10, %v12119_v28 }
 0x19a   : > { %v10316_v42 = vpop.f32.mrf.mxu1  ;;  %v12239_v57 = vpop.f32.mrf.mxu0 }
 0x19b   : > { %13372 = vst [vmem:[#allocation41_spill] sm:$0xff] %v12239_v57 }
 0x19c   : > { %v12241_v47 = vpop.f32.mrf.mxu1  ;;  %v10333_v21 = vpop.f32.mrf.mxu0 }
 0x19d   : > { %v12246_v8 = vadd.f32 %v10333_v21, %v12126_v24  ;;  %v2229_v21 = vadd.f32 %v12142_v9, %v12011_v37 }
 0x19e   : > { %v12248_v2 = vpop.f32.mrf.mxu1  ;;  %v3069_v35 = vpop.f32.mrf.mxu0 }
 0x19f   : > { %v12252_v28 = vadd.f32 %v3069_v35, %v2121_v25 }
 0x1a0   : > { %v3015_v62 = vpop.f32.mrf.mxu1  ;;  %v10334_v10 = vpop.f32.mrf.mxu0 }
 0x1a1   : > { %v12254_v1 = vadd.f32 %v3015_v62, %v2067_v16 }
 0x1a2   : > { %v10328_v42 = vpop.f32.mrf.mxu1  ;;  %v12256_v57 = vpop.f32.mrf.mxu0 }
 0x1a3   : > { %13373 = vst [vmem:[#allocation42_spill] sm:$0xff] %v12256_v57 }
 0x1a4   : > { %v12258_v3 = vpop.f32.mrf.mxu1  ;;  %v10345_v48 = vpop.f32.mrf.mxu0 }
 0x1a5   : > { %v12263_v49 = vadd.f32 %v10345_v48, %v12140_v59  ;;  %v2337_v59 = vadd.f32 %v12156_v61, %v12031_v26 }
 0x1a6   : > { %v12265_v24 = vpop.f32.mrf.mxu1  ;;  %v3177_v43 = vpop.f32.mrf.mxu0 }
 0x1a7   : > { %v12269_v25 = vadd.f32 %v3177_v43, %v2229_v21 }
 0x1a8   : > { %v3123_v35 = vpop.f32.mrf.mxu1  ;;  %v10346_v16 = vpop.f32.mrf.mxu0 }
 0x1a9   : > { %v12271_v62 = vadd.f32 %v3123_v35, %v2175_v17 }
 0x1aa   : > { %v10340_v10 = vpop.f32.mrf.mxu1  ;;  %v12273_v42 = vpop.f32.mrf.mxu0 }
 0x1ab   : > { %13374 = vst [vmem:[#allocation43_spill] sm:$0xff] %v12273_v42 }
 0x1ac   : > { %v12275_v57 = vpop.f32.mrf.mxu1  ;;  %v10357_v37 = vpop.f32.mrf.mxu0 }
 0x1ad   : > { %v12280_v9 = vadd.f32 %v10357_v37, %v12154_v15  ;;  %v2391_v37 = vadd.f32 %v12176_v11, %v12052_v31  ;;  %v3358_v31 = vadd.f32 %v12185_v0, %v12062_v63 }
 0x1ae   : > { %v12282_v48 = vpop.f32.mrf.mxu1  ;;  %v3285_v12 = vpop.f32.mrf.mxu0 }
 0x1af   : > { %13375 = vst [vmem:[#allocation44_spill] sm:$0xff] %v12280_v9  ;;  %v12286_v21 = vadd.f32 %v3285_v12, %v2337_v59 }
 0x1b0   : > { %v3231_v43 = vpop.f32.mrf.mxu1  ;;  %v10358_v17 = vpop.f32.mrf.mxu0 }
 0x1b1   : > { %v12288_v35 = vadd.f32 %v3231_v43, %v2283_v45  ;;  %v1584_v43 = vadd.f32 %v12054_v34, %v11881_v51  ;;  %v12306_v17 = vld [vmem:[%s13320_s2] ss:$0 sm:$0xff] }
 0x1b2   : > { %v10352_v16 = vpop.f32.mrf.mxu1  ;;  %v12290_v10 = vpop.f32.mrf.mxu0 }
 0x1b3   : > { %13376 = vst [vmem:[#allocation45_spill] sm:$0xff] %v12290_v10 }
 0x1b4   : > { %v12292_v42 = vpop.f32.mrf.mxu1  ;;  %v10369_v26 = vpop.f32.mrf.mxu0 }
 0x1b5   : > { %v4352_v45 = vadd.f32 %v10369_v26, %v12168_v27  ;;  %v4525_v26 = vlaneseq }
 0x1b6   : > { %v12294_v15 = vpop.f32.mrf.mxu1  ;;  %v3526_v61 = vpop.f32.mrf.mxu0 }
 0x1b7   : > { %13377 = vst [vmem:[#allocation46_spill] sm:$0xff] %v12294_v15  ;;  %v4350_v11 = vadd.f32 %v3526_v61, %v12174_v44  ;;  %v4407_v51 = vadd.f32 %v12306_v17, %v4352_v45 }
 0x1b8   : > { %v3339_v9 = vpop.f32.mrf.mxu1  ;;  %v10370_v32 = vpop.f32.mrf.mxu0 }
 0x1b9   : > { %v12298_v38 = vadd.f32 %v3339_v9, %v2391_v37  ;;  %v3354_v9 = vadd.f32 %v12178_v36, %v1584_v43  ;;  %v1638_v32 = vadd.f32 %v12072_v29, %v11905_v23  ;;  %v4405_v15 = vadd.f32 %v12306_v17, %v4350_v11 }
 0x1ba   : > { %v10364_v59 = vpop.f32.mrf.mxu1  ;;  %v3529_v12 = vpop.f32.mrf.mxu0  ;;  %v1692_v36 = vadd.f32 %v12070_v55, %v11903_v60  ;;  %v12323_v43 = vshrl.u32 %v4525_v26, 7 }
 0x1bb   : > { %13378 = vst [vmem:[#allocation47_spill] sm:$0xff] %v12298_v38  ;;  %v4351_v59 = vadd.f32 %v3529_v12, %v3354_v9  ;;  %v3357_v0 = vadd.f32 %v12195_v58, %v1638_v32  ;;  %v4453_v58 = vmax.f32 %v4405_v15, 0.0  ;;  %v1746_v15 = vadd.f32 %v12088_v20, %v11929_v7  ;;  %v13386_v7 = vld [vmem:[#allocation36_spill] sm:$0xff] }
 0x1bc   : > { %v12308_v16 = vpop.f32.mrf.mxu1  ;;  %v10381_v10 = vpop.f32.mrf.mxu0 }
 0x1bd   : > { %13379 = vst [vmem:[#allocation48_spill] sm:$0xff] %v12308_v16  ;;  %v4358_v23 = vadd.f32 %v10381_v10, %v12183_v46  ;;  %v3360_v46 = vadd.f32 %v12193_v19, %v1692_v36 }
 0x1be   : > { %v10375_v37 = vpop.f32.mrf.mxu1  ;;  %v3634_v27 = vpop.f32.mrf.mxu0 }
 0x1bf   : > { %v4355_v34 = vadd.f32 %v10375_v37, %v3358_v31  ;;  %v4455_v31 = vmax.f32 %v4407_v51, 0.0 }
 0x1c0   : > { %v3580_v38 = vpop.f32.mrf.mxu1  ;;  %v10382_v16 = vpop.f32.mrf.mxu0 }
 0x1c1   : > { %v4410_v63 = vadd.f32 %v12306_v17, %v4355_v34  ;;  %v4353_v44 = vadd.f32 %v3580_v38, %v12191_v13  ;;  %v3364_v16 = vadd.f32 %v12200_v14, %v12078_v54  ;;  %v4406_v13 = vadd.f32 %v12306_v17, %v4351_v59 }
 0x1c2   : > { %v10376_v61 = vpop.f32.mrf.mxu1  ;;  %v3637_v45 = vpop.f32.mrf.mxu0  ;;  %v4356_v38 = vadd.f32 %v3634_v27, %v12188_v56  ;;  %v12334_v34 = vand.u32 127, %v4525_v26  ;;  %v4529_v54 = vmul.u32 2, %v12323_v43  ;;  %v4413_v14 = vadd.f32 %v12306_v17, %v4358_v23 }
 0x1c3   : > { %v4458_v29 = vmax.f32 %v4410_v63, 0.0  ;;  %v4408_v12 = vadd.f32 %v12306_v17, %v4353_v44  ;;  %v4454_v19 = vmax.f32 %v4406_v13, 0.0  ;;  %v4357_v44 = vadd.f32 %v3637_v45, %v3360_v46 }
 0x1c4   : > { %v3583_v60 = vpop.f32.mrf.mxu1  ;;  %v10393_v55 = vpop.f32.mrf.mxu0  ;;  %v4411_v59 = vadd.f32 %v12306_v17, %v4356_v38  ;;  %vm12354_vm5 = vcmp.eq.s32.totalorder %v12334_v34, %v4529_v54  ;;  %v4461_v20 = vmax.f32 %v4413_v14, 0.0 }
 0x1c5   : > { %v12331_v11 = vmax.f32 %v4455_v31, %v4458_v29  ;;  %v4456_v9 = vmax.f32 %v4408_v12, 0.0  ;;  %v4354_v37 = vadd.f32 %v3583_v60, %v3357_v0  ;;  %v3363_v31 = vadd.f32 %v12210_v18, %v1746_v15  ;;  %v13384_v15 = vld [vmem:[#allocation20_spill] sm:$0xff] }
 0x1c6   : > { %v10387_v10 = vpop.f32.mrf.mxu1  ;;  %v3742_v51 = vpop.f32.mrf.mxu0  ;;  %v4364_v23 = vadd.f32 %v10393_v55, %v12198_v41  ;;  %v1800_v18 = vadd.f32 %v12086_v33, %v11927_v52  ;;  %v3370_v41 = vadd.f32 %v12215_v39, %v12094_v6  ;;  %v12376_v6 = vsel %vm12354_vm5, 1.0, %v13352_v50 }
 0x1c7   : > { %v12338_v32 = vmax.f32 %v4453_v58, %v4456_v9  ;;  %v4409_v56 = vadd.f32 %v12306_v17, %v4354_v37  ;;  %v4361_v27 = vadd.f32 %v10387_v10, %v3364_v16  ;;  %10462 = vmatpush3.msk.msra.mxu0 %vm4541_vm4, %v12331_v11  ;;  %v4362_v38 = vadd.f32 %v3742_v51, %v12203_v40  ;;  %v13382_v10 = vld [vmem:[#allocation35_spill] sm:$0xff] }
 0x1c8   : > { %v3688_v26 = vpop.f32.mrf.mxu1  ;;  %v10394_v63 = vpop.f32.mrf.mxu0  ;;  %10463 = vmatprep.subr.mxu0 %v13352_v50  ;;  %v4412_v58 = vadd.f32 %v12306_v17, %v4357_v44  ;;  %v3366_v14 = vadd.f32 %v13382_v10, %v1800_v18  ;;  %v4419_v52 = vadd.f32 %v12306_v17, %v4364_v23  ;;  %v13385_v23 = vld [vmem:[#allocation39_spill] sm:$0xff] }
 0x1c9   : > { %v4457_v36 = vmax.f32 %v4409_v56, 0.0  ;;  %v4416_v0 = vadd.f32 %v12306_v17, %v4361_v27  ;;  %v4359_v61 = vadd.f32 %v3688_v26, %v12206_v30  ;;  %v4459_v30 = vmax.f32 %v4411_v59, 0.0  ;;  %v13383_v27 = vld [vmem:[#allocation9_spill] sm:$0xff] }
 0x1ca   : > { %v10388_v29 = vpop.f32.mrf.mxu1  ;;  %v3745_v12 = vpop.f32.mrf.mxu0  ;;  %v4417_v59 = vadd.f32 %v12306_v17, %v4362_v38  ;;  %v13387_v38 = vld [vmem:[#allocation8_spill] sm:$0xff] }
 0x1cb   : > { %v12358_v45 = vmax.f32 %v4454_v19, %v4457_v36  ;;  %v4464_v16 = vmax.f32 %v4416_v0, 0.0  ;;  %v4414_v13 = vadd.f32 %v12306_v17, %v4359_v61  ;;  %v1854_v19 = vadd.f32 %v13384_v15, %v13383_v27  ;;  %v13391_v15 = vld [vmem:[#allocation38_spill] sm:$0xff] }
 0x1cc   : > { %v3691_v60 = vpop.f32.mrf.mxu1  ;;  %v10405_v55 = vpop.f32.mrf.mxu0  ;;  %v4363_v26 = vadd.f32 %v3745_v12, %v3366_v14  ;;  %v4460_v36 = vmax.f32 %v4412_v58, 0.0  ;;  %v13389_v58 = vld [vmem:[#allocation21_spill] sm:$0xff] }
 0x1cd   : > { %v12367_v9 = vmax.f32 %v4461_v20, %v4464_v16  ;;  %v4462_v37 = vmax.f32 %v4414_v13, 0.0  ;;  %v4360_v46 = vadd.f32 %v3691_v60, %v3363_v31  ;;  %10464 = vmatpush3.msra.mxu0 %v12358_v45  ;;  %v3369_v29 = vadd.f32 %v13385_v23, %v1854_v19 }
 0x1ce   : > { %v10399_v33 = vpop.f32.mrf.mxu1  ;;  %v3850_v56 = vpop.f32.mrf.mxu0  ;;  %10465 = vmatprep.subr.mxu0 %v13352_v50  ;;  %v4370_v20 = vadd.f32 %v10405_v55, %v13386_v7  ;;  %v4467_v13 = vmax.f32 %v4419_v52, 0.0  ;;  %v4418_v55 = vadd.f32 %v12306_v17, %v4363_v26 }
 0x1cf   : > { %v12378_v40 = vmax.f32 %v4459_v30, %v4462_v37  ;;  %v4415_v39 = vadd.f32 %v12306_v17, %v4360_v46  ;;  %v4367_v51 = vadd.f32 %v10399_v33, %v3370_v41  ;;  %10466 = vmatpush3.msra.mxu0 %v12338_v32  ;;  %10471 = vmatpush3.msk.msra.mxu1 %vm4541_vm4, %v12367_v9  ;;  %v4465_v46 = vmax.f32 %v4417_v59, 0.0 }
 0x1d0   : > { %v3796_v63 = vpop.f32.mrf.mxu1  ;;  %v10406_v44 = vpop.f32.mrf.mxu0  ;;  %10472 = vmatprep.subr.mxu1 %v13352_v50  ;;  %10479 = vmatprep.subr.mxu0 %v13352_v50  ;;  %v3376_v37 = vadd.f32 %v12232_v5, %v13389_v58 }
 0x1d1   : > { %v4463_v0 = vmax.f32 %v4415_v39, 0.0  ;;  %v4422_v61 = vadd.f32 %v12306_v17, %v4367_v51  ;;  %v4365_v31 = vadd.f32 %v3796_v63, %v12221_v22  ;;  %10468 = vmatmul.mubr.msk.f32.vlgmr.msra.gmra.mxu0 %vm4537_vm6, %v12376_v6  ;;  %v13388_v22 = vld [vmem:[#allocation19_spill] sm:$0xff]  ;;  %v13390_v39 = vld [vmem:[#allocation37_spill] sm:$0xff]  ;;  %v4425_v63 = vadd.f32 %v12306_v17, %v4370_v20 }
 0x1d2   : > { %v10400_v12 = vpop.f32.mrf.mxu1  ;;  %v3853_v16 = vpop.f32.mrf.mxu0  ;;  %10485 = vmatprep.mubr.msk.f32.mxu0 %vm11193_vm3, %v13352_v50  ;;  %v1908_v60 = vadd.f32 %v13388_v22, %v13387_v38  ;;  %v4368_v52 = vadd.f32 %v3850_v56, %v13390_v39  ;;  %v13392_v56 = vld [vmem:[#allocation11_spill] sm:$0xff]  ;;  %v13396_v39 = vld [vmem:[#allocation24_spill] sm:$0xff] }
 0x1d3   : > { %v12397_v18 = vmax.f32 %v4460_v36, %v4463_v0  ;;  %v4470_v41 = vmax.f32 %v4422_v61, 0.0  ;;  %v4420_v30 = vadd.f32 %v12306_v17, %v4365_v31  ;;  %v13393_v0 = vld [vmem:[#allocation23_spill] sm:$0xff]  ;;  %v4466_v31 = vmax.f32 %v4418_v55, 0.0  ;;  %v13394_v55 = vld [vmem:[#allocation10_spill] sm:$0xff] }
 0x1d4   : > { %v3799_v10 = vpop.f32.mrf.mxu1  ;;  %v10417_v14 = vpop.f32.mrf.mxu0  ;;  %v3372_v19 = vadd.f32 %v13391_v15, %v1908_v60  ;;  %v1962_v61 = vadd.f32 %v13393_v0, %v13392_v56  ;;  %v4423_v20 = vadd.f32 %v12306_v17, %v4368_v52  ;;  %v4473_v60 = vmax.f32 %v4425_v63, 0.0 }
 0x1d5   : > { %v12405_v33 = vmax.f32 %v4467_v13, %v4470_v41  ;;  %v4468_v51 = vmax.f32 %v4420_v30, 0.0  ;;  %v4366_v27 = vadd.f32 %v3799_v10, %v3369_v29  ;;  %10473 = vmatpush3.msra.mxu1 %v12397_v18  ;;  %v3382_v52 = vadd.f32 %v12248_v2, %v13396_v39 }
 0x1d6   : > { %v10411_v44 = vpop.f32.mrf.mxu1  ;;  %v3958_v36 = vpop.f32.mrf.mxu0  ;;  %10474 = vmatprep.subr.mxu1 %v13352_v50  ;;  %v4369_v23 = vadd.f32 %v3853_v16, %v3372_v19  ;;  %v3375_v30 = vadd.f32 %v12241_v47, %v1962_v61  ;;  %v4376_v16 = vadd.f32 %v10417_v14, %v12230_v53  ;;  %v13397_v53 = vld [vmem:[#allocation40_spill] sm:$0xff]  ;;  %v4471_v15 = vmax.f32 %v4423_v20, 0.0 }
 0x1d7   : > { %v12412_v5 = vmax.f32 %v4465_v46, %v4468_v51  ;;  %v4421_v59 = vadd.f32 %v12306_v17, %v4366_v27  ;;  %v4373_v26 = vadd.f32 %v10411_v44, %v3376_v37  ;;  %10475 = vmatpush3.msra.mxu1 %v12378_v40  ;;  %10480 = vmatpush3.msk.msra.mxu0 %vm4541_vm4, %v12405_v33 }
 0x1d8   : > { %v3904_v29 = vpop.f32.mrf.mxu1  ;;  %v10418_v7 = vpop.f32.mrf.mxu0  ;;  %10481 = vmatprep.subr.mxu0 %v13352_v50  ;;  %10488 = vmatprep.subr.mxu1 %v13352_v50  ;;  %v4424_v47 = vadd.f32 %v12306_v17, %v4369_v23  ;;  %v4374_v14 = vadd.f32 %v3958_v36, %v13397_v53  ;;  %v4431_v56 = vadd.f32 %v12306_v17, %v4376_v16  ;;  %v13399_v23 = vld [vmem:[#allocation13_spill] sm:$0xff] }
 0x1d9   : > { %v4469_v12 = vmax.f32 %v4421_v59, 0.0  ;;  %v4428_v13 = vadd.f32 %v12306_v17, %v4373_v26  ;;  %v4371_v41 = vadd.f32 %v3904_v29, %v12237_v4  ;;  %10477 = vmatmul.mubr.msk.f32.vlgmr.msra.gmra.mxu1 %vm4537_vm6, %v12376_v6  ;;  %v13395_v4 = vld [vmem:[#allocation22_spill] sm:$0xff]  ;;  %v13398_v59 = vld [vmem:[#allocation41_spill] sm:$0xff] }
 0x1da   : > { %v10412_v38 = vpop.f32.mrf.mxu1  ;;  %v3961_v22 = vpop.f32.mrf.mxu0  ;;  %10494 = vmatprep.mubr.msk.f32.mxu1 %vm11193_vm3, %v13352_v50  ;;  %v2016_v10 = vadd.f32 %v13395_v4, %v13394_v55  ;;  %v13400_v29 = vld [vmem:[#allocation26_spill] sm:$0xff]  ;;  %v4472_v20 = vmax.f32 %v4424_v47, 0.0  ;;  %v13401_v47 = vld [vmem:[#allocation12_spill] sm:$0xff] }
 0x1db   : > { %v12431_v58 = vmax.f32 %v4466_v31, %v4469_v12  ;;  %v4476_v37 = vmax.f32 %v4428_v13, 0.0  ;;  %v4426_v46 = vadd.f32 %v12306_v17, %v4371_v41  ;;  %v2070_v7 = vadd.f32 %v13400_v29, %v13399_v23  ;;  %v13405_v29 = vld [vmem:[#allocation15_spill] sm:$0xff] }
 0x1dc   : > { %v3907_v51 = vpop.f32.mrf.mxu1  ;;  %v10429_v27 = vpop.f32.mrf.mxu0  ;;  %v3378_v26 = vadd.f32 %v13398_v59, %v2016_v10  ;;  %v4429_v12 = vadd.f32 %v12306_v17, %v4374_v14  ;;  %v4479_v10 = vmax.f32 %v4431_v56, 0.0  ;;  %v13403_v14 = vld [vmem:[#allocation27_spill] sm:$0xff]  ;;  %v13404_v56 = vld [vmem:[#allocation42_spill] sm:$0xff] }
 0x1dd   : > { %v12440_v19 = vmax.f32 %v4473_v60, %v4476_v37  ;;  %v4474_v63 = vmax.f32 %v4426_v46, 0.0  ;;  %v4372_v44 = vadd.f32 %v3907_v51, %v3375_v30  ;;  %10482 = vmatpush3.msra.mxu0 %v12431_v58  ;;  %v3381_v37 = vadd.f32 %v12258_v3, %v2070_v7  ;;  %v13406_v7 = vld [vmem:[#allocation29_spill] sm:$0xff] }
 0x1de   : > { %v10423_v0 = vpop.f32.mrf.mxu1  ;;  %v4066_v61 = vpop.f32.mrf.mxu0  ;;  %10483 = vmatprep.subr.mxu0 %v13352_v50  ;;  %v4375_v30 = vadd.f32 %v3961_v22, %v3378_v26  ;;  %v4382_v46 = vadd.f32 %v10429_v27, %v12246_v8  ;;  %v3388_v51 = vadd.f32 %v12265_v24, %v13403_v14  ;;  %v4477_v3 = vmax.f32 %v4429_v12, 0.0 }
 0x1df   : > { %v12446_v2 = vmax.f32 %v4471_v15, %v4474_v63  ;;  %v4427_v36 = vadd.f32 %v12306_v17, %v4372_v44  ;;  %v4379_v31 = vadd.f32 %v10423_v0, %v3382_v52  ;;  %10484 = vmatpush3.msra.mxu0 %v12412_v5  ;;  %10489 = vmatpush3.msk.msra.mxu1 %vm4541_vm4, %v12440_v19 }
 0x1e0   : > { %v4012_v13 = vpop.f32.mrf.mxu1  ;;  %v10430_v41 = vpop.f32.mrf.mxu0  ;;  %10490 = vmatprep.subr.mxu1 %v13352_v50  ;;  %10497 = vmatprep.subr.mxu0 %v13352_v50  ;;  %v4380_v8 = vadd.f32 %v4066_v61, %v12252_v28  ;;  %v4430_v63 = vadd.f32 %v12306_v17, %v4375_v30 }
 0x1e1   : > { %v4475_v16 = vmax.f32 %v4427_v36, 0.0  ;;  %v4434_v38 = vadd.f32 %v12306_v17, %v4379_v31  ;;  %v4377_v60 = vadd.f32 %v4012_v13, %v12254_v1  ;;  %10486 = vmatmul.mubr.msk.f32.vlgmr.msra.gmra.mxu0 %vm4537_vm6, %v12376_v6  ;;  %v13402_v1 = vld [vmem:[#allocation25_spill] sm:$0xff]  ;;  %v4437_v36 = vadd.f32 %v12306_v17, %v4382_v46 }
 0x1e2   : > { %v10424_v55 = vpop.f32.mrf.mxu1  ;;  %v4069_v4 = vpop.f32.mrf.mxu0  ;;  %10503 = vmatprep.mubr.msk.f32.mxu0 %vm11193_vm3, %v13352_v50  ;;  %v2124_v53 = vadd.f32 %v13402_v1, %v13401_v47  ;;  %v4435_v12 = vadd.f32 %v12306_v17, %v4380_v8 }
 0x1e3   : > { %v12465_v39 = vmax.f32 %v4472_v20, %v4475_v16  ;;  %v4482_v22 = vmax.f32 %v4434_v38, 0.0  ;;  %v4432_v52 = vadd.f32 %v12306_v17, %v4377_v60  ;;  %v2178_v20 = vadd.f32 %v13406_v7, %v13405_v29 }
 0x1e4   : > { %v4015_v27 = vpop.f32.mrf.mxu1  ;;  %v10441_v15 = vpop.f32.mrf.mxu0  ;;  %v3384_v0 = vadd.f32 %v13404_v56, %v2124_v53  ;;  %v4478_v16 = vmax.f32 %v4430_v63, 0.0  ;;  %v13407_v53 = vld [vmem:[#allocation14_spill] sm:$0xff]  ;;  %v13410_v56 = vld [vmem:[#allocation43_spill] sm:$0xff] }
 0x1e5   : > { %v12474_v44 = vmax.f32 %v4479_v10, %v4482_v22  ;;  %v4480_v59 = vmax.f32 %v4432_v52, 0.0  ;;  %v4378_v26 = vadd.f32 %v4015_v27, %v3381_v37  ;;  %10491 = vmatpush3.msra.mxu1 %v12465_v39  ;;  %v3387_v46 = vadd.f32 %v12275_v57, %v2178_v20 }
 0x1e6   : > { %v10435_v31 = vpop.f32.mrf.mxu1  ;;  %v4174_v23 = vpop.f32.mrf.mxu0  ;;  %10492 = vmatprep.subr.mxu1 %v13352_v50  ;;  %v4381_v13 = vadd.f32 %v4069_v4, %v3384_v0  ;;  %v4388_v55 = vadd.f32 %v10441_v15, %v12263_v49  ;;  %v4485_v22 = vmax.f32 %v4437_v36, 0.0  ;;  %v4483_v57 = vmax.f32 %v4435_v12, 0.0 }
 0x1e7   : > { %v12480_v24 = vmax.f32 %v4477_v3, %v4480_v59  ;;  %v4433_v28 = vadd.f32 %v12306_v17, %v4378_v26  ;;  %v4385_v61 = vadd.f32 %v10435_v31, %v3388_v51  ;;  %10493 = vmatpush3.msra.mxu1 %v12446_v2  ;;  %10498 = vmatpush3.msk.msra.mxu0 %vm4541_vm4, %v12474_v44  ;;  %v13409_v51 = vld [vmem:[#allocation30_spill] sm:$0xff] }
 0x1e8   : > { %v4120_v41 = vpop.f32.mrf.mxu1  ;;  %v10442_v30 = vpop.f32.mrf.mxu0  ;;  %10499 = vmatprep.subr.mxu0 %v13352_v50  ;;  %10506 = vmatprep.subr.mxu1 %v13352_v50  ;;  %v3394_v3 = vadd.f32 %v12282_v48, %v13409_v51  ;;  %v4436_v49 = vadd.f32 %v12306_v17, %v4381_v13  ;;  %v4386_v63 = vadd.f32 %v4174_v23, %v12269_v25  ;;  %v13411_v25 = vld [vmem:[#allocation17_spill] sm:$0xff]  ;;  %v13412_v23 = vld [vmem:[#allocation32_spill] sm:$0xff] }
 0x1e9   : > { %v4481_v38 = vmax.f32 %v4433_v28, 0.0  ;;  %v4440_v60 = vadd.f32 %v12306_v17, %v4385_v61  ;;  %v4383_v37 = vadd.f32 %v4120_v41, %v12271_v62  ;;  %10495 = vmatmul.mubr.msk.f32.vlgmr.msra.gmra.mxu1 %vm4537_vm6, %v12376_v6  ;;  %v13408_v62 = vld [vmem:[#allocation28_spill] sm:$0xff]  ;;  %v4443_v36 = vadd.f32 %v12306_v17, %v4388_v55  ;;  %v13416_v51 = vld [vmem:[#allocation33_spill] sm:$0xff] }
 0x1ea   : > { %v10436_v4 = vpop.f32.mrf.mxu1  ;;  %v4177_v10 = vpop.f32.mrf.mxu0  ;;  %10512 = vmatprep.mubr.msk.f32.mxu1 %vm11193_vm3, %v13352_v50  ;;  %v2232_v14 = vadd.f32 %v13408_v62, %v13407_v53  ;;  %v2286_v7 = vadd.f32 %v13412_v23, %v13411_v25  ;;  %v4484_v20 = vmax.f32 %v4436_v49, 0.0  ;;  %v13413_v55 = vld [vmem:[#allocation44_spill] sm:$0xff]  ;;  %v13415_v62 = vld [vmem:[#allocation31_spill] sm:$0xff]  ;;  %v13419_v25 = vld [vmem:[#allocation18_spill] sm:$0xff] }
 0x1eb   : > { %v12499_v52 = vmax.f32 %v4478_v16, %v4481_v38  ;;  %v4488_v47 = vmax.f32 %v4440_v60, 0.0  ;;  %v4438_v1 = vadd.f32 %v12306_v17, %v4383_v37  ;;  %v4441_v16 = vadd.f32 %v12306_v17, %v4386_v63  ;;  %v13420_v23 = vld [vmem:[#allocation34_spill] sm:$0xff] }
 0x1ec   : > { %v4123_v8 = vpop.f32.mrf.mxu1  ;;  %v10453_v27 = vpop.f32.mrf.mxu0  ;;  %v3390_v0 = vadd.f32 %v13410_v56, %v2232_v14 }
 0x1ed   : > { %v12507_v15 = vmax.f32 %v4485_v22, %v4488_v47  ;;  %v4486_v59 = vmax.f32 %v4438_v1, 0.0  ;;  %v4384_v26 = vadd.f32 %v4123_v8, %v3387_v46  ;;  %10500 = vmatpush3.msra.mxu0 %v12499_v52  ;;  %v3393_v46 = vadd.f32 %v12292_v42, %v2286_v7 }
 0x1ee   : > { %v10447_v31 = vpop.f32.mrf.mxu1  ;;  %v4282_v28 = vpop.f32.mrf.mxu0  ;;  %10501 = vmatprep.subr.mxu0 %v13352_v50  ;;  %v4387_v12 = vadd.f32 %v4177_v10, %v3390_v0  ;;  %v4491_v22 = vmax.f32 %v4443_v36, 0.0  ;;  %v4489_v8 = vmax.f32 %v4441_v16, 0.0  ;;  %v2394_v7 = vadd.f32 %v13420_v23, %v13419_v25  ;;  %v13421_v16 = vld [vmem:[#allocation47_spill] sm:$0xff]  ;;  %v5761_v23 = vld [vmem:[#allocation3 + $0x39] sm:$0x1] }
 0x1ef   : > { %v12514_v48 = vmax.f32 %v4483_v57, %v4486_v59  ;;  %v4439_v61 = vadd.f32 %v12306_v17, %v4384_v26  ;;  %v4391_v29 = vadd.f32 %v10447_v31, %v3394_v3  ;;  %10502 = vmatpush3.msra.mxu0 %v12480_v24  ;;  %10507 = vmatpush3.msk.msra.mxu1 %vm4541_vm4, %v12507_v15  ;;  %v13417_v3 = vld [vmem:[#allocation46_spill] sm:$0xff]  ;;  %v13418_v26 = vld [vmem:[#allocation45_spill] sm:$0xff] }
 0x1f0   : > { %v4392_v13 = vadd.f32 %v4282_v28, %v12286_v21  ;;  %v4228_v41 = vpop.f32.mrf.mxu1  ;;  %v10454_v30 = vpop.f32.mrf.mxu0  ;;  %10508 = vmatprep.subr.mxu1 %v13352_v50  ;;  %10515 = vmatprep.subr.mxu0 %v13352_v50  ;;  %v4394_v21 = vadd.f32 %v10453_v27, %v13413_v55  ;;  %v3400_v42 = vadd.f32 %v13417_v3, %v13416_v51 }
 0x1f1   : > { %v4487_v38 = vmax.f32 %v4439_v61, 0.0  ;;  %v4446_v60 = vadd.f32 %v12306_v17, %v4391_v29  ;;  %v4389_v37 = vadd.f32 %v4228_v41, %v12288_v35  ;;  %10504 = vmatmul.mubr.msk.f32.vlgmr.msra.gmra.mxu0 %vm4537_vm6, %v12376_v6  ;;  %v13414_v35 = vld [vmem:[#allocation16_spill] sm:$0xff]  ;;  %v4442_v57 = vadd.f32 %v12306_v17, %v4387_v12 }
 0x1f2   : > { %v4447_v4 = vadd.f32 %v12306_v17, %v4392_v13  ;;  %v10448_v10 = vpop.f32.mrf.mxu1  ;;  %10521 = vmatprep.mubr.msk.f32.mxu0 %vm11193_vm3, %v13352_v50  ;;  %v2340_v14 = vadd.f32 %v13415_v62, %v13414_v35  ;;  %v4449_v0 = vadd.f32 %v12306_v17, %v4394_v21  ;;  %v4285_v36 = vpop.f32.mrf.mxu0  ;;  %v4533_v35 = vadd.s32 1, %v4529_v54 }
 0x1f3   : > { %v12535_v47 = vmax.f32 %v4484_v20, %v4487_v38  ;;  %v4494_v1 = vmax.f32 %v4446_v60, 0.0  ;;  %v4444_v53 = vadd.f32 %v12306_v17, %v4389_v37  ;;  %v4490_v20 = vmax.f32 %v4442_v57, 0.0  ;;  %v13422_v60 = vld [vmem:[#allocation48_spill] sm:$0xff] }
 0x1f4   : > { %v4231_v49 = vpop.f32.mrf.mxu1  ;;  %v3396_v56 = vadd.f32 %v13418_v26, %v2340_v14  ;;  %v3399_v37 = vadd.f32 %v13422_v60, %v2394_v7  ;;  %v4497_v55 = vmax.f32 %v4449_v0, 0.0  ;;  %vm4534_vm7 = vcmp.eq.s32.totalorder %v12334_v34, %v4533_v35  ;;  %v5754_v34 = vld [vmem:[#allocation3 + $0x1] sm:$0xff]  ;;  %v5757_v26 = vld [vmem:[#allocation3 + $0x19] sm:$0x1] }
 0x1f5   : > { %v12543_v27 = vmax.f32 %v4491_v22, %v4494_v1  ;;  %v4492_v63 = vmax.f32 %v4444_v53, 0.0  ;;  %v4390_v59 = vadd.f32 %v4231_v49, %v3393_v46  ;;  %10509 = vmatpush3.msra.mxu1 %v12535_v47  ;;  %v4495_v1 = vmax.f32 %v4447_v4, 0.0 }
 0x1f6   : > { %v10459_v31 = vpop.f32.mrf.mxu1  ;;  %10510 = vmatprep.subr.mxu1 %v13352_v50  ;;  %v4393_v13 = vadd.f32 %v4285_v36, %v3396_v56  ;;  %v12596_v4 = vsel %vm4534_vm7, 1.0, %v13352_v50 }
 0x1f7   : > { %v12549_v28 = vmax.f32 %v4489_v8, %v4492_v63  ;;  %v4445_v61 = vadd.f32 %v12306_v17, %v4390_v59  ;;  %v4397_v29 = vadd.f32 %v10459_v31, %v3400_v42  ;;  %10511 = vmatpush3.msra.mxu1 %v12514_v48  ;;  %10516 = vmatpush3.msk.msra.mxu0 %vm4541_vm4, %v12543_v27 }
 0x1f8   : > { %v4336_v12 = vpop.f32.mrf.mxu1  ;;  %10517 = vmatprep.subr.mxu0 %v13352_v50  ;;  %10524 = vmatprep.subr.mxu1 %v13352_v50  ;;  %v4448_v62 = vadd.f32 %v12306_v17, %v4393_v13  ;;  %v5759_v13 = vld [vmem:[#allocation3 + $0x29] sm:$0x1] }
 0x1f9   : > { %v4493_v41 = vmax.f32 %v4445_v61, 0.0  ;;  %v4452_v30 = vadd.f32 %v12306_v17, %v4397_v29  ;;  %v4395_v38 = vadd.f32 %v4336_v12, %v13421_v16  ;;  %10513 = vmatmul.mubr.msk.f32.vlgmr.msra.gmra.mxu1 %vm4537_vm6, %v12376_v6 }
 0x1fa   : > { %v10460_v46 = vpop.f32.mrf.mxu1  ;;  %10530 = vmatprep.mubr.msk.f32.mxu1 %vm11193_vm3, %v13352_v50  ;;  %v4496_v43 = vmax.f32 %v4448_v62, 0.0 }
 0x1fb   : > { %v12566_v21 = vmax.f32 %v4490_v20, %v4493_v41  ;;  %v4500_v10 = vmax.f32 %v4452_v30, 0.0  ;;  %v4450_v22 = vadd.f32 %v12306_v17, %v4395_v38 }
 0x1fc   : > { %v4339_v53 = vpop.f32.mrf.mxu1 }
 0x1fd   : > { %v12572_v14 = vmax.f32 %v4497_v55, %v4500_v10  ;;  %v4498_v51 = vmax.f32 %v4450_v22, 0.0  ;;  %v4396_v3 = vadd.f32 %v4339_v53, %v3399_v37  ;;  %10518 = vmatpush3.msra.mxu0 %v12566_v21  ;;  %v5765_v55 = vld [vmem:[#allocation3 + $0x59] sm:$0x1] }
 0x1fe   : > { %10519 = vmatprep.subr.mxu0 %v13352_v50 }
 0x1ff   : > { %v12576_v42 = vmax.f32 %v4495_v1, %v4498_v51  ;;  %v4451_v57 = vadd.f32 %v12306_v17, %v4396_v3  ;;  %10520 = vmatpush3.msra.mxu0 %v12549_v28  ;;  %10525 = vmatpush3.msk.msra.mxu1 %vm4541_vm4, %v12572_v14  ;;  %v5763_v1 = vld [vmem:[#allocation3 + $0x49] sm:$0x1] }
 0x200   : > { %10522 = vmatmul.mubr.msk.f32.vlgmr.msra.gmra.mxu0 %vm4537_vm6, %v12376_v6  ;;  %10533 = vmatprep.subr.mxu0 %v13352_v50 }
 0x201   : > { %v4499_v54 = vmax.f32 %v4451_v57, 0.0  ;;  %10534 = vmatpush3.msk.msra.mxu0 %vm4541_vm4, %v12331_v11  ;;  %10526 = vmatprep.subr.mxu1 %v13352_v50  ;;  %v12729_v11 = vld [vmem:[%s13321_s3 + $0x8] sm:$0xff]  }
 0x202   : > { %10535 = vmatprep.subr.mxu0 %v13352_v50  ;;  %10539 = vmatprep.mubr.msk.f32.mxu0 %vm11193_vm3, %v13352_v50  ;;  %v5769_v57 = vld [vmem:[#allocation3 + $0x79] sm:$0x1] }
 0x203   : > { %v12592_v17 = vmax.f32 %v4496_v43, %v4499_v54  ;;  %10536 = vmatpush3.msra.mxu0 %v12358_v45  ;;  %v5767_v54 = vld [vmem:[#allocation3 + $0x69] sm:$0x1] }
 0x204   : > { %10537 = vmatprep.subr.mxu0 %v13352_v50 }
 0x205   : > { %10527 = vmatpush3.msra.mxu1 %v12592_v17  ;;  %10538 = vmatpush3.msra.mxu0 %v12338_v32  ;;  %v5755_v32 = vld [vmem:[#allocation3 + $0x9] sm:$0x1] }
 0x206   : > { %10528 = vmatprep.subr.mxu1 %v13352_v50  ;;  %10540 = vmatmul.mubr.msk.f32.vlgmr.msra.gmra.mxu0 %vm4537_vm6, %v12596_v4  ;;  %v5770_v45 = vpack.c.bf16 %v5755_v32, %v5754_v34  ;;  %v11111_v34 = vld [vmem:[%s13321_s3] sm:$0xff]  }
 0x207   : > { %10551 = vmatprep.subr.mxu0 %v13352_v50  ;;  %10529 = vmatpush3.msra.mxu1 %v12576_v42 }
 0x208   : > { %10552 = vmatpush3.msk.msra.mxu0 %vm4541_vm4, %v12405_v33  ;;  %10531 = vmatmul.mubr.msk.f32.vlgmr.msra.gmra.mxu1 %vm4537_vm6, %v12376_v6 }
 0x209   : > { %10542 = vmatprep.subr.mxu1 %v13352_v50  ;;  %10553 = vmatprep.subr.mxu0 %v13352_v50 }
 0x20a   : > { %10543 = vmatpush3.msk.msra.mxu1 %vm4541_vm4, %v12367_v9  ;;  %10554 = vmatpush3.msra.mxu0 %v12431_v58 }
 0x20b   : > { %10544 = vmatprep.subr.mxu1 %v13352_v50  ;;  %10555 = vmatprep.subr.mxu0 %v13352_v50 }
 0x20c   : > { %10545 = vmatpush3.msra.mxu1 %v12397_v18  ;;  %10556 = vmatpush3.msra.mxu0 %v12412_v5 }
 0x20d   : > { %10557 = vmatprep.mubr.msk.f32.mxu0 %vm11193_vm3, %v13352_v50  ;;  %10546 = vmatprep.subr.mxu1 %v13352_v50 }
 0x20e   : > { %10558 = vmatmul.mubr.msk.f32.vlgmr.msra.gmra.mxu0 %vm4537_vm6, %v12596_v4  ;;  %10569 = vmatprep.subr.mxu0 %v13352_v50 }
 0x20f   : > { %10547 = vmatpush3.msra.mxu1 %v12378_v40  ;;  %10548 = vmatprep.mubr.msk.f32.mxu1 %vm11193_vm3, %v13352_v50 }
 0x210   : > { %10570 = vmatpush3.msk.msra.mxu0 %vm4541_vm4, %v12474_v44  ;;  %10549 = vmatmul.mubr.msk.f32.vlgmr.msra.gmra.mxu1 %vm4537_vm6, %v12596_v4 }
 0x211   : > { %10560 = vmatprep.subr.mxu1 %v13352_v50  ;;  %10571 = vmatprep.subr.mxu0 %v13352_v50 }
 0x212   : > { %10561 = vmatpush3.msk.msra.mxu1 %vm4541_vm4, %v12440_v19  ;;  %10572 = vmatpush3.msra.mxu0 %v12499_v52 }
 0x213   : > { %10562 = vmatprep.subr.mxu1 %v13352_v50  ;;  %10573 = vmatprep.subr.mxu0 %v13352_v50 }
 0x214   : > { %10563 = vmatpush3.msra.mxu1 %v12465_v39  ;;  %10574 = vmatpush3.msra.mxu0 %v12480_v24 }
 0x215   : > { %10575 = vmatprep.mubr.msk.f32.mxu0 %vm11193_vm3, %v13352_v50  ;;  %10564 = vmatprep.subr.mxu1 %v13352_v50 }
 0x216   : > { %10576 = vmatmul.mubr.msk.f32.vlgmr.msra.gmra.mxu0 %vm4537_vm6, %v12596_v4  ;;  %10587 = vmatprep.subr.mxu0 %v13352_v50 }
 0x217   : > { %10565 = vmatpush3.msra.mxu1 %v12446_v2  ;;  %10566 = vmatprep.mubr.msk.f32.mxu1 %vm11193_vm3, %v13352_v50 }
 0x218   : > { %10588 = vmatpush3.msk.msra.mxu0 %vm4541_vm4, %v12543_v27  ;;  %10567 = vmatmul.mubr.msk.f32.vlgmr.msra.gmra.mxu1 %vm4537_vm6, %v12596_v4 }
 0x219   : > { %10578 = vmatprep.subr.mxu1 %v13352_v50  ;;  %10589 = vmatprep.subr.mxu0 %v13352_v50 }
 0x21a   : > { %10579 = vmatpush3.msk.msra.mxu1 %vm4541_vm4, %v12507_v15  ;;  %10590 = vmatpush3.msra.mxu0 %v12566_v21 }
 0x21b   : > { %10580 = vmatprep.subr.mxu1 %v13352_v50  ;;  %10591 = vmatprep.subr.mxu0 %v13352_v50 }
 0x21c   : > { %10581 = vmatpush3.msra.mxu1 %v12535_v47  ;;  %10592 = vmatpush3.msra.mxu0 %v12549_v28 }
 0x21d   : > { %10593 = vmatprep.mubr.msk.f32.mxu0 %vm11193_vm3, %v13352_v50  ;;  %10582 = vmatprep.subr.mxu1 %v13352_v50 }
 0x21e   : > { %10594 = vmatmul.mubr.msk.f32.vlgmr.msra.gmra.mxu0 %vm4537_vm6, %v12596_v4  ;;  %10583 = vmatpush3.msra.mxu1 %v12514_v48 }
 0x21f   : > { %10584 = vmatprep.mubr.msk.f32.mxu1 %vm11193_vm3, %v13352_v50  ;;  %10596 = vmatprep.subr.mxu1 %v13352_v50 }
 0x220   : > { %10585 = vmatmul.mubr.msk.f32.vlgmr.msra.gmra.mxu1 %vm4537_vm6, %v12596_v4  ;;  %10605 = vmatprep.subr.bf16.mxu0 %v13352_v50 }
 0x221   : > { %10597 = vmatpush3.msk.msra.mxu1 %vm4541_vm4, %v12572_v14  ;;  %10602 = vmatprep.mubr.msk.f32.mxu1 %vm11193_vm3, %v13352_v50 }
 0x222   : > { %10598 = vmatprep.subr.mxu1 %v13352_v50  ;;  %10607 = vmatprep.mubr.msk.bf16.mxu0 %vm11193_vm3, %v13352_v50 }
 0x223   : > { %10599 = vmatpush3.msra.mxu1 %v12592_v17  ;;  %10606 = vmatpush3.bf16.msra.mxu0 %v12729_v11 }
 0x224   : > { %10600 = vmatprep.subr.mxu1 %v13352_v50  ;;  %10617 = vmatprep.subr.bf16.mxu0 %v13352_v50 }
 0x225   : > { %10601 = vmatpush3.msra.mxu1 %v12576_v42 }
 0x226   : > { %10603 = vmatmul.mubr.msk.f32.vlgmr.msra.gmra.mxu1 %vm4537_vm6, %v12596_v4  ;;  %10611 = vmatprep.subr.bf16.mxu1 %v13352_v50 }
 0x227   : > { %10613 = vmatprep.mubr.msk.bf16.mxu1 %vm11193_vm3, %v13352_v50  ;;  %10612 = vmatpush3.bf16.msra.mxu1 %v12729_v11 }
 0x228   : > { %10623 = vmatprep.subr.bf16.mxu1 %v13352_v50  ;;  %10608 = vmatmul.mubr.msk.bf16.vlgmr.msra.gmra.mxu0 %vm5697_vm8, %v5770_v45 }
 0x229   : > { %10618 = vmatpush3.bf16.msra.mxu0 %v12729_v11  ;;  %10619 = vmatprep.mubr.msk.bf16.mxu0 %vm11193_vm3, %v13352_v50 }
 0x22a   : > { %10629 = vmatprep.subr.bf16.mxu0 %v13352_v50 }
 0x291   : > { %v4611_v9 = vpop.f32.mrf.mxu0 }
 0x293   : > { %v10469_v40 = vpop.f32.mrf.mxu0 }
 0x294   : > { %v5728_v40 = vld [vmem:[#allocation3] sm:$0xff] }
 0x299   : > { %v4684_v18 = vpop.f32.mrf.mxu1 }
 0x29b   : > { %v10478_v33 = vpop.f32.mrf.mxu1 }
 0x2a1   : > { %v4757_v5 = vpop.f32.mrf.mxu0 }
 0x2a3   : > { %v10487_v58 = vpop.f32.mrf.mxu0 }
 0x2a9   : > { %v4830_v19 = vpop.f32.mrf.mxu1 }
 0x2ab   : > { %v10496_v2 = vpop.f32.mrf.mxu1 }
 0x2b1   : > { %v4903_v39 = vpop.f32.mrf.mxu0 }
 0x2b3   : > { %v10505_v44 = vpop.f32.mrf.mxu0 }
 0x2b9   : > { %v4976_v24 = vpop.f32.mrf.mxu1 }
 0x2bb   : > { %v10514_v52 = vpop.f32.mrf.mxu1 }
 0x2c0   : > { %v5049_v15 = vpop.f32.mrf.mxu0 }
 0x2c2   : > { %v10523_v48 = vpop.f32.mrf.mxu0 }
 0x2c6   : > { %v5195_v47 = vpop.f32.mrf.mxu0 }
 0x2c7   : > { %v5689_v49 = vmax.f32 %v4611_v9, %v5195_v47 }
 0x2c8   : > { %v12740_v8 = vpop.f32.mrf.mxu1  ;;  %v10541_v27 = vpop.f32.mrf.mxu0 }
 0x2c9   : > { %5720 = vst.msk [vmem:[#allocation3 + $0x11] sm:$0xff] %vm5697_vm8, %v5689_v49 }
 0x2ca   : > { %v10532_v63 = vpop.f32.mrf.mxu1 }
 0x2ce   : > { %v5335_v59 = vpop.f32.mrf.mxu0 }
 0x2cf   : > { %v5691_v56 = vmax.f32 %v4757_v5, %v5335_v59 }
 0x2d0   : > { %v5265_v0 = vpop.f32.mrf.mxu1  ;;  %v10559_v36 = vpop.f32.mrf.mxu0  ;;  %v12743_v31 = vld [vmem:[#allocation3 + $0x11] sm:$0xff] }
 0x2d1   : > { %5722 = vst.msk [vmem:[#allocation3 + $0x31] sm:$0xff] %vm5697_vm8, %v5691_v56  ;;  %v5690_v28 = vmax.f32 %v4684_v18, %v5265_v0  ;;  %v5771_v61 = vpack.c.bf16 %v5757_v26, %v12743_v31  ;;  %v5729_v18 = vld [vmem:[#allocation3 + $0x8] sm:$0x1]  ;;  %v12807_v33 = vld [vmem:[#allocation3 + $0x10] sm:$0xff]  ;;  %v5731_v5 = vld [vmem:[#allocation3 + $0x18] sm:$0x1] }
 0x2d2   : > { %v10550_v29 = vpop.f32.mrf.mxu1  ;;  %v5744_v58 = vpack.c.bf16 %v5729_v18, %v5728_v40  ;;  %v11112_v36 = vld [vmem:[%s13321_s3 + $0x10] sm:$0xff]  }
 0x2d3   : > { %5721 = vst.msk [vmem:[#allocation3 + $0x21] sm:$0xff] %vm5697_vm8, %v5690_v28  ;;  %10614 = vmatmul.mubr.msk.bf16.vlgmr.msra.gmra.mxu1 %vm5697_vm8, %v5771_v61 }
 0x2d4   : > { %10624 = vmatpush3.bf16.msra.mxu1 %v12729_v11  ;;  %10625 = vmatprep.mubr.msk.bf16.mxu1 %vm11193_vm3, %v13352_v50 }
 0x2d5   : > { %10635 = vmatprep.subr.bf16.mxu1 %v13352_v50 }
 0x2d6   : > { %v5475_v25 = vpop.f32.mrf.mxu0 }
 0x2d7   : > { %v5693_v7 = vmax.f32 %v4903_v39, %v5475_v25  ;;  %v6498_v25 = vld [vmem:[#allocation3 + $0x18] sm:$0x1] }
 0x2d8   : > { %v5405_v20 = vpop.f32.mrf.mxu1  ;;  %v10577_v12 = vpop.f32.mrf.mxu0  ;;  %v12753_v41 = vld [vmem:[#allocation3 + $0x31] sm:$0xff] }
 0x2d9   : > { %5724 = vst.msk [vmem:[#allocation3 + $0x51] sm:$0xff] %vm5697_vm8, %v5693_v7  ;;  %v5692_v30 = vmax.f32 %v4830_v19, %v5405_v20  ;;  %v5773_v16 = vpack.c.bf16 %v5761_v23, %v12753_v41  ;;  %v5745_v19 = vpack.c.bf16 %v5731_v5, %v12807_v33  ;;  %v12818_v2 = vld [vmem:[#allocation3 + $0x30] sm:$0xff]  ;;  %v5735_v39 = vld [vmem:[#allocation3 + $0x38] sm:$0x1]  ;;  %v6513_v7 = vpack.c.bf16 %v6498_v25, %v12807_v33  ;;  %v6913_v33 = vld [vmem:[#allocation3 + $0x89] sm:$0x1] }
 0x2da   : > { %v10568_v38 = vpop.f32.mrf.mxu1  ;;  %v12757_v60 = vld [vmem:[#allocation3 + $0x21] sm:$0xff]  ;;  %v5747_v52 = vpack.c.bf16 %v5735_v39, %v12818_v2 }
 0x2db   : > { %5723 = vst.msk [vmem:[#allocation3 + $0x41] sm:$0xff] %vm5697_vm8, %v5692_v30  ;;  %v5772_v37 = vpack.c.bf16 %v5759_v13, %v12757_v60  ;;  %10626 = vmatmul.mubr.msk.bf16.vlgmr.msra.gmra.mxu1 %vm5697_vm8, %v5773_v16  ;;  %v5732_v44 = vld [vmem:[#allocation3 + $0x20] sm:$0xff]  ;;  %v6500_v29 = vld [vmem:[#allocation3 + $0x28] sm:$0x1]  ;;  %v6502_v16 = vld [vmem:[#allocation3 + $0x38] sm:$0x1] }
 0x2dc   : > { %10636 = vmatpush3.bf16.msra.mxu1 %v12729_v11  ;;  %10637 = vmatprep.mubr.msk.bf16.mxu1 %vm11193_vm3, %v13352_v50  ;;  %v6514_v23 = vpack.c.bf16 %v6500_v29, %v5732_v44 }
 0x2dd   : > { %10620 = vmatmul.mubr.msk.bf16.vlgmr.msra.gmra.mxu0 %vm5697_vm8, %v5772_v37  ;;  %10647 = vmatprep.subr.bf16.mxu1 %v13352_v50 }
 0x2de   : > { %v5615_v46 = vpop.f32.mrf.mxu0  ;;  %10630 = vmatpush3.bf16.msra.mxu0 %v12729_v11  ;;  %10631 = vmatprep.mubr.msk.bf16.mxu0 %vm11193_vm3, %v13352_v50 }
 0x2df   : > { %v5695_v21 = vmax.f32 %v5049_v15, %v5615_v46  ;;  %10641 = vmatprep.subr.bf16.mxu0 %v13352_v50  ;;  %v6515_v46 = vpack.c.bf16 %v6502_v16, %v12818_v2 }
 0x2e0   : > { %v5545_v10 = vpop.f32.mrf.mxu1  ;;  %v10595_v22 = vpop.f32.mrf.mxu0  ;;  %v12771_v53 = vld [vmem:[#allocation3 + $0x51] sm:$0xff] }
 0x2e1   : > { %5726 = vst.msk [vmem:[#allocation3 + $0x71] sm:$0xff] %vm5697_vm8, %v5695_v21  ;;  %v5694_v35 = vmax.f32 %v4976_v24, %v5545_v10  ;;  %v5775_v62 = vpack.c.bf16 %v5765_v55, %v12771_v53  ;;  %v5733_v24 = vld [vmem:[#allocation3 + $0x28] sm:$0x1]  ;;  %v12829_v48 = vld [vmem:[#allocation3 + $0x50] sm:$0xff]  ;;  %v5739_v47 = vld [vmem:[#allocation3 + $0x58] sm:$0x1] }
 0x2e2   : > { %v10586_v14 = vpop.f32.mrf.mxu1  ;;  %v12775_v51 = vld [vmem:[#allocation3 + $0x41] sm:$0xff]  ;;  %v5746_v15 = vpack.c.bf16 %v5733_v24, %v5732_v44  ;;  %v5749_v27 = vpack.c.bf16 %v5739_v47, %v12829_v48  ;;  %v6506_v21 = vld [vmem:[#allocation3 + $0x58] sm:$0x1] }
 0x2e3   : > { %5725 = vst.msk [vmem:[#allocation3 + $0x61] sm:$0xff] %vm5697_vm8, %v5694_v35  ;;  %v5774_v3 = vpack.c.bf16 %v5763_v1, %v12775_v51  ;;  %10638 = vmatmul.mubr.msk.bf16.vlgmr.msra.gmra.mxu1 %vm5697_vm8, %v5775_v62  ;;  %v5736_v49 = vld [vmem:[#allocation3 + $0x40] sm:$0xff]  ;;  %v6504_v13 = vld [vmem:[#allocation3 + $0x48] sm:$0x1]  ;;  %v6517_v22 = vpack.c.bf16 %v6506_v21, %v12829_v48 }
 0x2e4   : > { %10648 = vmatpush3.bf16.msra.mxu1 %v12729_v11  ;;  %10649 = vmatprep.mubr.msk.bf16.mxu1 %vm11193_vm3, %v13352_v50  ;;  %v6516_v38 = vpack.c.bf16 %v6504_v13, %v5736_v49  ;;  %v11113_v14 = vld [vmem:[%s13321_s3 + $0x18] sm:$0xff]  }
 0x2e5   : > { %10632 = vmatmul.mubr.msk.bf16.vlgmr.msra.gmra.mxu0 %vm5697_vm8, %v5774_v3  ;;  %10659 = vmatprep.subr.bf16.mxu1 %v13352_v50 }
 0x2e6   : > { %v5685_v42 = vpop.f32.mrf.mxu1  ;;  %10642 = vmatpush3.bf16.msra.mxu0 %v12729_v11  ;;  %10643 = vmatprep.mubr.msk.bf16.mxu0 %vm11193_vm3, %v13352_v50 }
 0x2e7   : > { %v5696_v43 = vmax.f32 %v12740_v8, %v5685_v42  ;;  %10653 = vmatprep.subr.bf16.mxu0 %v13352_v50  ;;  %v5737_v8 = vld [vmem:[#allocation3 + $0x48] sm:$0x1] }
 0x2e8   : > { %v12790_v17 = vld [vmem:[#allocation3 + $0x71] sm:$0xff]  ;;  %v10604_v32 = vpop.f32.mrf.mxu1  ;;  %v5748_v63 = vpack.c.bf16 %v5737_v8, %v5736_v49  ;;  %v12857_v20 = vpop.f32.mrf.mxu0 }
 0x2e9   : > { %5727 = vst.msk [vmem:[#allocation3 + $0x81] sm:$0xff] %vm5697_vm8, %v5696_v43  ;;  %v5777_v11 = vpack.c.bf16 %v5769_v57, %v12790_v17  ;;  %v12840_v59 = vld [vmem:[#allocation3 + $0x70] sm:$0xff]  ;;  %v5743_v26 = vld [vmem:[#allocation3 + $0x78] sm:$0x1]  ;;  %v6901_v57 = vld [vmem:[#allocation3 + $0x29] sm:$0x1] }
 0x2ea   : > { %v12797_v45 = vld [vmem:[#allocation3 + $0x61] sm:$0xff]  ;;  %v5751_v28 = vpack.c.bf16 %v5743_v26, %v12840_v59  ;;  %v10609_v12 = vpop.f32.mrf.mxu0  ;;  %v6510_v62 = vld [vmem:[#allocation3 + $0x78] sm:$0x1]  ;;  %v6899_v43 = vld [vmem:[#allocation3 + $0x19] sm:$0x1] }
 0x2eb   : > { %v5776_v9 = vpack.c.bf16 %v5767_v54, %v12797_v45  ;;  %10650 = vmatmul.mubr.msk.bf16.vlgmr.msra.gmra.mxu1 %vm5697_vm8, %v5777_v11  ;;  %v5740_v56 = vld [vmem:[#allocation3 + $0x60] sm:$0xff]  ;;  %v5741_v0 = vld [vmem:[#allocation3 + $0x68] sm:$0x1]  ;;  %v6519_v42 = vpack.c.bf16 %v6510_v62, %v12840_v59  ;;  %v6915_v54 = vpack.c.bf16 %v6901_v57, %v12757_v60  ;;  %v6905_v32 = vld [vmem:[#allocation3 + $0x49] sm:$0x1] }
 0x2ec   : > { %10660 = vmatpush3.bf16.msra.mxu1 %v11111_v34  ;;  %10661 = vmatprep.mubr.msk.bf16.mxu1 %vm11193_vm3, %v13352_v50  ;;  %v5750_v61 = vpack.c.bf16 %v5741_v0, %v5740_v56  ;;  %v12866_v30 = vpop.f32.mrf.mxu0  ;;  %v6508_v55 = vld [vmem:[#allocation3 + $0x68] sm:$0x1]  ;;  %v6903_v60 = vld [vmem:[#allocation3 + $0x39] sm:$0x1] }
 0x2ed   : > { %10644 = vmatmul.mubr.msk.bf16.vlgmr.msra.gmra.mxu0 %vm5697_vm8, %v5776_v9  ;;  %10671 = vmatprep.subr.bf16.mxu1 %v13352_v50  ;;  %v6518_v10 = vpack.c.bf16 %v6508_v55, %v5740_v56  ;;  %v6916_v11 = vpack.c.bf16 %v6903_v60, %v12753_v41  ;;  %v6909_v9 = vld [vmem:[#allocation3 + $0x69] sm:$0x1] }
 0x2ee   : > { %10654 = vmatpush3.bf16.msra.mxu0 %v11111_v34  ;;  %10655 = vmatprep.mubr.msk.bf16.mxu0 %vm11193_vm3, %v13352_v50  ;;  %v10610_v37 = vpop.f32.mrf.mxu0  ;;  %v6919_v41 = vpack.c.bf16 %v6909_v9, %v12797_v45  ;;  %v6911_v45 = vld [vmem:[#allocation3 + $0x79] sm:$0x1] }
 0x2ef   : > { %10665 = vmatprep.subr.bf16.mxu0 %v13352_v50  ;;  %v6920_v5 = vpack.c.bf16 %v6911_v45, %v12790_v17 }
 0x2f0   : > { %v6511_v1 = vld [vmem:[#allocation3 + $0x80] sm:$0xff]  ;;  %v6512_v35 = vld [vmem:[#allocation3 + $0x88] sm:$0x1] }
 0x2f1   : > { %v6520_v3 = vpack.c.bf16 %v6512_v35, %v6511_v1  ;;  %v6912_v18 = vld [vmem:[#allocation3 + $0x81] sm:$0xff] }
 0x2f3   : > { %10662 = vmatmul.mubr.msk.bf16.vlgmr.msra.gmra.mxu1 %vm5697_vm8, %v5745_v19 }
 0x2f4   : > { %10672 = vmatpush3.bf16.msra.mxu1 %v11111_v34  ;;  %10673 = vmatprep.mubr.msk.bf16.mxu1 %vm11193_vm3, %v13352_v50 }
 0x2f5   : > { %10656 = vmatmul.mubr.msk.bf16.vlgmr.msra.gmra.mxu0 %vm5697_vm8, %v5744_v58  ;;  %10683 = vmatprep.subr.bf16.mxu1 %v13352_v50 }
 0x2f6   : > { %10666 = vmatpush3.bf16.msra.mxu0 %v11111_v34  ;;  %10667 = vmatprep.mubr.msk.bf16.mxu0 %vm11193_vm3, %v13352_v50 }
 0x2f7   : > { %10677 = vmatprep.subr.bf16.mxu0 %v13352_v50 }
 0x2fb   : > { %10674 = vmatmul.mubr.msk.bf16.vlgmr.msra.gmra.mxu1 %vm5697_vm8, %v5747_v52 }
 0x2fc   : > { %10684 = vmatpush3.bf16.msra.mxu1 %v11111_v34  ;;  %10685 = vmatprep.mubr.msk.bf16.mxu1 %vm11193_vm3, %v13352_v50 }
 0x2fd   : > { %10668 = vmatmul.mubr.msk.bf16.vlgmr.msra.gmra.mxu0 %vm5697_vm8, %v5746_v15  ;;  %10695 = vmatprep.subr.bf16.mxu1 %v13352_v50 }
 0x2fe   : > { %10678 = vmatpush3.bf16.msra.mxu0 %v11111_v34  ;;  %10679 = vmatprep.mubr.msk.bf16.mxu0 %vm11193_vm3, %v13352_v50 }
 0x2ff   : > { %10689 = vmatprep.subr.bf16.mxu0 %v13352_v50 }
 0x303   : > { %10686 = vmatmul.mubr.msk.bf16.vlgmr.msra.gmra.mxu1 %vm5697_vm8, %v5749_v27 }
 0x304   : > { %10696 = vmatpush3.bf16.msra.mxu1 %v11111_v34  ;;  %10697 = vmatprep.mubr.msk.bf16.mxu1 %vm11193_vm3, %v13352_v50 }
 0x305   : > { %10680 = vmatmul.mubr.msk.bf16.vlgmr.msra.gmra.mxu0 %vm5697_vm8, %v5748_v63  ;;  %10707 = vmatprep.subr.bf16.mxu1 %v13352_v50 }
 0x306   : > { %10690 = vmatpush3.bf16.msra.mxu0 %v11111_v34  ;;  %10691 = vmatprep.mubr.msk.bf16.mxu0 %vm11193_vm3, %v13352_v50  ;;  %v6914_v34 = vpack.c.bf16 %v6899_v43, %v12743_v31  ;;  %v6917_v31 = vpack.c.bf16 %v6905_v32, %v12775_v51  ;;  %v6907_v51 = vld [vmem:[#allocation3 + $0x59] sm:$0x1] }
 0x307   : > { %10701 = vmatprep.subr.bf16.mxu0 %v13352_v50  ;;  %v6918_v40 = vpack.c.bf16 %v6907_v51, %v12771_v53  ;;  %v6921_v53 = vpack.c.bf16 %v6913_v33, %v6912_v18 }
 0x30b   : > { %10698 = vmatmul.mubr.msk.bf16.vlgmr.msra.gmra.mxu1 %vm5697_vm8, %v5751_v28 }
 0x30c   : > { %10708 = vmatpush3.bf16.msra.mxu1 %v11112_v36  ;;  %10709 = vmatprep.mubr.msk.bf16.mxu1 %vm11193_vm3, %v13352_v50 }
 0x30d   : > { %10692 = vmatmul.mubr.msk.bf16.vlgmr.msra.gmra.mxu0 %vm5697_vm8, %v5750_v61  ;;  %10719 = vmatprep.subr.bf16.mxu1 %v13352_v50 }
 0x30e   : > { %10702 = vmatpush3.bf16.msra.mxu0 %v11112_v36  ;;  %10703 = vmatprep.mubr.msk.bf16.mxu0 %vm11193_vm3, %v13352_v50 }
 0x30f   : > { %10713 = vmatprep.subr.bf16.mxu0 %v13352_v50 }
 0x313   : > { %10710 = vmatmul.mubr.msk.bf16.vlgmr.msra.gmra.mxu1 %vm5697_vm8, %v6514_v23 }
 0x314   : > { %10720 = vmatpush3.bf16.msra.mxu1 %v11112_v36  ;;  %10721 = vmatprep.mubr.msk.bf16.mxu1 %vm11193_vm3, %v13352_v50 }
 0x315   : > { %10704 = vmatmul.mubr.msk.bf16.vlgmr.msra.gmra.mxu0 %vm5697_vm8, %v6513_v7  ;;  %10731 = vmatprep.subr.bf16.mxu1 %v13352_v50 }
 0x316   : > { %10714 = vmatpush3.bf16.msra.mxu0 %v11112_v36  ;;  %10715 = vmatprep.mubr.msk.bf16.mxu0 %vm11193_vm3, %v13352_v50 }
 0x317   : > { %10725 = vmatprep.subr.bf16.mxu0 %v13352_v50 }
 0x31b   : > { %10722 = vmatmul.mubr.msk.bf16.vlgmr.msra.gmra.mxu1 %vm5697_vm8, %v6516_v38 }
 0x31c   : > { %10732 = vmatpush3.bf16.msra.mxu1 %v11112_v36  ;;  %10733 = vmatprep.mubr.msk.bf16.mxu1 %vm11193_vm3, %v13352_v50 }
 0x31d   : > { %10716 = vmatmul.mubr.msk.bf16.vlgmr.msra.gmra.mxu0 %vm5697_vm8, %v6515_v46  ;;  %10743 = vmatprep.subr.bf16.mxu1 %v13352_v50 }
 0x31e   : > { %10726 = vmatpush3.bf16.msra.mxu0 %v11112_v36  ;;  %10727 = vmatprep.mubr.msk.bf16.mxu0 %vm11193_vm3, %v13352_v50 }
 0x31f   : > { %10737 = vmatprep.subr.bf16.mxu0 %v13352_v50 }
 0x323   : > { %10734 = vmatmul.mubr.msk.bf16.vlgmr.msra.gmra.mxu1 %vm5697_vm8, %v6518_v10 }
 0x324   : > { %10744 = vmatpush3.bf16.msra.mxu1 %v11112_v36  ;;  %10745 = vmatprep.mubr.msk.bf16.mxu1 %vm11193_vm3, %v13352_v50 }
 0x325   : > { %10728 = vmatmul.mubr.msk.bf16.vlgmr.msra.gmra.mxu0 %vm5697_vm8, %v6517_v22  ;;  %10755 = vmatprep.subr.bf16.mxu1 %v13352_v50 }
 0x326   : > { %10738 = vmatpush3.bf16.msra.mxu0 %v11112_v36  ;;  %10739 = vmatprep.mubr.msk.bf16.mxu0 %vm11193_vm3, %v13352_v50 }
 0x327   : > { %10749 = vmatprep.subr.bf16.mxu0 %v13352_v50 }
 0x32b   : > { %10746 = vmatmul.mubr.msk.bf16.vlgmr.msra.gmra.mxu1 %vm5697_vm8, %v6520_v3 }
 0x32c   : > { %10756 = vmatpush3.bf16.msra.mxu1 %v11113_v14  ;;  %10757 = vmatprep.mubr.msk.bf16.mxu1 %vm11193_vm3, %v13352_v50 }
 0x32d   : > { %10740 = vmatmul.mubr.msk.bf16.vlgmr.msra.gmra.mxu0 %vm5697_vm8, %v6519_v42  ;;  %10767 = vmatprep.subr.bf16.mxu1 %v13352_v50 }
 0x32e   : > { %10750 = vmatpush3.bf16.msra.mxu0 %v11113_v14  ;;  %10751 = vmatprep.mubr.msk.bf16.mxu0 %vm11193_vm3, %v13352_v50 }
 0x32f   : > { %10761 = vmatprep.subr.bf16.mxu0 %v13352_v50 }
 0x333   : > { %10758 = vmatmul.mubr.msk.bf16.vlgmr.msra.gmra.mxu1 %vm5697_vm8, %v6915_v54 }
 0x334   : > { %10768 = vmatpush3.bf16.msra.mxu1 %v11113_v14  ;;  %10769 = vmatprep.mubr.msk.bf16.mxu1 %vm11193_vm3, %v13352_v50 }
 0x335   : > { %10752 = vmatmul.mubr.msk.bf16.vlgmr.msra.gmra.mxu0 %vm5697_vm8, %v6914_v34  ;;  %10779 = vmatprep.subr.bf16.mxu1 %v13352_v50 }
 0x336   : > { %10762 = vmatpush3.bf16.msra.mxu0 %v11113_v14  ;;  %10763 = vmatprep.mubr.msk.bf16.mxu0 %vm11193_vm3, %v13352_v50 }
 0x337   : > { %10773 = vmatprep.subr.bf16.mxu0 %v13352_v50 }
 0x33b   : > { %10770 = vmatmul.mubr.msk.bf16.vlgmr.msra.gmra.mxu1 %vm5697_vm8, %v6917_v31 }
 0x33c   : > { %10780 = vmatpush3.bf16.msra.mxu1 %v11113_v14  ;;  %10781 = vmatprep.mubr.msk.bf16.mxu1 %vm11193_vm3, %v13352_v50 }
 0x33d   : > { %10764 = vmatmul.mubr.msk.bf16.vlgmr.msra.gmra.mxu0 %vm5697_vm8, %v6916_v11  ;;  %10791 = vmatprep.subr.bf16.mxu1 %v13352_v50 }
 0x33e   : > { %10774 = vmatpush3.bf16.msra.mxu0 %v11113_v14  ;;  %10775 = vmatprep.mubr.msk.bf16.mxu0 %vm11193_vm3, %v13352_v50 }
 0x33f   : > { %10785 = vmatprep.subr.bf16.mxu0 %v13352_v50 }
 0x343   : > { %10782 = vmatmul.mubr.msk.bf16.vlgmr.msra.gmra.mxu1 %vm5697_vm8, %v6919_v41 }
 0x344   : > { %10792 = vmatpush3.bf16.msra.mxu1 %v11113_v14  ;;  %10793 = vmatprep.mubr.msk.bf16.mxu1 %vm11193_vm3, %v13352_v50 }
 0x345   : > { %10776 = vmatmul.mubr.msk.bf16.vlgmr.msra.gmra.mxu0 %vm5697_vm8, %v6918_v40  ;;  %10804 = vmatprep.subr.mxu1 %v13352_v50 }
 0x346   : > { %10786 = vmatpush3.bf16.msra.mxu0 %v11113_v14  ;;  %10787 = vmatprep.mubr.msk.bf16.mxu0 %vm11193_vm3, %v13352_v50 }
 0x347   : > { %10797 = vmatprep.subr.mxu0 %v13352_v50 }
 0x34b   : > { %10794 = vmatmul.mubr.msk.bf16.vlgmr.msra.gmra.mxu1 %vm5697_vm8, %v6921_v53 }
 0x34c   : > { %10808 = vmatprep.mubr.msk.f32.mxu1 %vm11193_vm3, %v13352_v50 }
 0x34d   : > { %10788 = vmatmul.mubr.msk.bf16.vlgmr.msra.gmra.mxu0 %vm5697_vm8, %v6920_v5 }
 0x34e   : > { %10801 = vmatprep.mubr.msk.f32.mxu0 %vm11193_vm3, %v13352_v50 }
 0x393   : > { %v5868_v58 = vpop.f32.mrf.mxu1 }
 0x395   : > { %v10615_v19 = vpop.f32.mrf.mxu1 }
 0x397   : > { %v12935_v2 = vpop.f32.mrf.mxu1 }
 0x399   : > { %v10616_v39 = vpop.f32.mrf.mxu1 }
 0x39b   : > { %v5956_v44 = vpop.f32.mrf.mxu1 }
 0x39d   : > { %v5912_v24 = vpop.f32.mrf.mxu0  ;;  %v10627_v52 = vpop.f32.mrf.mxu1 }
 0x39f   : > { %v10621_v15 = vpop.f32.mrf.mxu0  ;;  %v12937_v17 = vpop.f32.mrf.mxu1 }
 0x3a1   : > { %v12939_v48 = vpop.f32.mrf.mxu0  ;;  %v10628_v47 = vpop.f32.mrf.mxu1 }
 0x3a3   : > { %v10622_v49 = vpop.f32.mrf.mxu0  ;;  %v6044_v8 = vpop.f32.mrf.mxu1 }
 0x3a5   : > { %v6000_v27 = vpop.f32.mrf.mxu0  ;;  %v10639_v63 = vpop.f32.mrf.mxu1 }
 0x3a7   : > { %v10633_v59 = vpop.f32.mrf.mxu0  ;;  %v12941_v26 = vpop.f32.mrf.mxu1 }
 0x3a9   : > { %v12943_v56 = vpop.f32.mrf.mxu0  ;;  %v10640_v0 = vpop.f32.mrf.mxu1 }
 0x3ab   : > { %v10634_v36 = vpop.f32.mrf.mxu0  ;;  %v6132_v28 = vpop.f32.mrf.mxu1 }
 0x3ad   : > { %v6088_v61 = vpop.f32.mrf.mxu0  ;;  %v10651_v29 = vpop.f32.mrf.mxu1 }
 0x3af   : > { %v10645_v25 = vpop.f32.mrf.mxu0  ;;  %v12945_v23 = vpop.f32.mrf.mxu1 }
 0x3b1   : > { %v12947_v7 = vpop.f32.mrf.mxu0  ;;  %v10652_v12 = vpop.f32.mrf.mxu1 }
 0x3b3   : > { %v10646_v13 = vpop.f32.mrf.mxu0  ;;  %v6226_v16 = vpop.f32.mrf.mxu1 }
 0x3b4   : > { %v12949_v38 = vadd.f32 %v6226_v16, %v5868_v58 }
 0x3b5   : > { %v12951_v37 = vpop.f32.mrf.mxu0  ;;  %v10663_v46 = vpop.f32.mrf.mxu1 }
 0x3b7   : > { %v10657_v55 = vpop.f32.mrf.mxu0  ;;  %v12953_v21 = vpop.f32.mrf.mxu1 }
 0x3b9   : > { %v12955_v10 = vpop.f32.mrf.mxu0  ;;  %v10664_v22 = vpop.f32.mrf.mxu1 }
 0x3bb   : > { %v10658_v1 = vpop.f32.mrf.mxu0  ;;  %v6314_v35 = vpop.f32.mrf.mxu1 }
 0x3bc   : > { %v12957_v62 = vadd.f32 %v6314_v35, %v5956_v44 }
 0x3bd   : > { %v6270_v14 = vpop.f32.mrf.mxu0  ;;  %v10675_v3 = vpop.f32.mrf.mxu1 }
 0x3be   : > { %v12959_v42 = vadd.f32 %v6270_v14, %v5912_v24 }
 0x3bf   : > { %v10669_v57 = vpop.f32.mrf.mxu0  ;;  %v12961_v43 = vpop.f32.mrf.mxu1 }
 0x3c1   : > { %v12963_v54 = vpop.f32.mrf.mxu0  ;;  %v10676_v34 = vpop.f32.mrf.mxu1 }
 0x3c3   : > { %v10670_v32 = vpop.f32.mrf.mxu0  ;;  %v6402_v60 = vpop.f32.mrf.mxu1 }
 0x3c4   : > { %v12965_v31 = vadd.f32 %v6402_v60, %v6044_v8 }
 0x3c5   : > { %v6358_v11 = vpop.f32.mrf.mxu0  ;;  %v10687_v9 = vpop.f32.mrf.mxu1 }
 0x3c6   : > { %v12967_v51 = vadd.f32 %v6358_v11, %v6000_v27 }
 0x3c7   : > { %v10681_v41 = vpop.f32.mrf.mxu0  ;;  %v12969_v40 = vpop.f32.mrf.mxu1 }
 0x3c9   : > { %v12971_v18 = vpop.f32.mrf.mxu0  ;;  %v10688_v33 = vpop.f32.mrf.mxu1 }
 0x3cb   : > { %v10682_v45 = vpop.f32.mrf.mxu0  ;;  %v6490_v53 = vpop.f32.mrf.mxu1 }
 0x3cc   : > { %v12973_v5 = vadd.f32 %v6490_v53, %v6132_v28 }
 0x3cd   : > { %v6446_v58 = vpop.f32.mrf.mxu0  ;;  %v10699_v19 = vpop.f32.mrf.mxu1 }
 0x3ce   : > { %v12975_v39 = vadd.f32 %v6446_v58, %v6088_v61  ;;  %v6183_v58 = vadd.f32 %v12951_v37, %v12857_v20 }
 0x3cf   : > { %v10693_v44 = vpop.f32.mrf.mxu0  ;;  %v12977_v24 = vpop.f32.mrf.mxu1 }
 0x3d1   : > { %v12979_v52 = vpop.f32.mrf.mxu0  ;;  %v10700_v15 = vpop.f32.mrf.mxu1 }
 0x3d2   : > { %v13003_v15 = vld [vmem:[%s13322_s4] ss:$0 sm:$0xff] }
 0x3d3   : > { %v10694_v47 = vpop.f32.mrf.mxu0  ;;  %v6611_v49 = vpop.f32.mrf.mxu1 }
 0x3d4   : > { %v6884_v19 = vadd.f32 %v6611_v49, %v12949_v38 }
 0x3d5   : > { %v6567_v8 = vpop.f32.mrf.mxu0  ;;  %v10711_v27 = vpop.f32.mrf.mxu1 }
 0x3d6   : > { %v6230_v27 = vadd.f32 %v12953_v21, %v12935_v2 }
 0x3d7   : > { %v10705_v63 = vpop.f32.mrf.mxu0  ;;  %v6614_v59 = vpop.f32.mrf.mxu1 }
 0x3d8   : > { %v6882_v63 = vadd.f32 %v6567_v8, %v6183_v58  ;;  %v6885_v20 = vadd.f32 %v6614_v59, %v6230_v27 }
 0x3d9   : > { %v6570_v0 = vpop.f32.mrf.mxu0  ;;  %v10712_v36 = vpop.f32.mrf.mxu1 }
 0x3db   : > { %v10706_v28 = vpop.f32.mrf.mxu0  ;;  %v6699_v29 = vpop.f32.mrf.mxu1 }
 0x3dc   : > { %v6888_v21 = vadd.f32 %v6699_v29, %v12957_v62  ;;  %v6274_v62 = vadd.f32 %v12963_v54, %v12939_v48 }
 0x3dd   : > { %v6655_v25 = vpop.f32.mrf.mxu0  ;;  %v10723_v12 = vpop.f32.mrf.mxu1 }
 0x3df   : > { %v10717_v61 = vpop.f32.mrf.mxu0  ;;  %v6702_v13 = vpop.f32.mrf.mxu1 }
 0x3e0   : > { %v6186_v61 = vadd.f32 %v12955_v10, %v12866_v30  ;;  %v6318_v30 = vadd.f32 %v12961_v43, %v12937_v17  ;;  %v6886_v10 = vadd.f32 %v6655_v25, %v12959_v42 }
 0x3e1   : > { %v6658_v16 = vpop.f32.mrf.mxu0  ;;  %v10724_v46 = vpop.f32.mrf.mxu1 }
 0x3e2   : > { %v6889_v27 = vadd.f32 %v6702_v13, %v6318_v30  ;;  %v6887_v43 = vadd.f32 %v6658_v16, %v6274_v62  ;;  %v6406_v16 = vadd.f32 %v12969_v40, %v12941_v26 }
 0x3e3   : > { %v10718_v55 = vpop.f32.mrf.mxu0  ;;  %v12981_v22 = vpop.f32.mrf.mxu1 }
 0x3e4   : > { %v6883_v55 = vadd.f32 %v6570_v0, %v6186_v61  ;;  %v6892_v48 = vadd.f32 %v12981_v22, %v12965_v31 }
 0x3e5   : > { %v12983_v1 = vpop.f32.mrf.mxu0  ;;  %v10735_v35 = vpop.f32.mrf.mxu1 }
 0x3e7   : > { %v10729_v14 = vpop.f32.mrf.mxu0  ;;  %v12985_v3 = vpop.f32.mrf.mxu1 }
 0x3e9   : > { %v12987_v57 = vpop.f32.mrf.mxu0  ;;  %v10736_v34 = vpop.f32.mrf.mxu1 }
 0x3eb   : > { %v10730_v32 = vpop.f32.mrf.mxu0  ;;  %v12989_v60 = vpop.f32.mrf.mxu1 }
 0x3ed   : > { %v12991_v11 = vpop.f32.mrf.mxu0  ;;  %v10747_v9 = vpop.f32.mrf.mxu1 }
 0x3ee   : > { %v6894_v62 = vadd.f32 %v12991_v11, %v12975_v39 }
 0x3ef   : > { %v10741_v41 = vpop.f32.mrf.mxu0  ;;  %v12993_v33 = vpop.f32.mrf.mxu1 }
 0x3f1   : > { %v12995_v45 = vpop.f32.mrf.mxu0  ;;  %v10748_v53 = vpop.f32.mrf.mxu1 }
 0x3f3   : > { %v10742_v44 = vpop.f32.mrf.mxu0  ;;  %v7012_v47 = vpop.f32.mrf.mxu1 }
 0x3f4   : > { %v7285_v36 = vadd.f32 %v7012_v47, %v6884_v19 }
 0x3f5   : > { %v6968_v28 = vpop.f32.mrf.mxu0  ;;  %v10759_v12 = vpop.f32.mrf.mxu1 }
 0x3f6   : > { %v7283_v37 = vadd.f32 %v6968_v28, %v6882_v63  ;;  %v7308_v38 = vadd.f32 %v13003_v15, %v7285_v36 }
 0x3f7   : > { %v10753_v49 = vpop.f32.mrf.mxu0  ;;  %v7015_v46 = vpop.f32.mrf.mxu1 }
 0x3f8   : > { %v7306_v35 = vadd.f32 %v13003_v15, %v7283_v37  ;;  %v7324_v14 = vmax.f32 %v7308_v38, 0.0  ;;  %v7286_v34 = vadd.f32 %v7015_v46, %v6885_v20  ;;  %v6890_v46 = vadd.f32 %v12983_v1, %v12967_v51 }
 0x3f9   : > { %v6971_v32 = vpop.f32.mrf.mxu0  ;;  %v10760_v2 = vpop.f32.mrf.mxu1  ;;  %v6893_v51 = vadd.f32 %v12985_v3, %v6406_v16  ;;  %v6896_v3 = vadd.f32 %v12989_v60, %v12973_v5 }
 0x3fa   : > { %v7322_v8 = vmax.f32 %v7306_v35, 0.0  ;;  %v7284_v9 = vadd.f32 %v6971_v32, %v6883_v55  ;;  %v7309_v41 = vadd.f32 %v13003_v15, %v7286_v34  ;;  %v6362_v32 = vadd.f32 %v12971_v18, %v12943_v56 }
 0x3fb   : > { %v10754_v59 = vpop.f32.mrf.mxu0  ;;  %v7100_v53 = vpop.f32.mrf.mxu1 }
 0x3fc   : > { %v13016_v0 = vmax.f32 %v7322_v8, %v7324_v14  ;;  %v7307_v58 = vadd.f32 %v13003_v15, %v7284_v9  ;;  %v7325_v19 = vmax.f32 %v7309_v41, 0.0  ;;  %v7289_v44 = vadd.f32 %v7100_v53, %v6888_v21 }
 0x3fd   : > { %v7056_v29 = vpop.f32.mrf.mxu0  ;;  %v10771_v47 = vpop.f32.mrf.mxu1  ;;  %v6891_v8 = vadd.f32 %v12987_v57, %v6362_v32  ;;  %v6494_v57 = vadd.f32 %v12977_v24, %v12945_v23 }
 0x3fe   : > { %v7323_v63 = vmax.f32 %v7307_v58, 0.0  ;;  %v7287_v36 = vadd.f32 %v7056_v29, %v6886_v10  ;;  %v7312_v17 = vadd.f32 %v13003_v15, %v7289_v44 }
 0x3ff   : > { %v10765_v42 = vpop.f32.mrf.mxu0  ;;  %v7103_v25 = vpop.f32.mrf.mxu1  ;;  %v6897_v23 = vadd.f32 %v12993_v33, %v6494_v57 }
 0x400   : > { %v13022_v28 = vmax.f32 %v7323_v63, %v7325_v19  ;;  %v7310_v12 = vadd.f32 %v13003_v15, %v7287_v36  ;;  %v7328_v61 = vmax.f32 %v7312_v17, 0.0  ;;  %v7290_v20 = vadd.f32 %v7103_v25, %v6889_v27 }
 0x401   : > { %v7059_v37 = vpop.f32.mrf.mxu0  ;;  %v10772_v38 = vpop.f32.mrf.mxu1  ;;  %v6450_v36 = vadd.f32 %v12979_v52, %v12947_v7 }
 0x402   : > { %v7326_v54 = vmax.f32 %v7310_v12, 0.0  ;;  %v7288_v13 = vadd.f32 %v7059_v37, %v6887_v43  ;;  %v7313_v49 = vadd.f32 %v13003_v15, %v7290_v20  ;;  %10798 = vmatpush3.msk.msra.mxu0 %vm4541_vm4, %v13022_v28 }
 0x403   : > { %v10766_v55 = vpop.f32.mrf.mxu0  ;;  %10799 = vmatprep.subr.mxu0 %v13352_v50  ;;  %v7188_v35 = vpop.f32.mrf.mxu1  ;;  %v6895_v42 = vadd.f32 %v12995_v45, %v6450_v36  ;;  %v11116_v36 = vld [vmem:[%s13323_s5 + $0x10] sm:$0xff]  }
 0x404   : > { %v13035_v14 = vmax.f32 %v7326_v54, %v7328_v61  ;;  %v7311_v31 = vadd.f32 %v13003_v15, %v7288_v13  ;;  %v7329_v22 = vmax.f32 %v7313_v49, 0.0  ;;  %10800 = vmatpush3.msra.mxu0 %v13016_v0  ;;  %v7293_v34 = vadd.f32 %v7188_v35, %v6892_v48 }
 0x405   : > { %v7144_v2 = vpop.f32.mrf.mxu0  ;;  %v10783_v26 = vpop.f32.mrf.mxu1  ;;  %10802 = vmatmul.mubr.msk.f32.vlgmr.msra.gmra.mxu0 %vm7346_vm10, %v12376_v6  ;;  %10811 = vmatprep.subr.mxu0 %v13352_v50 }
 0x406   : > { %v7327_v40 = vmax.f32 %v7311_v31, 0.0  ;;  %v7291_v1 = vadd.f32 %v7144_v2, %v6890_v46  ;;  %v7316_v21 = vadd.f32 %v13003_v15, %v7293_v34  ;;  %10815 = vmatprep.mubr.msk.f32.mxu0 %vm11193_vm3, %v13352_v50 }
 0x407   : > { %v10777_v9 = vpop.f32.mrf.mxu0  ;;  %v7191_v56 = vpop.f32.mrf.mxu1 }
 0x408   : > { %v13049_v18 = vmax.f32 %v7327_v40, %v7329_v22  ;;  %v7314_v41 = vadd.f32 %v13003_v15, %v7291_v1  ;;  %v7332_v30 = vmax.f32 %v7316_v21, 0.0  ;;  %v7294_v10 = vadd.f32 %v7191_v56, %v6893_v51 }
 0x409   : > { %v7147_v59 = vpop.f32.mrf.mxu0  ;;  %v10784_v53 = vpop.f32.mrf.mxu1 }
 0x40a   : > { %v7330_v58 = vmax.f32 %v7314_v41, 0.0  ;;  %v7292_v19 = vadd.f32 %v7147_v59, %v6891_v8  ;;  %v7317_v44 = vadd.f32 %v13003_v15, %v7294_v10  ;;  %10805 = vmatpush3.msk.msra.mxu1 %vm4541_vm4, %v13049_v18 }
 0x40b   : > { %v10778_v29 = vpop.f32.mrf.mxu0  ;;  %10806 = vmatprep.subr.mxu1 %v13352_v50  ;;  %v7276_v47 = vpop.f32.mrf.mxu1 }
 0x40c   : > { %v7342_v27 = vmax.f32 %v7330_v58, %v7332_v30  ;;  %v7315_v5 = vadd.f32 %v13003_v15, %v7292_v19  ;;  %v7333_v60 = vmax.f32 %v7317_v44, 0.0  ;;  %10807 = vmatpush3.msra.mxu1 %v13035_v14  ;;  %v7297_v63 = vadd.f32 %v7276_v47, %v6896_v3  ;;  %v11115_v19 = vld [vmem:[%s13323_s5] sm:$0xff]   ;;  %v7940_v29 = vld [vmem:[#allocation4] sm:$0x1f] }
 0x40d   : > { %v7232_v17 = vpop.f32.mrf.mxu0  ;;  %v10795_v43 = vpop.f32.mrf.mxu1  ;;  %10809 = vmatmul.mubr.msk.f32.vlgmr.msra.gmra.mxu1 %vm7346_vm10, %v12376_v6  ;;  %10818 = vmatprep.subr.mxu1 %v13352_v50 }
 0x40e   : > { %v7331_v39 = vmax.f32 %v7315_v5, 0.0  ;;  %v7295_v24 = vadd.f32 %v7232_v17, %v6894_v62  ;;  %v7320_v11 = vadd.f32 %v13003_v15, %v7297_v63  ;;  %10822 = vmatprep.mubr.msk.f32.mxu1 %vm11193_vm3, %v13352_v50 }
 0x40f   : > { %v10789_v25 = vpop.f32.mrf.mxu0  ;;  %v7279_v7 = vpop.f32.mrf.mxu1 }
 0x410   : > { %v7343_v52 = vmax.f32 %v7331_v39, %v7333_v60  ;;  %v7318_v12 = vadd.f32 %v13003_v15, %v7295_v24  ;;  %v7336_v61 = vmax.f32 %v7320_v11, 0.0  ;;  %v7298_v20 = vadd.f32 %v7279_v7, %v6897_v23  ;;  %v11117_v7 = vld [vmem:[%s13323_s5 + $0x18] sm:$0xff]  }
 0x411   : > { %v7235_v37 = vpop.f32.mrf.mxu0  ;;  %v10796_v38 = vpop.f32.mrf.mxu1 }
 0x412   : > { %v7334_v48 = vmax.f32 %v7318_v12, 0.0  ;;  %v7296_v33 = vadd.f32 %v7235_v37, %v6895_v42  ;;  %v7321_v54 = vadd.f32 %v13003_v15, %v7298_v20  ;;  %10812 = vmatpush3.msk.msra.mxu0 %vm4541_vm4, %v7343_v52 }
 0x413   : > { %v10790_v13 = vpop.f32.mrf.mxu0  ;;  %10813 = vmatprep.subr.mxu0 %v13352_v50 }
 0x414   : > { %v7344_v49 = vmax.f32 %v7334_v48, %v7336_v61  ;;  %v7319_v45 = vadd.f32 %v13003_v15, %v7296_v33  ;;  %v7337_v16 = vmax.f32 %v7321_v54, 0.0  ;;  %10814 = vmatpush3.msra.mxu0 %v7342_v27  ;;  %v11114_v15 = vld [vmem:[%s13323_s5 + $0x8] sm:$0xff]  }
 0x415   : > { %10816 = vmatmul.mubr.msk.f32.vlgmr.msra.gmra.mxu0 %vm7346_vm10, %v12376_v6  ;;  %10825 = vmatprep.subr.mxu0 %v13352_v50 }
 0x416   : > { %v7335_v46 = vmax.f32 %v7319_v45, 0.0  ;;  %10826 = vmatpush3.msk.msra.mxu0 %vm4541_vm4, %v13022_v28  ;;  %10829 = vmatprep.mubr.msk.f32.mxu0 %vm11193_vm3, %v13352_v50 }
 0x417   : > { %10827 = vmatprep.subr.mxu0 %v13352_v50 }
 0x418   : > { %v7345_v55 = vmax.f32 %v7335_v46, %v7337_v16  ;;  %10828 = vmatpush3.msra.mxu0 %v13016_v0  ;;  %v7950_v0 = vld [vmem:[#allocation4 + $0x1] sm:$0x1f] }
 0x419   : > { %10830 = vmatmul.mubr.msk.f32.vlgmr.msra.gmra.mxu0 %vm7346_vm10, %v12596_v4  ;;  %10839 = vmatprep.subr.mxu0 %v13352_v50  ;;  %v7954_v28 = vpack.c.bf16 %v7950_v0, %v7950_v0 }
 0x41a   : > { %10819 = vmatpush3.msk.msra.mxu1 %vm4541_vm4, %v7345_v55  ;;  %10840 = vmatpush3.msk.msra.mxu0 %vm4541_vm4, %v7343_v52 }
 0x41b   : > { %10820 = vmatprep.subr.mxu1 %v13352_v50  ;;  %10841 = vmatprep.subr.mxu0 %v13352_v50 }
 0x41c   : > { %10821 = vmatpush3.msra.mxu1 %v7344_v49  ;;  %10842 = vmatpush3.msra.mxu0 %v7342_v27  ;;  %v7944_v27 = vpack.c.bf16 %v7940_v29, %v7940_v29 }
 0x41d   : > { %10843 = vmatprep.mubr.msk.f32.mxu0 %vm11193_vm3, %v13352_v50  ;;  %10823 = vmatmul.mubr.msk.f32.vlgmr.msra.gmra.mxu1 %vm7346_vm10, %v12376_v6 }
 0x41e   : > { %10832 = vmatprep.subr.mxu1 %v13352_v50  ;;  %10844 = vmatmul.mubr.msk.f32.vlgmr.msra.gmra.mxu0 %vm7346_vm10, %v12596_v4 }
 0x41f   : > { %10833 = vmatpush3.msk.msra.mxu1 %vm4541_vm4, %v13049_v18  ;;  %10836 = vmatprep.mubr.msk.f32.mxu1 %vm11193_vm3, %v13352_v50 }
 0x420   : > { %10834 = vmatprep.subr.mxu1 %v13352_v50  ;;  %10853 = vmatprep.subr.bf16.mxu0 %v13352_v50 }
 0x421   : > { %10835 = vmatpush3.msra.mxu1 %v13035_v14  ;;  %10855 = vmatprep.mubr.msk.bf16.mxu0 %vm11193_vm3, %v13352_v50 }
 0x422   : > { %10837 = vmatmul.mubr.msk.f32.vlgmr.msra.gmra.mxu1 %vm7346_vm10, %v12596_v4  ;;  %10846 = vmatprep.subr.mxu1 %v13352_v50 }
 0x423   : > { %10847 = vmatpush3.msk.msra.mxu1 %vm4541_vm4, %v7345_v55  ;;  %10850 = vmatprep.mubr.msk.f32.mxu1 %vm11193_vm3, %v13352_v50 }
 0x424   : > { %10848 = vmatprep.subr.mxu1 %v13352_v50  ;;  %10854 = vmatpush3.bf16.msra.mxu0 %v11114_v15 }
 0x425   : > { %10849 = vmatpush3.msra.mxu1 %v7344_v49  ;;  %10865 = vmatprep.subr.bf16.mxu0 %v13352_v50 }
 0x426   : > { %10851 = vmatmul.mubr.msk.f32.vlgmr.msra.gmra.mxu1 %vm7346_vm10, %v12596_v4  ;;  %10859 = vmatprep.subr.bf16.mxu1 %v13352_v50 }
 0x427   : > { %10861 = vmatprep.mubr.msk.bf16.mxu1 %vm11193_vm3, %v13352_v50  ;;  %10860 = vmatpush3.bf16.msra.mxu1 %v11114_v15 }
 0x428   : > { %10871 = vmatprep.subr.bf16.mxu1 %v13352_v50  ;;  %10856 = vmatmul.mubr.msk.bf16.vlgmr.msra.gmra.mxu0 %vm5697_vm8, %v7954_v28 }
 0x429   : > { %10866 = vmatpush3.bf16.msra.mxu0 %v11114_v15  ;;  %10867 = vmatprep.mubr.msk.bf16.mxu0 %vm11193_vm3, %v13352_v50 }
 0x42a   : > { %10877 = vmatprep.subr.bf16.mxu0 %v13352_v50 }
 0x4c5   : > { %v7418_v35 = vpop.f32.mrf.mxu0 }
 0x4c7   : > { %v10803_v14 = vpop.f32.mrf.mxu0 }
 0x4cd   : > { %v7491_v31 = vpop.f32.mrf.mxu1 }
 0x4cf   : > { %v10810_v22 = vpop.f32.mrf.mxu1 }
 0x4d5   : > { %v7564_v34 = vpop.f32.mrf.mxu0 }
 0x4d7   : > { %v10817_v32 = vpop.f32.mrf.mxu0 }
 0x4d9   : > { %v7709_v2 = vpop.f32.mrf.mxu0 }
 0x4da   : > { %v7923_v26 = vmax.f32 %v7418_v35, %v7709_v2 }
 0x4db   : > { %v10831_v51 = vpop.f32.mrf.mxu0 }
 0x4dc   : > { %7936 = vst.msk [vmem:[#allocation4 + $0x9] sm:$0xf] %vm7935_vm12, %v7923_v26 }
 0x4dd   : > { %v7637_v40 = vpop.f32.mrf.mxu1 }
 0x4de   : > { %v7849_v1 = vpop.f32.mrf.mxu0 }
 0x4df   : > { %v7925_v21 = vmax.f32 %v7564_v34, %v7849_v1  ;;  %v10824_v8 = vpop.f32.mrf.mxu1 }
 0x4e0   : > { %v10845_v9 = vpop.f32.mrf.mxu0 }
 0x4e1   : > { %7938 = vst.msk [vmem:[#allocation4 + $0x19] sm:$0xf] %vm7935_vm12, %v7925_v21 }
 0x4e2   : > { %v7779_v56 = vpop.f32.mrf.mxu1 }
 0x4e3   : > { %v7924_v18 = vmax.f32 %v7491_v31, %v7779_v56  ;;  %v7951_v41 = vld [vmem:[#allocation4 + $0x9] sm:$0x1f] }
 0x4e4   : > { %v10838_v30 = vpop.f32.mrf.mxu1  ;;  %v7955_v10 = vpack.c.bf16 %v7951_v41, %v7951_v41  ;;  %v7941_v47 = vld [vmem:[#allocation4 + $0x8] sm:$0x1f] }
 0x4e5   : > { %7937 = vst.msk [vmem:[#allocation4 + $0x11] sm:$0xf] %vm7935_vm12, %v7924_v18  ;;  %v7945_v5 = vpack.c.bf16 %v7941_v47, %v7941_v47  ;;  %v8317_v39 = vld [vmem:[#allocation4 + $0x8] sm:$0x1f] }
 0x4e6   : > { %v7919_v59 = vpop.f32.mrf.mxu1  ;;  %10862 = vmatmul.mubr.msk.bf16.vlgmr.msra.gmra.mxu1 %vm5697_vm8, %v7955_v10  ;;  %v8321_v11 = vpack.c.bf16 %v8317_v39, %v8317_v39  ;;  %v8510_v20 = vld [vmem:[#allocation4 + $0x9] sm:$0x1f] }
 0x4e7   : > { %v7926_v53 = vmax.f32 %v7637_v40, %v7919_v59  ;;  %10872 = vmatpush3.bf16.msra.mxu1 %v11114_v15  ;;  %10873 = vmatprep.mubr.msk.bf16.mxu1 %vm11193_vm3, %v13352_v50  ;;  %v8514_v38 = vpack.c.bf16 %v8510_v20, %v8510_v20 }
 0x4e8   : > { %10883 = vmatprep.subr.bf16.mxu1 %v13352_v50  ;;  %v10852_v3 = vpop.f32.mrf.mxu1  ;;  %v7953_v58 = vld [vmem:[#allocation4 + $0x19] sm:$0x1f]  ;;  %v8004_v49 = vpop.f32.mrf.mxu0 }
 0x4e9   : > { %7939 = vst.msk [vmem:[#allocation4 + $0x21] sm:$0xf] %vm7935_vm12, %v7926_v53  ;;  %v7957_v57 = vpack.c.bf16 %v7953_v58, %v7953_v58  ;;  %v7943_v60 = vld [vmem:[#allocation4 + $0x18] sm:$0x1f] }
 0x4ea   : > { %v7947_v17 = vpack.c.bf16 %v7943_v60, %v7943_v60  ;;  %v8319_v25 = vld [vmem:[#allocation4 + $0x18] sm:$0x1f]  ;;  %v10857_v45 = vpop.f32.mrf.mxu0 }
 0x4eb   : > { %v8323_v12 = vpack.c.bf16 %v8319_v25, %v8319_v25  ;;  %v8512_v33 = vld [vmem:[#allocation4 + $0x19] sm:$0x1f] }
 0x4ec   : > { %v7952_v44 = vld [vmem:[#allocation4 + $0x11] sm:$0x1f]  ;;  %v8516_v13 = vpack.c.bf16 %v8512_v33, %v8512_v33  ;;  %v8007_v16 = vpop.f32.mrf.mxu0 }
 0x4ed   : > { %v7956_v62 = vpack.c.bf16 %v7952_v44, %v7952_v44  ;;  %v7942_v63 = vld [vmem:[#allocation4 + $0x10] sm:$0x1f] }
 0x4ee   : > { %10874 = vmatmul.mubr.msk.bf16.vlgmr.msra.gmra.mxu1 %vm5697_vm8, %v7957_v57  ;;  %v7946_v43 = vpack.c.bf16 %v7942_v63, %v7942_v63  ;;  %v8318_v23 = vld [vmem:[#allocation4 + $0x10] sm:$0x1f]  ;;  %v10858_v46 = vpop.f32.mrf.mxu0 }
 0x4ef   : > { %10868 = vmatmul.mubr.msk.bf16.vlgmr.msra.gmra.mxu0 %vm5697_vm8, %v7956_v62  ;;  %10884 = vmatpush3.bf16.msra.mxu1 %v11115_v19  ;;  %v8322_v24 = vpack.c.bf16 %v8318_v23, %v8318_v23  ;;  %v8511_v61 = vld [vmem:[#allocation4 + $0x11] sm:$0x1f] }
 0x4f0   : > { %10878 = vmatpush3.bf16.msra.mxu0 %v11115_v19  ;;  %10879 = vmatprep.mubr.msk.bf16.mxu0 %vm11193_vm3, %v13352_v50  ;;  %v8320_v42 = vld [vmem:[#allocation4 + $0x20] sm:$0x1f]  ;;  %v8515_v37 = vpack.c.bf16 %v8511_v61, %v8511_v61 }
 0x4f1   : > { %10885 = vmatprep.mubr.msk.bf16.mxu1 %vm11193_vm3, %v13352_v50  ;;  %10889 = vmatprep.subr.bf16.mxu0 %v13352_v50  ;;  %v8324_v52 = vpack.c.bf16 %v8320_v42, %v8320_v42  ;;  %v8513_v48 = vld [vmem:[#allocation4 + $0x21] sm:$0x1f] }
 0x4f2   : > { %10895 = vmatprep.subr.bf16.mxu1 %v13352_v50  ;;  %v8517_v54 = vpack.c.bf16 %v8513_v48, %v8513_v48 }
 0x4f6   : > { %10886 = vmatmul.mubr.msk.bf16.vlgmr.msra.gmra.mxu1 %vm5697_vm8, %v7945_v5 }
 0x4f7   : > { %10880 = vmatmul.mubr.msk.bf16.vlgmr.msra.gmra.mxu0 %vm5697_vm8, %v7944_v27  ;;  %10896 = vmatpush3.bf16.msra.mxu1 %v11115_v19 }
 0x4f8   : > { %10890 = vmatpush3.bf16.msra.mxu0 %v11115_v19  ;;  %10891 = vmatprep.mubr.msk.bf16.mxu0 %vm11193_vm3, %v13352_v50 }
 0x4f9   : > { %10897 = vmatprep.mubr.msk.bf16.mxu1 %vm11193_vm3, %v13352_v50  ;;  %10901 = vmatprep.subr.bf16.mxu0 %v13352_v50 }
 0x4fa   : > { %10907 = vmatprep.subr.bf16.mxu1 %v13352_v50 }
 0x4fe   : > { %10898 = vmatmul.mubr.msk.bf16.vlgmr.msra.gmra.mxu1 %vm5697_vm8, %v7947_v17 }
 0x4ff   : > { %10892 = vmatmul.mubr.msk.bf16.vlgmr.msra.gmra.mxu0 %vm5697_vm8, %v7946_v43  ;;  %10908 = vmatpush3.bf16.msra.mxu1 %v11116_v36 }
 0x500   : > { %10902 = vmatpush3.bf16.msra.mxu0 %v11116_v36  ;;  %10903 = vmatprep.mubr.msk.bf16.mxu0 %vm11193_vm3, %v13352_v50 }
 0x501   : > { %10909 = vmatprep.mubr.msk.bf16.mxu1 %vm11193_vm3, %v13352_v50  ;;  %10913 = vmatprep.subr.bf16.mxu0 %v13352_v50 }
 0x502   : > { %10919 = vmatprep.subr.bf16.mxu1 %v13352_v50 }
 0x506   : > { %10910 = vmatmul.mubr.msk.bf16.vlgmr.msra.gmra.mxu1 %vm5697_vm8, %v8322_v24 }
 0x507   : > { %10904 = vmatmul.mubr.msk.bf16.vlgmr.msra.gmra.mxu0 %vm5697_vm8, %v8321_v11  ;;  %10920 = vmatpush3.bf16.msra.mxu1 %v11116_v36 }
 0x508   : > { %10914 = vmatpush3.bf16.msra.mxu0 %v11116_v36  ;;  %10915 = vmatprep.mubr.msk.bf16.mxu0 %vm11193_vm3, %v13352_v50 }
 0x509   : > { %10921 = vmatprep.mubr.msk.bf16.mxu1 %vm11193_vm3, %v13352_v50  ;;  %10925 = vmatprep.subr.bf16.mxu0 %v13352_v50 }
 0x50a   : > { %10931 = vmatprep.subr.bf16.mxu1 %v13352_v50 }
 0x50e   : > { %10922 = vmatmul.mubr.msk.bf16.vlgmr.msra.gmra.mxu1 %vm5697_vm8, %v8324_v52 }
 0x50f   : > { %10916 = vmatmul.mubr.msk.bf16.vlgmr.msra.gmra.mxu0 %vm5697_vm8, %v8323_v12  ;;  %10932 = vmatpush3.bf16.msra.mxu1 %v11117_v7  ;;  %v9648_v12 = vld [vmem:[%s13324_s6] ss:$0 sm:$0xff] }
 0x510   : > { %10926 = vmatpush3.bf16.msra.mxu0 %v11117_v7  ;;  %10927 = vmatprep.mubr.msk.bf16.mxu0 %vm11193_vm3, %v13352_v50 }
 0x511   : > { %10933 = vmatprep.mubr.msk.bf16.mxu1 %vm11193_vm3, %v13352_v50  ;;  %10937 = vmatprep.subr.bf16.mxu0 %v13352_v50 }
 0x512   : > { %10943 = vmatprep.subr.bf16.mxu1 %v13352_v50 }
 0x516   : > { %10934 = vmatmul.mubr.msk.bf16.vlgmr.msra.gmra.mxu1 %vm5697_vm8, %v8515_v37 }
 0x517   : > { %10928 = vmatmul.mubr.msk.bf16.vlgmr.msra.gmra.mxu0 %vm5697_vm8, %v8514_v38  ;;  %10944 = vmatpush3.bf16.msra.mxu1 %v11117_v7 }
 0x518   : > { %10938 = vmatpush3.bf16.msra.mxu0 %v11117_v7  ;;  %10939 = vmatprep.mubr.msk.bf16.mxu0 %vm11193_vm3, %v13352_v50 }
 0x519   : > { %10945 = vmatprep.mubr.msk.bf16.mxu1 %vm11193_vm3, %v13352_v50  ;;  %10949 = vmatprep.subr.mxu0 %v13352_v50 }
 0x51a   : > { %10954 = vmatprep.subr.mxu1 %v13352_v50 }
 0x51e   : > { %10946 = vmatmul.mubr.msk.bf16.vlgmr.msra.gmra.mxu1 %vm5697_vm8, %v8517_v54 }
 0x51f   : > { %10940 = vmatmul.mubr.msk.bf16.vlgmr.msra.gmra.mxu0 %vm5697_vm8, %v8516_v13  ;;  %10956 = vmatprep.mubr.msk.f32.mxu1 %vm11193_vm3, %v13352_v50 }
 0x520   : > { %10951 = vmatprep.mubr.msk.f32.mxu0 %vm11193_vm3, %v13352_v50 }
 0x5a6   : > { %v8047_v55 = vpop.f32.mrf.mxu1 }
 0x5a8   : > { %v10863_v15 = vpop.f32.mrf.mxu1 }
 0x5aa   : > { %v8050_v0 = vpop.f32.mrf.mxu1 }
 0x5ac   : > { %v10864_v28 = vpop.f32.mrf.mxu1 }
 0x5ae   : > { %v8133_v35 = vpop.f32.mrf.mxu1 }
 0x5af   : > { %v8090_v14 = vpop.f32.mrf.mxu0 }
 0x5b0   : > { %v10875_v31 = vpop.f32.mrf.mxu1 }
 0x5b1   : > { %v10869_v22 = vpop.f32.mrf.mxu0 }
 0x5b2   : > { %v8136_v34 = vpop.f32.mrf.mxu1 }
 0x5b3   : > { %v8093_v32 = vpop.f32.mrf.mxu0 }
 0x5b4   : > { %v10876_v2 = vpop.f32.mrf.mxu1 }
 0x5b5   : > { %v10870_v26 = vpop.f32.mrf.mxu0 }
 0x5b6   : > { %v8225_v51 = vpop.f32.mrf.mxu1 }
 0x5b7   : > { %v8182_v40 = vpop.f32.mrf.mxu0  ;;  %v8226_v39 = vadd.f32 %v8225_v51, %v8047_v55 }
 0x5b8   : > { %v10887_v1 = vpop.f32.mrf.mxu1  ;;  %v8183_v11 = vadd.f32 %v8182_v40, %v8004_v49 }
 0x5b9   : > { %v10881_v21 = vpop.f32.mrf.mxu0 }
 0x5ba   : > { %v8228_v8 = vpop.f32.mrf.mxu1 }
 0x5bb   : > { %v8185_v9 = vpop.f32.mrf.mxu0 }
 0x5bc   : > { %v10888_v56 = vpop.f32.mrf.mxu1 }
 0x5bd   : > { %v10882_v18 = vpop.f32.mrf.mxu0 }
 0x5be   : > { %v8311_v41 = vpop.f32.mrf.mxu1 }
 0x5bf   : > { %v8268_v30 = vpop.f32.mrf.mxu0  ;;  %v8312_v16 = vadd.f32 %v8311_v41, %v8133_v35 }
 0x5c0   : > { %v10899_v10 = vpop.f32.mrf.mxu1  ;;  %v8269_v55 = vadd.f32 %v8268_v30, %v8090_v14 }
 0x5c1   : > { %v10893_v59 = vpop.f32.mrf.mxu0  ;;  %v11118_v10 = vld [vmem:[%s13325_s7] sm:$0xff]  }
 0x5c2   : > { %v8314_v53 = vpop.f32.mrf.mxu1 }
 0x5c3   : > { %v8271_v3 = vpop.f32.mrf.mxu0 }
 0x5c4   : > { %v10900_v58 = vpop.f32.mrf.mxu1 }
 0x5c5   : > { %v10894_v19 = vpop.f32.mrf.mxu0 }
 0x5c6   : > { %v8414_v44 = vpop.f32.mrf.mxu1  ;;  %v11121_v19 = vld [vmem:[%s13325_s7 + $0x18] sm:$0xff]  }
 0x5c7   : > { %v8371_v57 = vpop.f32.mrf.mxu0  ;;  %v8507_v25 = vadd.f32 %v8414_v44, %v8226_v39  ;;  %v11125_v39 = vld [vmem:[%s13327_s9] sm:$0xff]  }
 0x5c8   : > { %v10911_v62 = vpop.f32.mrf.mxu1  ;;  %v8506_v52 = vadd.f32 %v8371_v57, %v8183_v11 }
 0x5c9   : > { %v10905_v29 = vpop.f32.mrf.mxu0  ;;  %v11120_v62 = vld [vmem:[%s13325_s7 + $0x10] sm:$0xff]  }
 0x5ca   : > { %v8417_v47 = vpop.f32.mrf.mxu1 }
 0x5cb   : > { %v8374_v27 = vpop.f32.mrf.mxu0 }
 0x5cc   : > { %v10912_v5 = vpop.f32.mrf.mxu1 }
 0x5cd   : > { %v10906_v60 = vpop.f32.mrf.mxu0 }
 0x5ce   : > { %v8500_v63 = vpop.f32.mrf.mxu1 }
 0x5cf   : > { %v8457_v36 = vpop.f32.mrf.mxu0  ;;  %v8509_v28 = vadd.f32 %v8500_v63, %v8312_v16 }
 0x5d0   : > { %v10923_v17 = vpop.f32.mrf.mxu1  ;;  %v8508_v22 = vadd.f32 %v8457_v36, %v8269_v55 }
 0x5d1   : > { %v10917_v43 = vpop.f32.mrf.mxu0  ;;  %v11122_v17 = vld [vmem:[%s13327_s9 + $0x18] sm:$0xff]  }
 0x5d2   : > { %v8503_v23 = vpop.f32.mrf.mxu1  ;;  %v11123_v43 = vld [vmem:[%s13327_s9 + $0x10] sm:$0xff]  }
 0x5d3   : > { %v8460_v24 = vpop.f32.mrf.mxu0  ;;  %v11124_v23 = vld [vmem:[%s13327_s9 + $0x8] sm:$0xff]  }
 0x5d4   : > { %v10924_v42 = vpop.f32.mrf.mxu1 }
 0x5d5   : > { %v10918_v7 = vpop.f32.mrf.mxu0 }
 0x5d6   : > { %v8607_v61 = vpop.f32.mrf.mxu1 }
 0x5d7   : > { %v8564_v20 = vpop.f32.mrf.mxu0  ;;  %v8700_v37 = vadd.f32 %v8607_v61, %v8507_v25 }
 0x5d8   : > { %v8699_v38 = vadd.f32 %v8564_v20, %v8506_v52  ;;  %v10935_v48 = vpop.f32.mrf.mxu1 }
 0x5d9   : > { %v8711_v33 = vadd.f32 %v9648_v12, %v8700_v37  ;;  %v10929_v54 = vpop.f32.mrf.mxu0 }
 0x5da   : > { %v8710_v13 = vadd.f32 %v9648_v12, %v8699_v38  ;;  %v8610_v45 = vpop.f32.mrf.mxu1 }
 0x5db   : > { %v8715_v46 = vmax.f32 %v8711_v33, 0.0  ;;  %v8567_v49 = vpop.f32.mrf.mxu0 }
 0x5dc   : > { %v8714_v15 = vmax.f32 %v8710_v13, 0.0  ;;  %v10936_v0 = vpop.f32.mrf.mxu1 }
 0x5dd   : > { %v10930_v31 = vpop.f32.mrf.mxu0 }
 0x5de   : > { %v8718_v34 = vmax.f32 %v8714_v15, %v8715_v46  ;;  %v8693_v32 = vpop.f32.mrf.mxu1 }
 0x5df   : > { %v8650_v2 = vpop.f32.mrf.mxu0  ;;  %v8702_v26 = vadd.f32 %v8693_v32, %v8509_v28  ;;  %v9241_v28 = vld [vmem:[%s13328_s10] sm:$0x1] }
 0x5e0   : > { %v8701_v51 = vadd.f32 %v8650_v2, %v8508_v22  ;;  %10950 = vmatpush3.msk.msra.mxu0 %vm8723_vm13, %v8718_v34  ;;  %v10947_v40 = vpop.f32.mrf.mxu1 }
 0x5e1   : > { %v8713_v1 = vadd.f32 %v9648_v12, %v8702_v26  ;;  %v10941_v35 = vpop.f32.mrf.mxu0  ;;  %10952 = vmatmul.mubr.msk.f32.vlgmr.msra.gmra.mxu0 %vm8720_vm14, %v12376_v6  ;;  %10959 = vmatprep.subr.mxu0 %v13352_v50 }
 0x5e2   : > { %v8712_v14 = vadd.f32 %v9648_v12, %v8701_v51  ;;  %10960 = vmatpush3.msk.msra.mxu0 %vm8723_vm13, %v8718_v34  ;;  %v8696_v21 = vpop.f32.mrf.mxu1  ;;  %10961 = vmatprep.mubr.msk.f32.mxu0 %vm11193_vm3, %v13352_v50 }
 0x5e3   : > { %v8717_v8 = vmax.f32 %v8713_v1, 0.0  ;;  %v8653_v9 = vpop.f32.mrf.mxu0  ;;  %10969 = vmatprep.subr.bf16.mxu0 %v13352_v50 }
 0x5e4   : > { %v8716_v56 = vmax.f32 %v8712_v14, 0.0  ;;  %v10948_v18 = vpop.f32.mrf.mxu1 }
 0x5e5   : > { %v10942_v41 = vpop.f32.mrf.mxu0  ;;  %10962 = vmatmul.mubr.msk.f32.vlgmr.msra.gmra.mxu0 %vm8720_vm14, %v12596_v4 }
 0x5e6   : > { %v8719_v30 = vmax.f32 %v8716_v56, %v8717_v8  ;;  %10971 = vmatprep.mubr.msk.bf16.mxu0 %vm11193_vm3, %v13352_v50 }
 0x5e8   : > { %10955 = vmatpush3.msk.msra.mxu1 %vm8723_vm13, %v8719_v30 }
 0x5e9   : > { %10957 = vmatmul.mubr.msk.f32.vlgmr.msra.gmra.mxu1 %vm8720_vm14, %v12376_v6  ;;  %10964 = vmatprep.subr.mxu1 %v13352_v50  ;;  %v11119_v6 = vld [vmem:[%s13325_s7 + $0x8] sm:$0xff]  }
 0x5ea   : > { %10965 = vmatpush3.msk.msra.mxu1 %vm8723_vm13, %v8719_v30  ;;  %10966 = vmatprep.mubr.msk.f32.mxu1 %vm11193_vm3, %v13352_v50 }
 0x5eb   : > { %10975 = vmatprep.subr.bf16.mxu1 %v13352_v50  ;;  %10970 = vmatpush3.bf16.msra.mxu0 %v11119_v6 }
 0x5ec   : > { %10981 = vmatprep.subr.bf16.mxu0 %v13352_v50 }
 0x5ed   : > { %10967 = vmatmul.mubr.msk.f32.vlgmr.msra.gmra.mxu1 %vm8720_vm14, %v12596_v4 }
 0x5ee   : > { %10977 = vmatprep.mubr.msk.bf16.mxu1 %vm11193_vm3, %v13352_v50  ;;  %10976 = vmatpush3.bf16.msra.mxu1 %v11118_v10 }
 0x5ef   : > { %10987 = vmatprep.subr.bf16.mxu1 %v13352_v50 }
 0x6a1   : > { %v8793_v59 = vpop.f32.mrf.mxu0 }
 0x6a3   : > { %v10953_v53 = vpop.f32.mrf.mxu0 }
 0x6a5   : > { %v8938_v4 = vpop.f32.mrf.mxu0 }
 0x6a6   : > { %v9012_v3 = vmax.f32 %v8793_v59, %v8938_v4 }
 0x6a7   : > { %v10963_v58 = vpop.f32.mrf.mxu0 }
 0x6a8   : > { %v9014_v44 = vpack.c.bf16 %v9012_v3, %v9012_v3 }
 0x6a9   : > { %v8866_v57 = vpop.f32.mrf.mxu1 }
 0x6aa   : > { %v9021_v29 = vshrl.u32 %v9014_v44, 16  ;;  %10978 = vmatmul.mubr.msk.bf16.vlgmr.msra.gmra.mxu1 %vm5697_vm8, %v9014_v44 }
 0x6ab   : > { %v10958_v47 = vpop.f32.mrf.mxu1  ;;  %10988 = vmatpush3.bf16.msra.mxu1 %v11121_v19  ;;  %10989 = vmatprep.mubr.msk.bf16.mxu1 %vm11193_vm3, %v13352_v50 }
 0x6ac   : > { %10972 = vmatmul.mubr.msk.bf16.vlgmr.msra.gmra.mxu0 %vm5697_vm8, %v9021_v29 }
 0x6ad   : > { %v9008_v27 = vpop.f32.mrf.mxu1  ;;  %10982 = vmatpush3.bf16.msra.mxu0 %v11120_v62  ;;  %10983 = vmatprep.mubr.msk.bf16.mxu0 %vm11193_vm3, %v13352_v50 }
 0x6ae   : > { %v9013_v5 = vmax.f32 %v8866_v57, %v9008_v27  ;;  %10993 = vmatprep.subr.bf16.mxu0 %v13352_v50 }
 0x6af   : > { %v10968_v60 = vpop.f32.mrf.mxu1 }
 0x6b0   : > { %v9120_v63 = vpack.c.bf16 %v9013_v5, %v9013_v5 }
 0x6b2   : > { %v9177_v36 = vshrl.u32 %v9120_v63, 16 }
 0x6b4   : > { %10984 = vmatmul.mubr.msk.bf16.vlgmr.msra.gmra.mxu0 %vm5697_vm8, %v9120_v63  ;;  %10990 = vmatmul.mubr.msk.bf16.vlgmr.msra.gmra.mxu1 %vm5697_vm8, %v9177_v36 }
 0x6b5   : > { %11001 = vmatprep.mubr.msk.bf16.mxu0 %vm11193_vm3, %v13352_v50  ;;  %10994 = vmatpush3.bf16.msra.mxu0 %v11122_v17 }
 0x6b6   : > { %10995 = vmatprep.subr.bf16.mxu0 %v13352_v50 }
 0x6b9   : > { %10996 = vmatpush3.bf16.msra.mxu0 %v11123_v43 }
 0x6ba   : > { %10997 = vmatprep.subr.bf16.mxu0 %v13352_v50 }
 0x6bd   : > { %10998 = vmatpush3.bf16.msra.mxu0 %v11124_v23 }
 0x6be   : > { %10999 = vmatprep.subr.bf16.mxu0 %v13352_v50  ;;  %v9229_v50 = vld [vmem:[%s13326_s8] sm:$0x1] }
 0x6c1   : > { %11000 = vmatpush3.bf16.msra.mxu0 %v11125_v39 }
 0x76a   : > { %v9114_v24 = vpop.f32.mrf.mxu1 }
 0x76c   : > { %v9066_v11 = vpop.f32.mrf.mxu0  ;;  %v10979_v42 = vpop.f32.mrf.mxu1 }
 0x76d   : > { %v9115_v20 = vadd.f32 %v9114_v24, %v9066_v11 }
 0x76e   : > { %v10973_v25 = vpop.f32.mrf.mxu0  ;;  %v9117_v7 = vpop.f32.mrf.mxu1 }
 0x770   : > { %v9069_v52 = vpop.f32.mrf.mxu0  ;;  %v10980_v12 = vpop.f32.mrf.mxu1 }
 0x772   : > { %v10974_v61 = vpop.f32.mrf.mxu0 }
 0x774   : > { %v9167_v37 = vpop.f32.mrf.mxu0  ;;  %v9222_v38 = vpop.f32.mrf.mxu1 }
 0x775   : > { %v9173_v48 = vadd.f32 %v9167_v37, %v9115_v20 }
 0x776   : > { %v10985_v33 = vpop.f32.mrf.mxu0  ;;  %v10991_v54 = vpop.f32.mrf.mxu1 }
 0x777   : > { %v9228_v13 = vadd.f32 %v9222_v38, %v9173_v48 }
 0x778   : > { %v9170_v45 = vpop.f32.mrf.mxu0  ;;  %v9225_v16 = vpop.f32.mrf.mxu1 }
 0x779   : > { %v9230_v46 = vadd.f32 %v9229_v50, %v9228_v13 }
 0x77a   : > { %v10986_v49 = vpop.f32.mrf.mxu0  ;;  %v10992_v55 = vpop.f32.mrf.mxu1 }
 0x77b   : > { %v9231_v15 = vmax.f32 %v9230_v46, 0.0 }
 0x77d   : > { %v9232_v0 = vpack.c.bf16 %v9231_v15, %v9231_v15 }
 0x77f   : > { %11002 = vmatmul.mubr.msk.bf16.vlgmr.msra.gmra.mxu0 %vm9266_vm15, %v9232_v0 }
 0x83f   : > { %v9304_v31 = vpop.f32.mrf.mxu0 }
 0x840   : > { %v9305_v22 = vadd.f32 %v9304_v31, %v9241_v28 }
 0x841   : > { %v11003_v34 = vpop.f32.mrf.mxu0 }
 0x842   : > { %v9311_v32 = vsel %vm9310_vm0, %v9305_v22, -inf }
 0x843   : > { %9312 = vmax.xlane.f32.xlu0 %v9311_v32  ;;  %v9307_v2 = vpop.f32.mrf.mxu0 }
 0x845   : > { %v11004_v26 = vpop.f32.mrf.mxu0 }
 0x8cc   : > { %v9313_v51 = vpop.xlane.xlu0 %9312 }
 0x8cd   : > { %v9314_v40 = vsub.f32 %v9305_v22, %v9313_v51 }
 0x8cf   : > { %v9315_v1 = vmul.f32 1.442695, %v9314_v40 }
 0x8d1   : > { %11126 = vpow2.f32 %v9315_v1 }
 0x8de   : > { %v11127_v35 = vpop.eup %11126 }
 0x8df   : > { %v9317_v14 = vsel %vm9310_vm0, %v11127_v35, 0.0 }
 0x8e0   : > { %9318 = vadd.xlane.f32.xlu0 %v9317_v14 }
 0x969   : > { %v9319_v21 = vpop.xlane.xlu0 %9318 }
 0x96a   : > { %11128 = vrcp.f32 %v9319_v21 }
 0x977   : > { %v11129_v8 = vpop.eup %11128 }
 0x978   : > { %v9321_v9 = vmul.f32 %v11129_v8, %v11127_v35 }
 0x97a   : > { %9322 = vst.msk [vmem:[%s378_s22] sm:$0x1] %vm9310_vm0, %v9321_v9 }
 0x97b   : > { %11143 = shalt.err (!%p11140_p3)
}
 0x97c   : > { %s11144_s25 = scalar_lea.hbm %s9334_s30, 16  ;;  %s11148_s22 = scalar_lea.hbm %s13329_s11, 32 }
 0x97d   : > { %p11145_p4 = scmp.ne.s32.totalorder %s9334_s30, %s11144_s25  ;;  %p11149_p9 = scmp.lt.s32.totalorder %s9334_s30, %s13329_s11 }
 0x97e   : > { %p11150_p10 = scmp.lt.s32.totalorder %s11148_s22, %s11144_s25 }
 0x97f   : > { %p11146_p7 = pnand %p11145_p4, %p11293_p5 }
 0x980   : > { %p11151_p11 = por %p11150_p10, %p11149_p9 }
 0x981   : > { %p11147_p8 = pneg %p11146_p7 }
 0x983   : > { %p11152_p12 = pnand %p11151_p11, %p11147_p8 }
 0x985   : > { %11155 = shalt.err (!%p11152_p12)
}
 0x986   : > { %11069 = dma.vmem_to_hbm [thread:$0]  (%p11293_p5), %s9337_s24, 16, %s9334_s30, %s9324_s12  }
 0x987 PF: > { %p11075_p13 = scmp.ge.s32.totalorder %s11190_s20, 2  ;;  %s9348_s0 = sand.u32 1, %s11178_s17  }
 0x988   : > { %s9349_s13 = scalar_lea.sflag [#allocation6], %s9348_s0 }
 0x989   : > { %p11072_p0 = pnand %p11075_p13, %p11297_p6 }
 0x98b   : > { %p11073_p1 = pneg %p11072_p0 }
 0x98d   : > { %11173 = dma.done.wait (%p11073_p1), %s9349_s13, 16  }
 0x98e   : > { %11175 = vsyncadd (%p11073_p1), %s9349_s13, 4294967280  ;;  %p21_p2 = scmp.ge.s32.totalorder %s11280_s23, 4   ;;  %s13423_s17 = smov %s11182_s18 }
 0x98f   : > { %s13424_s18 = smov %s11186_s19  ;;  %s13425_s19 = smov %s11291_s26 }
 0x990   : > { %s13426_s20 = smov %s11280_s23  ;;  %23 = sbr.rel (!%p21_p2) target bundleno = 6 (0x6), region = 114 }
 0x995   :  { %9353 = vsyncpa [#allocation6], 1 }
 0x996   :  { %9355 = vsyncpa [#allocation6 + $0x1], 1 }

</bundles_post_ra>
